<compile_context>
chip_gen: v5e
topology: v5e:2x2
jax: 0.10.0
libtpu: 0.0.40
codegen_flags: <defaults>
</compile_context>

<pallas_src>
import jax
import jax.numpy as jnp
from jax.experimental import pallas as pl
from jax.experimental.pallas import tpu as pltpu


def _signals_classifier_kernel(x_ref, w1_ref, b1_ref, w2_ref, b2_ref,
                               w3_ref, b3_ref, o_ref):
    """One (TB, D_in) batch tile; all weights resident in VMEM."""
    x = x_ref[...].astype(jnp.float32)

    # fc1 + ReLU
    h1 = jnp.dot(x, w1_ref[...], preferred_element_type=jnp.float32) + b1_ref[...]
    h1 = jnp.maximum(h1, 0.0)
    # TODO(synk): dropout1 (p=0.6) is identity in eval mode; stochastic
    # training-mode dropout is intentionally not implemented here.

    # fc2 + ReLU
    h2 = jnp.dot(h1, w2_ref[...], preferred_element_type=jnp.float32) + b2_ref[...]
    h2 = jnp.maximum(h2, 0.0)
    # TODO(synk): dropout2 identity (eval mode), as above.

    # fc3 (logits)
    out = jnp.dot(h2, w3_ref[...], preferred_element_type=jnp.float32) + b3_ref[...]
    o_ref[...] = out.astype(o_ref.dtype)


def _pick_batch_tile(batch: int) -> int:
    """Largest tile that divides the batch and keeps (8,·) sublane alignment."""
    for tb in (512, 256, 128, 64, 32, 16, 8):
        if batch % tb == 0:
            return tb
    return batch  # small / odd batch: use the full extent (valid block shape)


def signals_classifier(x, w1, b1, w2, b2, w3, b3):
    """Forward pass of SignalsClassifier (eval mode).

    x : (B, signals_dim)
    w1: (signals_dim, 2048)  b1: (2048,)
    w2: (2048, 512)          b2: (512,)
    w3: (512, num_classes)   b3: (num_classes,)
    returns logits (B, num_classes)
    """
    B, d_in = x.shape
    h1 = w1.shape[1]
    h2 = w2.shape[1]
    n_cls = w3.shape[1]
    assert w1.shape[0] == d_in and w2.shape[0] == h1 and w3.shape[0] == h2

    # Biases as (1, H) rows so every operand is >= 2-D and lane-major.
    b1r = b1.reshape(1, h1)
    b2r = b2.reshape(1, h2)
    b3r = b3.reshape(1, n_cls)

    tb = _pick_batch_tile(B)
    grid = (B // tb,)

    itemsize = jnp.dtype(jnp.float32).itemsize
    flops = 2 * B * (d_in * h1 + h1 * h2 + h2 * n_cls)
    bytes_accessed = itemsize * (
        B * d_in + d_in * h1 + h1 + h1 * h2 + h2 + h2 * n_cls + n_cls + B * n_cls
    )

    return pl.pallas_call(
        _signals_classifier_kernel,
        out_shape=jax.ShapeDtypeStruct((B, n_cls), x.dtype),
        grid_spec=pltpu.PrefetchScalarGridSpec(
            num_scalar_prefetch=0,
            grid=grid,
            in_specs=[
                pl.BlockSpec((tb, d_in), lambda i: (i, 0)),   # x tile
                pl.BlockSpec((d_in, h1), lambda i: (0, 0)),   # W1 (resident)
                pl.BlockSpec((1, h1), lambda i: (0, 0)),      # b1
                pl.BlockSpec((h1, h2), lambda i: (0, 0)),     # W2 (resident)
                pl.BlockSpec((1, h2), lambda i: (0, 0)),      # b2
                pl.BlockSpec((h2, n_cls), lambda i: (0, 0)),  # W3 (resident)
                pl.BlockSpec((1, n_cls), lambda i: (0, 0)),   # b3
            ],
            out_specs=pl.BlockSpec((tb, n_cls), lambda i: (i, 0)),
        ),
        compiler_params=pltpu.CompilerParams(
            dimension_semantics=("parallel",),
            vmem_limit_bytes=32 * 1024 * 1024,
        ),
        cost_estimate=pl.CostEstimate(
            flops=flops, transcendentals=0, bytes_accessed=bytes_accessed
        ),
    )(x, w1, b1r, w2, b2r, w3, b3r)


def _reference_forward(x, w1, b1, w2, b2, w3, b3):
    h = jnp.maximum(x @ w1 + b1, 0.0)
    h = jnp.maximum(h @ w2 + b2, 0.0)
    return h @ w3 + b3


if __name__ == "__main__":
    # Small shapes consistent with the module: the hidden sizes (2048, 512)
    # are fixed by SignalsClassifier.__init__; signals_dim / num_classes /
    # batch are kept small.
    batch, signals_dim, num_classes = 8, 32, 10
    H1, H2 = 2048, 512

    key = jax.random.PRNGKey(0)
    kx, kw1, kb1, kw2, kb2, kw3, kb3 = jax.random.split(key, 7)

    def linear_init(kw, kb, fan_in, fan_out):
        # Matches torch.nn.Linear default init: U(-1/sqrt(fan_in), 1/sqrt(fan_in)).
        bound = 1.0 / (fan_in ** 0.5)
        w = jax.random.uniform(kw, (fan_in, fan_out), jnp.float32, -bound, bound)
        b = jax.random.uniform(kb, (fan_out,), jnp.float32, -bound, bound)
        return w, b

    x = jax.random.normal(kx, (batch, signals_dim), dtype=jnp.float32)
    w1, b1 = linear_init(kw1, kb1, signals_dim, H1)
    w2, b2 = linear_init(kw2, kb2, H1, H2)
    w3, b3 = linear_init(kw3, kb3, H2, num_classes)

    out = signals_classifier(x, w1, b1, w2, b2, w3, b3)
    jax.block_until_ready(out)

    ref = _reference_forward(x, w1, b1, w2, b2, w3, b3)
    assert out.shape == (batch, num_classes)
    assert jnp.allclose(out, ref, atol=2e-2, rtol=2e-2), "mismatch vs reference"

    print("KERNEL_OK")
</pallas_src>

<mosaic_0001>
module attributes {stable_mosaic.version = 11 : i64} {
  func.func @_signals_classifier_kernel(%arg0: i32, %arg1: memref<8x32xf32, #tpu.memory_space<vmem>>, %arg2: memref<32x2048xf32, #tpu.memory_space<vmem>>, %arg3: memref<1x2048xf32, #tpu.memory_space<vmem>>, %arg4: memref<2048x512xf32, #tpu.memory_space<vmem>>, %arg5: memref<1x512xf32, #tpu.memory_space<vmem>>, %arg6: memref<512x10xf32, #tpu.memory_space<vmem>>, %arg7: memref<1x10xf32, #tpu.memory_space<vmem>>, %arg8: memref<8x10xf32, #tpu.memory_space<vmem>>) attributes {dimension_semantics = [#tpu.dimension_semantics<parallel>], iteration_bounds = array<i64: 1>, scalar_prefetch = 0 : i64, scratch_operands = 0 : i64, tpu.core_type = #tpu.core_type<tc>, window_params = [{transform_indices = @transform_0, window_bounds = array<i64: 8, 32>}, {pipeline_mode = #tpu.pipeline_mode<synchronous>, transform_indices = @transform_1, window_bounds = array<i64: 32, 2048>}, {pipeline_mode = #tpu.pipeline_mode<synchronous>, transform_indices = @transform_2, window_bounds = array<i64: 1, 2048>}, {pipeline_mode = #tpu.pipeline_mode<synchronous>, transform_indices = @transform_3, window_bounds = array<i64: 2048, 512>}, {pipeline_mode = #tpu.pipeline_mode<synchronous>, transform_indices = @transform_4, window_bounds = array<i64: 1, 512>}, {pipeline_mode = #tpu.pipeline_mode<synchronous>, transform_indices = @transform_5, window_bounds = array<i64: 512, 10>}, {pipeline_mode = #tpu.pipeline_mode<synchronous>, transform_indices = @transform_6, window_bounds = array<i64: 1, 10>}, {transform_indices = @transform_7, window_bounds = array<i64: 8, 10>}]} {
    %c0 = arith.constant 0 : index
    %c0_0 = arith.constant 0 : index
    %0 = vector.load %arg1[%c0, %c0_0] : memref<8x32xf32, #tpu.memory_space<vmem>>, vector<8x32xf32>
    %c0_1 = arith.constant 0 : index
    %c0_2 = arith.constant 0 : index
    %1 = vector.load %arg2[%c0_1, %c0_2] : memref<32x2048xf32, #tpu.memory_space<vmem>>, vector<32x2048xf32>
    %cst = arith.constant dense<0.000000e+00> : vector<8x2048xf32>
    %2 = tpu.matmul %0, %1, %cst {dimension_numbers = #tpu.dot_dimension_numbers<[1], [0], [0], [1], [0, 0, 1, 1], [], []>} : vector<8x32xf32>, vector<32x2048xf32>, vector<8x2048xf32> -> vector<8x2048xf32>
    %c0_3 = arith.constant 0 : index
    %c0_4 = arith.constant 0 : index
    %3 = vector.load %arg3[%c0_3, %c0_4] : memref<1x2048xf32, #tpu.memory_space<vmem>>, vector<1x2048xf32>
    %4 = vector.broadcast %3 : vector<1x2048xf32> to vector<8x2048xf32>
    %5 = arith.addf %2, %4 : vector<8x2048xf32>
    %cst_5 = arith.constant 0.000000e+00 : f32
    %6 = vector.broadcast %cst_5 : f32 to vector<8x2048xf32>
    %7 = arith.maximumf %5, %6 : vector<8x2048xf32>
    %c0_6 = arith.constant 0 : index
    %c0_7 = arith.constant 0 : index
    %8 = vector.load %arg4[%c0_6, %c0_7] : memref<2048x512xf32, #tpu.memory_space<vmem>>, vector<2048x512xf32>
    %cst_8 = arith.constant dense<0.000000e+00> : vector<8x512xf32>
    %9 = tpu.matmul %7, %8, %cst_8 {dimension_numbers = #tpu.dot_dimension_numbers<[1], [0], [0], [1], [0, 0, 1, 1], [], []>} : vector<8x2048xf32>, vector<2048x512xf32>, vector<8x512xf32> -> vector<8x512xf32>
    %c0_9 = arith.constant 0 : index
    %c0_10 = arith.constant 0 : index
    %10 = vector.load %arg5[%c0_9, %c0_10] : memref<1x512xf32, #tpu.memory_space<vmem>>, vector<1x512xf32>
    %11 = vector.broadcast %10 : vector<1x512xf32> to vector<8x512xf32>
    %12 = arith.addf %9, %11 : vector<8x512xf32>
    %cst_11 = arith.constant 0.000000e+00 : f32
    %13 = vector.broadcast %cst_11 : f32 to vector<8x512xf32>
    %14 = arith.maximumf %12, %13 : vector<8x512xf32>
    %c0_12 = arith.constant 0 : index
    %c0_13 = arith.constant 0 : index
    %15 = vector.load %arg6[%c0_12, %c0_13] : memref<512x10xf32, #tpu.memory_space<vmem>>, vector<512x10xf32>
    %cst_14 = arith.constant dense<0.000000e+00> : vector<8x10xf32>
    %16 = tpu.matmul %14, %15, %cst_14 {dimension_numbers = #tpu.dot_dimension_numbers<[1], [0], [0], [1], [0, 0, 1, 1], [], []>} : vector<8x512xf32>, vector<512x10xf32>, vector<8x10xf32> -> vector<8x10xf32>
    %c0_15 = arith.constant 0 : index
    %c0_16 = arith.constant 0 : index
    %17 = vector.load %arg7[%c0_15, %c0_16] : memref<1x10xf32, #tpu.memory_space<vmem>>, vector<1x10xf32>
    %18 = vector.broadcast %17 : vector<1x10xf32> to vector<8x10xf32>
    %19 = arith.addf %16, %18 : vector<8x10xf32>
    %c0_17 = arith.constant 0 : index
    %c0_18 = arith.constant 0 : index
    %20 = vector.load %arg8[%c0_17, %c0_18] : memref<8x10xf32, #tpu.memory_space<vmem>>, vector<8x10xf32>
    tpu.vector_store %arg8[%c0_17, %c0_18], %19 {strides = array<i32>} : memref<8x10xf32, #tpu.memory_space<vmem>>, vector<8x10xf32>,
    return
  }
  func.func @transform_0(%arg0: i32) -> (i32, i32) {
    %c0_i32 = arith.constant 0 : i32
    %c0_i32_0 = arith.constant 0 : i32
    return %arg0, %c0_i32 : i32, i32
  }
  func.func @transform_1(%arg0: i32) -> (i32, i32) {
    %c0_i32 = arith.constant 0 : i32
    %c0_i32_0 = arith.constant 0 : i32
    %c0_i32_1 = arith.constant 0 : i32
    return %c0_i32, %c0_i32_0 : i32, i32
  }
  func.func @transform_2(%arg0: i32) -> (i32, i32) {
    %c0_i32 = arith.constant 0 : i32
    %c0_i32_0 = arith.constant 0 : i32
    %c0_i32_1 = arith.constant 0 : i32
    return %c0_i32, %c0_i32_0 : i32, i32
  }
  func.func @transform_3(%arg0: i32) -> (i32, i32) {
    %c0_i32 = arith.constant 0 : i32
    %c0_i32_0 = arith.constant 0 : i32
    %c0_i32_1 = arith.constant 0 : i32
    return %c0_i32, %c0_i32_0 : i32, i32
  }
  func.func @transform_4(%arg0: i32) -> (i32, i32) {
    %c0_i32 = arith.constant 0 : i32
    %c0_i32_0 = arith.constant 0 : i32
    %c0_i32_1 = arith.constant 0 : i32
    return %c0_i32, %c0_i32_0 : i32, i32
  }
  func.func @transform_5(%arg0: i32) -> (i32, i32) {
    %c0_i32 = arith.constant 0 : i32
    %c0_i32_0 = arith.constant 0 : i32
    %c0_i32_1 = arith.constant 0 : i32
    return %c0_i32, %c0_i32_0 : i32, i32
  }
  func.func @transform_6(%arg0: i32) -> (i32, i32) {
    %c0_i32 = arith.constant 0 : i32
    %c0_i32_0 = arith.constant 0 : i32
    %c0_i32_1 = arith.constant 0 : i32
    return %c0_i32, %c0_i32_0 : i32, i32
  }
  func.func @transform_7(%arg0: i32) -> (i32, i32) {
    %c0_i32 = arith.constant 0 : i32
    %c0_i32_0 = arith.constant 0 : i32
    return %arg0, %c0_i32 : i32, i32
  }
}

</mosaic_0001>

<bundles_post_ra>
// kernel: tpu_custom_call.1
= control target key start
LH: loop header
LB: loop body
LE: loop exit
PB: predicated region body
PF: predicated region fallthrough
CT: control target
= control target key end

     0   :  { %12 = vsyncpa [#allocation3], 0  ;;  %s3764_s0 = inlined_call_operand.hbm [shape: f32[8,32], index: 0, kind: input, shape index: {}]   ;;  %s3765_s1 = inlined_call_operand.hbm [shape: f32[32,2048], index: 1, kind: input, shape index: {}]   ;;  %s3766_s2 = inlined_call_operand.hbm [shape: f32[1,2048], index: 2, kind: input, shape index: {}]   ;;  %s3767_s3 = inlined_call_operand.hbm [shape: f32[2048,512], index: 3, kind: input, shape index: {}]   ;;  %s3768_s4 = inlined_call_operand.hbm [shape: f32[1,512], index: 4, kind: input, shape index: {}]   ;;  %s3769_s5 = inlined_call_operand.vmem [shape: f32[512,10], index: 5, kind: input, shape index: {}]   ;;  %s3770_s6 = inlined_call_operand.hbm [shape: f32[1,10], index: 6, kind: input, shape index: {}]   ;;  %s3771_s7 = inlined_call_operand.hbm [shape: f32[8,10], index: 7, kind: output, shape index: {}]  }
   0x1   :  { %13 = vsyncpa [#allocation6], 0 }
   0x2   :  { %14 = vsyncpa [#allocation9], 0 }
   0x3   :  { %15 = vsyncpa [#allocation12], 0  ;;  %s32_s26 = sshll.u32 %s3765_s1, 4  ;;  %s33_s26 = int_to_ptr.hbm [resolvable:$true] %s32_s26 }
   0x4   :  { %16 = vsyncpa [#allocation4], 0  ;;  %s3248_s27 = smov [#allocation5]   ;;  %s56_s8 = sshll.u32 %s3767_s3, 4  ;;  %s57_s8 = int_to_ptr.hbm [resolvable:$true] %s56_s8 }
   0x5   :  { %s34_s28 = sshll.u32 %s3248_s27, 4  ;;  %s3249_s9 = smov 2048   ;;  %s35_s28 = int_to_ptr.vmem [resolvable:$true] %s34_s28 }
   0x6   :  { %s3250_s10 = smov 128   ;;  %s3251_s11 = smov [#allocation8]  }
   0x7   :  { %40 = dma.hbm_to_vmem [thread:$0]  %s33_s26, 8192, %s35_s28, [#allocation6], %s3249_s9, %s3249_s9, %s3250_s10  }
   0x8   :  { %s58_s12 = sshll.u32 %s3251_s11, 4  ;;  %s3252_s13 = smov 512   ;;  %s59_s12 = int_to_ptr.vmem [resolvable:$true] %s58_s12 }
   0x9   :  { %s3253_s14 = smov 32   ;;  %s22_s16 = sshll.u32 %s3764_s0, 4  ;;  %s23_s16 = int_to_ptr.hbm [resolvable:$true] %s22_s16 }
   0xa   :  { %64 = dma.hbm_to_vmem [thread:$0]  %s57_s8, 131072, %s59_s12, [#allocation9], %s3252_s13, %s3252_s13, %s3253_s14  }
   0xb   :  { %s3254_s17 = smov [#allocation2]   ;;  %s46_s20 = sshll.u32 %s3766_s2, 4  ;;  %s47_s20 = int_to_ptr.hbm [resolvable:$true] %s46_s20 }
   0xc   :  { %s24_s18 = sshll.u32 %s3254_s17, 4  ;;  %s3255_s21 = smov [#allocation7]   ;;  %s25_s18 = int_to_ptr.vmem [resolvable:$true] %s24_s18 }
   0xd   :  { %27 = dma.hbm_to_vmem [thread:$0]  %s23_s16, 128, %s25_s18, [#allocation3]  }
   0xe   :  { %s48_s22 = sshll.u32 %s3255_s21, 4  ;;  %s70_s25 = sshll.u32 %s3768_s4, 4  ;;  %s49_s22 = int_to_ptr.vmem [resolvable:$true] %s48_s22  ;;  %s71_s25 = int_to_ptr.hbm [resolvable:$true] %s70_s25 }
   0xf   :  { %51 = dma.hbm_to_vmem [thread:$0]  %s47_s20, 256, %s49_s22, [#allocation6]  }
  0x10   :  { %s83_s27 = sshll.u32 %s3770_s6, 4  ;;  %s3256_s28 = smov [#allocation10]   ;;  %s84_s27 = int_to_ptr.hbm [resolvable:$true] %s83_s27 }
  0x11   :  { %s72_s29 = sshll.u32 %s3256_s28, 4  ;;  %s3257_s2 = smov [#allocation11]   ;;  %s73_s29 = int_to_ptr.vmem [resolvable:$true] %s72_s29 }
  0x12   :  { %75 = dma.hbm_to_vmem [thread:$0]  %s71_s25, 64, %s73_s29, [#allocation9]  }
  0x13   :  { %s85_s30 = sshll.u32 %s3257_s2, 4  ;;  %s86_s30 = int_to_ptr.vmem [resolvable:$true] %s85_s30 }
  0x14   :  { %88 = dma.hbm_to_vmem [thread:$0]  %s84_s27, 16, %s86_s30, [#allocation12]  }
  0x15   :  { %3238 = dma.done.wait [#allocation3], 128  }
  0x16   :  { %3239 = vsyncadd [#allocation3], 4294967168 }
  0x17   :  { %3240 = dma.done.wait [#allocation6], 8448  }
  0x18   :  { %3241 = vsyncadd [#allocation6], 4294958848 }
  0x19   :  { %3242 = dma.done.wait [#allocation9], 131136  }
  0x1a   :  { %3243 = vsyncadd [#allocation9], 4294836160 }
  0x1b   :  { %3244 = dma.done.wait [#allocation12], 16  }
  0x1c   :  { %3245 = vsyncadd [#allocation12], 4294967280  ;;  %v162_v0 = vld [vmem:[#allocation5 + $0x180] sm:$0xff]  ;;  %v163_v1 = vld [vmem:[#allocation5 + $0x188] sm:$0xff]  ;;  %vm214_vm0 = vcmask 261120   ;;  %s3029_s3 = sshll.u32 %s3771_s7, 4  ;;  %s3030_s3 = int_to_ptr.hbm [resolvable:$true] %s3029_s3 }
  0x1d   :  { %v164_v2 = vld [vmem:[#allocation5 + $0x190] sm:$0xff]  ;;  %230 = vmatpush.msra.mxu0 %v162_v0  ;;  %250 = vmatpush.msra.mxu1 %v163_v1  ;;  %v165_v3 = vld [vmem:[#allocation5 + $0x198] sm:$0xff]  ;;  %v146_v4 = vld [vmem:[#allocation5 + $0x100] sm:$0xff]  ;;  %vm3020_vm1 = vcmask 80896  }
  0x1e   :  { %v147_v5 = vld [vmem:[#allocation5 + $0x108] sm:$0xff]  ;;  %270 = vmatpush.msra.mxu2 %v164_v2  ;;  %290 = vmatpush.msra.mxu3 %v165_v3  ;;  %v148_v6 = vld [vmem:[#allocation5 + $0x110] sm:$0xff]  ;;  %v149_v7 = vld [vmem:[#allocation5 + $0x118] sm:$0xff] }
  0x1f   :  { %v130_v8 = vld [vmem:[#allocation5 + $0x80] sm:$0xff]  ;;  %231 = vmatpush.msra.mxu0 %v146_v4  ;;  %251 = vmatpush.msra.mxu1 %v147_v5  ;;  %v131_v9 = vld [vmem:[#allocation5 + $0x88] sm:$0xff]  ;;  %v132_v10 = vld [vmem:[#allocation5 + $0x90] sm:$0xff] }
  0x20   :  { %v133_v11 = vld [vmem:[#allocation5 + $0x98] sm:$0xff]  ;;  %271 = vmatpush.msra.mxu2 %v148_v6  ;;  %291 = vmatpush.msra.mxu3 %v149_v7  ;;  %v114_v12 = vld [vmem:[#allocation5] sm:$0xff]  ;;  %v115_v13 = vld [vmem:[#allocation5 + $0x8] sm:$0xff] }
  0x21   :  { %232 = vmatpush.msra.mxu0 %v130_v8  ;;  %252 = vmatpush.msra.mxu1 %v131_v9  ;;  %v116_v14 = vld [vmem:[#allocation5 + $0x10] sm:$0xff]  ;;  %v117_v15 = vld [vmem:[#allocation5 + $0x18] sm:$0xff]  ;;  %v166_v19 = vld [vmem:[#allocation5 + $0x1a0] sm:$0xff] }
  0x22   :  { %272 = vmatpush.msra.mxu2 %v132_v10  ;;  %292 = vmatpush.msra.mxu3 %v133_v11  ;;  %v3317_v16 = vld [vmem:[#allocation2] sm:$0xff]  ;;  %v168_v17 = vld [vmem:[#allocation5 + $0x1b0] sm:$0xff]  ;;  %v167_v20 = vld [vmem:[#allocation5 + $0x1a8] sm:$0xff] }
  0x23   :  { %233 = vmatpush.msra.mxu0 %v114_v12  ;;  %253 = vmatpush.msra.mxu1 %v115_v13  ;;  %v169_v18 = vld [vmem:[#allocation5 + $0x1b8] sm:$0xff]  ;;  %v152_v21 = vld [vmem:[#allocation5 + $0x130] sm:$0xff]  ;;  %v150_v23 = vld [vmem:[#allocation5 + $0x120] sm:$0xff] }
  0x24   :  { %273 = vmatpush.msra.mxu2 %v116_v14  ;;  %293 = vmatpush.msra.mxu3 %v117_v15  ;;  %v153_v22 = vld [vmem:[#allocation5 + $0x138] sm:$0xff]  ;;  %v151_v24 = vld [vmem:[#allocation5 + $0x128] sm:$0xff]  ;;  %v136_v25 = vld [vmem:[#allocation5 + $0xb0] sm:$0xff] }
  0x25   :  { %3042 = vmatmul.msk.f32.vlgmr.msra.gmra.mxu0 %vm214_vm0, %v3317_v16  ;;  %3043 = vmatmul.msk.f32.vlgmr.msra.gmra.mxu1 %vm214_vm0, %v3317_v16  ;;  %v137_v26 = vld [vmem:[#allocation5 + $0xb8] sm:$0xff]  ;;  %v134_v27 = vld [vmem:[#allocation5 + $0xa0] sm:$0xff]  ;;  %v135_v28 = vld [vmem:[#allocation5 + $0xa8] sm:$0xff] }
  0x26   :  { %3044 = vmatmul.msk.f32.vlgmr.msra.gmra.mxu2 %vm214_vm0, %v3317_v16  ;;  %3045 = vmatmul.msk.f32.vlgmr.msra.gmra.mxu3 %vm214_vm0, %v3317_v16  ;;  %v120_v29 = vld [vmem:[#allocation5 + $0x30] sm:$0xff]  ;;  %v121_v30 = vld [vmem:[#allocation5 + $0x38] sm:$0xff]  ;;  %v118_v31 = vld [vmem:[#allocation5 + $0x20] sm:$0xff] }
  0x27   :  { %350 = vmatpush.msrb.mxu2 %v168_v17  ;;  %370 = vmatpush.msrb.mxu3 %v169_v18  ;;  %v119_v32 = vld [vmem:[#allocation5 + $0x28] sm:$0xff]  ;;  %v170_v33 = vld [vmem:[#allocation5 + $0x1c0] sm:$0xff]  ;;  %v172_v34 = vld [vmem:[#allocation5 + $0x1d0] sm:$0xff] }
  0x28   :  { %310 = vmatpush.msrb.mxu0 %v166_v19  ;;  %330 = vmatpush.msrb.mxu1 %v167_v20  ;;  %v171_v35 = vld [vmem:[#allocation5 + $0x1c8] sm:$0xff]  ;;  %v173_v36 = vld [vmem:[#allocation5 + $0x1d8] sm:$0xff]  ;;  %v154_v37 = vld [vmem:[#allocation5 + $0x140] sm:$0xff] }
  0x29   :  { %351 = vmatpush.msrb.mxu2 %v152_v21  ;;  %371 = vmatpush.msrb.mxu3 %v153_v22  ;;  %v156_v38 = vld [vmem:[#allocation5 + $0x150] sm:$0xff]  ;;  %v155_v39 = vld [vmem:[#allocation5 + $0x148] sm:$0xff]  ;;  %v157_v40 = vld [vmem:[#allocation5 + $0x158] sm:$0xff] }
  0x2a   :  { %311 = vmatpush.msrb.mxu0 %v150_v23  ;;  %331 = vmatpush.msrb.mxu1 %v151_v24  ;;  %v138_v41 = vld [vmem:[#allocation5 + $0xc0] sm:$0xff]  ;;  %v140_v42 = vld [vmem:[#allocation5 + $0xd0] sm:$0xff]  ;;  %v139_v43 = vld [vmem:[#allocation5 + $0xc8] sm:$0xff] }
  0x2b   :  { %352 = vmatpush.msrb.mxu2 %v136_v25  ;;  %372 = vmatpush.msrb.mxu3 %v137_v26  ;;  %v141_v44 = vld [vmem:[#allocation5 + $0xd8] sm:$0xff]  ;;  %v122_v45 = vld [vmem:[#allocation5 + $0x40] sm:$0xff]  ;;  %v124_v46 = vld [vmem:[#allocation5 + $0x50] sm:$0xff] }
  0x2c   :  { %312 = vmatpush.msrb.mxu0 %v134_v27  ;;  %332 = vmatpush.msrb.mxu1 %v135_v28  ;;  %v123_v47 = vld [vmem:[#allocation5 + $0x48] sm:$0xff]  ;;  %v125_v48 = vld [vmem:[#allocation5 + $0x58] sm:$0xff]  ;;  %v174_v49 = vld [vmem:[#allocation5 + $0x1e0] sm:$0xff] }
  0x2d   :  { %353 = vmatpush.msrb.mxu2 %v120_v29  ;;  %373 = vmatpush.msrb.mxu3 %v121_v30  ;;  %v176_v50 = vld [vmem:[#allocation5 + $0x1f0] sm:$0xff]  ;;  %v175_v51 = vld [vmem:[#allocation5 + $0x1e8] sm:$0xff]  ;;  %v177_v52 = vld [vmem:[#allocation5 + $0x1f8] sm:$0xff] }
  0x2e   :  { %3048 = vmatmul.msk.f32.vlgmr.msrb.gmra.mxu2 %vm214_vm0, %v3317_v16  ;;  %3049 = vmatmul.msk.f32.vlgmr.msrb.gmra.mxu3 %vm214_vm0, %v3317_v16  ;;  %v158_v53 = vld [vmem:[#allocation5 + $0x160] sm:$0xff]  ;;  %v160_v54 = vld [vmem:[#allocation5 + $0x170] sm:$0xff]  ;;  %v159_v55 = vld [vmem:[#allocation5 + $0x168] sm:$0xff] }
  0x2f   :  { %313 = vmatpush.msrb.mxu0 %v118_v31  ;;  %333 = vmatpush.msrb.mxu1 %v119_v32  ;;  %v161_v56 = vld [vmem:[#allocation5 + $0x178] sm:$0xff]  ;;  %v142_v57 = vld [vmem:[#allocation5 + $0xe0] sm:$0xff]  ;;  %v144_v58 = vld [vmem:[#allocation5 + $0xf0] sm:$0xff] }
  0x30   :  { %3046 = vmatmul.msk.f32.vlgmr.msrb.gmra.mxu0 %vm214_vm0, %v3317_v16  ;;  %3047 = vmatmul.msk.f32.vlgmr.msrb.gmra.mxu1 %vm214_vm0, %v3317_v16  ;;  %v143_v59 = vld [vmem:[#allocation5 + $0xe8] sm:$0xff]  ;;  %v145_v60 = vld [vmem:[#allocation5 + $0xf8] sm:$0xff]  ;;  %v126_v61 = vld [vmem:[#allocation5 + $0x60] sm:$0xff] }
  0x31   :  { %390 = vmatpush.msra.mxu0 %v170_v33  ;;  %430 = vmatpush.msra.mxu2 %v172_v34  ;;  %v128_v62 = vld [vmem:[#allocation5 + $0x70] sm:$0xff]  ;;  %v127_v63 = vld [vmem:[#allocation5 + $0x68] sm:$0xff]  ;;  %v129_v0 = vld [vmem:[#allocation5 + $0x78] sm:$0xff] }
  0x32   :  { %410 = vmatpush.msra.mxu1 %v171_v35  ;;  %450 = vmatpush.msra.mxu3 %v173_v36  ;;  %v614_v1 = vld [vmem:[#allocation8 + $0x1e0] sm:$0xff] }
  0x33   :  { %391 = vmatpush.msra.mxu0 %v154_v37  ;;  %431 = vmatpush.msra.mxu2 %v156_v38  ;;  %v678_v2 = vld [vmem:[#allocation8 + $0x3e0] sm:$0xff] }
  0x34   :  { %411 = vmatpush.msra.mxu1 %v155_v39  ;;  %451 = vmatpush.msra.mxu3 %v157_v40  ;;  %v742_v3 = vld [vmem:[#allocation8 + $0x5e0] sm:$0xff] }
  0x35   :  { %392 = vmatpush.msra.mxu0 %v138_v41  ;;  %432 = vmatpush.msra.mxu2 %v140_v42  ;;  %v806_v4 = vld [vmem:[#allocation8 + $0x7e0] sm:$0xff] }
  0x36   :  { %412 = vmatpush.msra.mxu1 %v139_v43  ;;  %452 = vmatpush.msra.mxu3 %v141_v44  ;;  %v610_v5 = vld [vmem:[#allocation8 + $0x1c0] sm:$0xff] }
  0x37   :  { %393 = vmatpush.msra.mxu0 %v122_v45  ;;  %433 = vmatpush.msra.mxu2 %v124_v46  ;;  %v674_v6 = vld [vmem:[#allocation8 + $0x3c0] sm:$0xff] }
  0x38   :  { %3050 = vmatmul.msk.f32.vlgmr.msra.gmra.mxu0 %vm214_vm0, %v3317_v16  ;;  %3052 = vmatmul.msk.f32.vlgmr.msra.gmra.mxu2 %vm214_vm0, %v3317_v16  ;;  %v738_v7 = vld [vmem:[#allocation8 + $0x5c0] sm:$0xff] }
  0x39   :  { %413 = vmatpush.msra.mxu1 %v123_v47  ;;  %453 = vmatpush.msra.mxu3 %v125_v48  ;;  %v802_v8 = vld [vmem:[#allocation8 + $0x7c0] sm:$0xff] }
  0x3a   :  { %3051 = vmatmul.msk.f32.vlgmr.msra.gmra.mxu1 %vm214_vm0, %v3317_v16  ;;  %3053 = vmatmul.msk.f32.vlgmr.msra.gmra.mxu3 %vm214_vm0, %v3317_v16  ;;  %v606_v9 = vld [vmem:[#allocation8 + $0x1a0] sm:$0xff] }
  0x3b   :  { %470 = vmatpush.msrb.mxu0 %v174_v49  ;;  %510 = vmatpush.msrb.mxu2 %v176_v50  ;;  %v670_v10 = vld [vmem:[#allocation8 + $0x3a0] sm:$0xff] }
  0x3c   :  { %490 = vmatpush.msrb.mxu1 %v175_v51  ;;  %530 = vmatpush.msrb.mxu3 %v177_v52  ;;  %v734_v11 = vld [vmem:[#allocation8 + $0x5a0] sm:$0xff] }
  0x3d   :  { %471 = vmatpush.msrb.mxu0 %v158_v53  ;;  %511 = vmatpush.msrb.mxu2 %v160_v54  ;;  %v798_v12 = vld [vmem:[#allocation8 + $0x7a0] sm:$0xff] }
  0x3e   :  { %491 = vmatpush.msrb.mxu1 %v159_v55  ;;  %531 = vmatpush.msrb.mxu3 %v161_v56  ;;  %v602_v13 = vld [vmem:[#allocation8 + $0x180] sm:$0xff] }
  0x3f   :  { %472 = vmatpush.msrb.mxu0 %v142_v57  ;;  %512 = vmatpush.msrb.mxu2 %v144_v58  ;;  %v666_v14 = vld [vmem:[#allocation8 + $0x380] sm:$0xff] }
  0x40   :  { %492 = vmatpush.msrb.mxu1 %v143_v59  ;;  %532 = vmatpush.msrb.mxu3 %v145_v60  ;;  %v730_v15 = vld [vmem:[#allocation8 + $0x580] sm:$0xff] }
  0x41   :  { %473 = vmatpush.msrb.mxu0 %v126_v61  ;;  %513 = vmatpush.msrb.mxu2 %v128_v62  ;;  %v598_v17 = vld [vmem:[#allocation8 + $0x160] sm:$0xff] }
  0x42   :  { %3054 = vmatmul.msk.f32.vlgmr.msrb.gmra.mxu0 %vm214_vm0, %v3317_v16  ;;  %3056 = vmatmul.msk.f32.vlgmr.msrb.gmra.mxu2 %vm214_vm0, %v3317_v16  ;;  %v662_v18 = vld [vmem:[#allocation8 + $0x360] sm:$0xff] }
  0x43   :  { %493 = vmatpush.msrb.mxu1 %v127_v63  ;;  %533 = vmatpush.msrb.mxu3 %v129_v0  ;;  %v726_v19 = vld [vmem:[#allocation8 + $0x560] sm:$0xff] }
  0x44   :  { %3055 = vmatmul.msk.f32.vlgmr.msrb.gmra.mxu1 %vm214_vm0, %v3317_v16  ;;  %3057 = vmatmul.msk.f32.vlgmr.msrb.gmra.mxu3 %vm214_vm0, %v3317_v16  ;;  %v794_v16 = vld [vmem:[#allocation8 + $0x780] sm:$0xff] }
  0x45   :  { %1588 = vmatpush.msra.mxu0 %v614_v1  ;;  %1608 = vmatpush.msra.mxu1 %v678_v2  ;;  %v790_v20 = vld [vmem:[#allocation8 + $0x760] sm:$0xff] }
  0x46   :  { %1628 = vmatpush.msra.mxu2 %v742_v3  ;;  %1648 = vmatpush.msra.mxu3 %v806_v4  ;;  %v594_v21 = vld [vmem:[#allocation8 + $0x140] sm:$0xff] }
  0x47   :  { %1589 = vmatpush.msra.mxu0 %v610_v5  ;;  %1609 = vmatpush.msra.mxu1 %v674_v6  ;;  %v658_v22 = vld [vmem:[#allocation8 + $0x340] sm:$0xff] }
  0x48   :  { %1629 = vmatpush.msra.mxu2 %v738_v7  ;;  %1649 = vmatpush.msra.mxu3 %v802_v8  ;;  %v722_v23 = vld [vmem:[#allocation8 + $0x540] sm:$0xff] }
  0x49   :  { %1590 = vmatpush.msra.mxu0 %v606_v9  ;;  %1610 = vmatpush.msra.mxu1 %v670_v10  ;;  %v786_v24 = vld [vmem:[#allocation8 + $0x740] sm:$0xff] }
  0x4a   :  { %1630 = vmatpush.msra.mxu2 %v734_v11  ;;  %1650 = vmatpush.msra.mxu3 %v798_v12  ;;  %v590_v25 = vld [vmem:[#allocation8 + $0x120] sm:$0xff] }
  0x4b   :  { %1591 = vmatpush.msra.mxu0 %v602_v13  ;;  %1611 = vmatpush.msra.mxu1 %v666_v14  ;;  %v654_v26 = vld [vmem:[#allocation8 + $0x320] sm:$0xff] }
  0x4c   :  { %1631 = vmatpush.msra.mxu2 %v730_v15  ;;  %1651 = vmatpush.msra.mxu3 %v794_v16  ;;  %v718_v27 = vld [vmem:[#allocation8 + $0x520] sm:$0xff] }
  0x4d   :  { %1592 = vmatpush.msra.mxu0 %v598_v17  ;;  %1612 = vmatpush.msra.mxu1 %v662_v18  ;;  %v782_v28 = vld [vmem:[#allocation8 + $0x720] sm:$0xff] }
  0x4e   :  { %1632 = vmatpush.msra.mxu2 %v726_v19  ;;  %1652 = vmatpush.msra.mxu3 %v790_v20  ;;  %v586_v29 = vld [vmem:[#allocation8 + $0x100] sm:$0xff] }
  0x4f   :  { %1593 = vmatpush.msra.mxu0 %v594_v21  ;;  %1613 = vmatpush.msra.mxu1 %v658_v22  ;;  %v650_v30 = vld [vmem:[#allocation8 + $0x300] sm:$0xff] }
  0x50   :  { %1633 = vmatpush.msra.mxu2 %v722_v23  ;;  %1653 = vmatpush.msra.mxu3 %v786_v24  ;;  %v714_v31 = vld [vmem:[#allocation8 + $0x500] sm:$0xff] }
  0x51   :  { %1594 = vmatpush.msra.mxu0 %v590_v25  ;;  %1614 = vmatpush.msra.mxu1 %v654_v26  ;;  %v778_v32 = vld [vmem:[#allocation8 + $0x700] sm:$0xff] }
  0x52   :  { %v582_v33 = vld [vmem:[#allocation8 + $0xe0] sm:$0xff]  ;;  %1634 = vmatpush.msra.mxu2 %v718_v27  ;;  %1654 = vmatpush.msra.mxu3 %v782_v28 }
  0x53   :  { %v646_v34 = vld [vmem:[#allocation8 + $0x2e0] sm:$0xff]  ;;  %1595 = vmatpush.msra.mxu0 %v586_v29  ;;  %1615 = vmatpush.msra.mxu1 %v650_v30 }
  0x54   :  { %v710_v35 = vld [vmem:[#allocation8 + $0x4e0] sm:$0xff]  ;;  %1635 = vmatpush.msra.mxu2 %v714_v31  ;;  %1655 = vmatpush.msra.mxu3 %v778_v32 }
  0x55   :  { %v774_v36 = vld [vmem:[#allocation8 + $0x6e0] sm:$0xff]  ;;  %1596 = vmatpush.msra.mxu0 %v582_v33  ;;  %1616 = vmatpush.msra.mxu1 %v646_v34 }
  0x56   :  { %v578_v37 = vld [vmem:[#allocation8 + $0xc0] sm:$0xff]  ;;  %1636 = vmatpush.msra.mxu2 %v710_v35  ;;  %1656 = vmatpush.msra.mxu3 %v774_v36 }
  0x57   :  { %v642_v38 = vld [vmem:[#allocation8 + $0x2c0] sm:$0xff]  ;;  %1597 = vmatpush.msra.mxu0 %v578_v37 }
  0x58   :  { %v706_v39 = vld [vmem:[#allocation8 + $0x4c0] sm:$0xff]  ;;  %1617 = vmatpush.msra.mxu1 %v642_v38 }
  0x59   :  { %v770_v40 = vld [vmem:[#allocation8 + $0x6c0] sm:$0xff]  ;;  %1637 = vmatpush.msra.mxu2 %v706_v39 }
  0x5a   :  { %v574_v41 = vld [vmem:[#allocation8 + $0xa0] sm:$0xff]  ;;  %1657 = vmatpush.msra.mxu3 %v770_v40 }
  0x5b   :  { %v638_v42 = vld [vmem:[#allocation8 + $0x2a0] sm:$0xff]  ;;  %1598 = vmatpush.msra.mxu0 %v574_v41 }
  0x5c   :  { %v702_v43 = vld [vmem:[#allocation8 + $0x4a0] sm:$0xff]  ;;  %1618 = vmatpush.msra.mxu1 %v638_v42 }
  0x5d   :  { %v766_v44 = vld [vmem:[#allocation8 + $0x6a0] sm:$0xff]  ;;  %1638 = vmatpush.msra.mxu2 %v702_v43 }
  0x5e   :  { %v570_v45 = vld [vmem:[#allocation8 + $0x80] sm:$0xff]  ;;  %1658 = vmatpush.msra.mxu3 %v766_v44 }
  0x5f   :  { %v634_v46 = vld [vmem:[#allocation8 + $0x280] sm:$0xff]  ;;  %1599 = vmatpush.msra.mxu0 %v570_v45 }
  0x60   :  { %v698_v47 = vld [vmem:[#allocation8 + $0x480] sm:$0xff]  ;;  %1619 = vmatpush.msra.mxu1 %v634_v46 }
  0x61   :  { %v762_v48 = vld [vmem:[#allocation8 + $0x680] sm:$0xff]  ;;  %1639 = vmatpush.msra.mxu2 %v698_v47 }
  0x62   :  { %v566_v49 = vld [vmem:[#allocation8 + $0x60] sm:$0xff]  ;;  %1659 = vmatpush.msra.mxu3 %v762_v48 }
  0x63   :  { %v630_v50 = vld [vmem:[#allocation8 + $0x260] sm:$0xff]  ;;  %1600 = vmatpush.msra.mxu0 %v566_v49 }
  0x64   :  { %v694_v51 = vld [vmem:[#allocation8 + $0x460] sm:$0xff]  ;;  %1620 = vmatpush.msra.mxu1 %v630_v50 }
  0x65   :  { %v758_v52 = vld [vmem:[#allocation8 + $0x660] sm:$0xff]  ;;  %1640 = vmatpush.msra.mxu2 %v694_v51 }
  0x66   :  { %v562_v53 = vld [vmem:[#allocation8 + $0x40] sm:$0xff]  ;;  %1660 = vmatpush.msra.mxu3 %v758_v52 }
  0x67   :  { %v626_v54 = vld [vmem:[#allocation8 + $0x240] sm:$0xff]  ;;  %1601 = vmatpush.msra.mxu0 %v562_v53 }
  0x68   :  { %v690_v55 = vld [vmem:[#allocation8 + $0x440] sm:$0xff]  ;;  %1621 = vmatpush.msra.mxu1 %v626_v54 }
  0x69   :  { %v754_v56 = vld [vmem:[#allocation8 + $0x640] sm:$0xff]  ;;  %1641 = vmatpush.msra.mxu2 %v690_v55 }
  0x6a   :  { %v558_v57 = vld [vmem:[#allocation8 + $0x20] sm:$0xff]  ;;  %1661 = vmatpush.msra.mxu3 %v754_v56 }
  0x6b   :  { %v622_v58 = vld [vmem:[#allocation8 + $0x220] sm:$0xff]  ;;  %1602 = vmatpush.msra.mxu0 %v558_v57 }
  0x6c   :  { %v686_v59 = vld [vmem:[#allocation8 + $0x420] sm:$0xff]  ;;  %1622 = vmatpush.msra.mxu1 %v622_v58 }
  0x6d   :  { %v750_v60 = vld [vmem:[#allocation8 + $0x620] sm:$0xff]  ;;  %1642 = vmatpush.msra.mxu2 %v686_v59 }
  0x6e   :  { %v554_v61 = vld [vmem:[#allocation8] sm:$0xff]  ;;  %1662 = vmatpush.msra.mxu3 %v750_v60 }
  0x6f   :  { %v618_v62 = vld [vmem:[#allocation8 + $0x200] sm:$0xff]  ;;  %1603 = vmatpush.msra.mxu0 %v554_v61 }
  0x70   :  { %v870_v63 = vld [vmem:[#allocation8 + $0x9e0] sm:$0xff]  ;;  %1623 = vmatpush.msra.mxu1 %v618_v62 }
  0x71   :  { %v934_v0 = vld [vmem:[#allocation8 + $0xbe0] sm:$0xff]  ;;  %1668 = vmatpush.msrb.mxu0 %v870_v63 }
  0x72   :  { %v682_v1 = vld [vmem:[#allocation8 + $0x400] sm:$0xff]  ;;  %1688 = vmatpush.msrb.mxu1 %v934_v0 }
  0x73   :  { %v746_v2 = vld [vmem:[#allocation8 + $0x600] sm:$0xff]  ;;  %1643 = vmatpush.msra.mxu2 %v682_v1  ;;  %v3351_v1 = vld [vmem:[#allocation7] sm:$0xff] }
  0x74   :  { %v866_v3 = vld [vmem:[#allocation8 + $0x9c0] sm:$0xff]  ;;  %1663 = vmatpush.msra.mxu3 %v746_v2  ;;  %v182_v2 = vperm.slane %v3351_v1, 0 }
  0x75   :  { %v930_v4 = vld [vmem:[#allocation8 + $0xbc0] sm:$0xff]  ;;  %1669 = vmatpush.msrb.mxu0 %v866_v3  ;;  %v183_v3 = vperm.slane %v3351_v1, 1 }
  0x76   :  { %v998_v5 = vld [vmem:[#allocation8 + $0xde0] sm:$0xff]  ;;  %1689 = vmatpush.msrb.mxu1 %v930_v4 }
  0x77   :  { %v1062_v6 = vld [vmem:[#allocation8 + $0xfe0] sm:$0xff]  ;;  %1708 = vmatpush.msrb.mxu2 %v998_v5 }
  0x78   :  { %v862_v7 = vld [vmem:[#allocation8 + $0x9a0] sm:$0xff]  ;;  %1728 = vmatpush.msrb.mxu3 %v1062_v6 }
  0x79   :  { %v926_v8 = vld [vmem:[#allocation8 + $0xba0] sm:$0xff]  ;;  %1670 = vmatpush.msrb.mxu0 %v862_v7 }
  0x7a   :  { %v994_v9 = vld [vmem:[#allocation8 + $0xdc0] sm:$0xff]  ;;  %1690 = vmatpush.msrb.mxu1 %v926_v8 }
  0x7b   :  { %v1058_v10 = vld [vmem:[#allocation8 + $0xfc0] sm:$0xff]  ;;  %1709 = vmatpush.msrb.mxu2 %v994_v9 }
  0x7c   :  { %v858_v11 = vld [vmem:[#allocation8 + $0x980] sm:$0xff]  ;;  %1729 = vmatpush.msrb.mxu3 %v1058_v10 }
  0x7d   :  { %v922_v12 = vld [vmem:[#allocation8 + $0xb80] sm:$0xff]  ;;  %1671 = vmatpush.msrb.mxu0 %v858_v11 }
  0x7e   :  { %v990_v13 = vld [vmem:[#allocation8 + $0xda0] sm:$0xff]  ;;  %1691 = vmatpush.msrb.mxu1 %v922_v12  ;;  %v184_v12 = vperm.slane %v3351_v1, 2 }
  0x7f   :  { %v1054_v14 = vld [vmem:[#allocation8 + $0xfa0] sm:$0xff]  ;;  %1710 = vmatpush.msrb.mxu2 %v990_v13  ;;  %v185_v13 = vperm.slane %v3351_v1, 3 }
  0x80   :  { %v854_v15 = vld [vmem:[#allocation8 + $0x960] sm:$0xff]  ;;  %1730 = vmatpush.msrb.mxu3 %v1054_v14 }
  0x81   :  { %v918_v16 = vld [vmem:[#allocation8 + $0xb60] sm:$0xff]  ;;  %1672 = vmatpush.msrb.mxu0 %v854_v15 }
  0x82   :  { %v986_v17 = vld [vmem:[#allocation8 + $0xd80] sm:$0xff]  ;;  %1692 = vmatpush.msrb.mxu1 %v918_v16 }
  0x83   :  { %v1050_v18 = vld [vmem:[#allocation8 + $0xf80] sm:$0xff]  ;;  %1711 = vmatpush.msrb.mxu2 %v986_v17 }
  0x84   :  { %v850_v19 = vld [vmem:[#allocation8 + $0x940] sm:$0xff]  ;;  %1731 = vmatpush.msrb.mxu3 %v1050_v18 }
  0x85   :  { %v914_v20 = vld [vmem:[#allocation8 + $0xb40] sm:$0xff]  ;;  %1673 = vmatpush.msrb.mxu0 %v850_v19 }
  0x86   :  { %v982_v21 = vld [vmem:[#allocation8 + $0xd60] sm:$0xff]  ;;  %1693 = vmatpush.msrb.mxu1 %v914_v20 }
  0x87   :  { %v1046_v22 = vld [vmem:[#allocation8 + $0xf60] sm:$0xff]  ;;  %1712 = vmatpush.msrb.mxu2 %v982_v21 }
  0x88   :  { %v846_v23 = vld [vmem:[#allocation8 + $0x920] sm:$0xff]  ;;  %1732 = vmatpush.msrb.mxu3 %v1046_v22 }
  0x89   :  { %v910_v24 = vld [vmem:[#allocation8 + $0xb20] sm:$0xff]  ;;  %1674 = vmatpush.msrb.mxu0 %v846_v23 }
  0x8a   :  { %v978_v25 = vld [vmem:[#allocation8 + $0xd40] sm:$0xff]  ;;  %1694 = vmatpush.msrb.mxu1 %v910_v24 }
  0x8b   :  { %v1042_v26 = vld [vmem:[#allocation8 + $0xf40] sm:$0xff]  ;;  %1713 = vmatpush.msrb.mxu2 %v978_v25 }
  0x8c   :  { %v842_v27 = vld [vmem:[#allocation8 + $0x900] sm:$0xff]  ;;  %1733 = vmatpush.msrb.mxu3 %v1042_v26 }
  0x8d   :  { %v906_v28 = vld [vmem:[#allocation8 + $0xb00] sm:$0xff]  ;;  %1675 = vmatpush.msrb.mxu0 %v842_v27 }
  0x8e   :  { %v974_v29 = vld [vmem:[#allocation8 + $0xd20] sm:$0xff]  ;;  %1695 = vmatpush.msrb.mxu1 %v906_v28  ;;  %v186_v28 = vperm.slane %v3351_v1, 4 }
  0x8f   :  { %v1038_v30 = vld [vmem:[#allocation8 + $0xf20] sm:$0xff]  ;;  %1714 = vmatpush.msrb.mxu2 %v974_v29 }
  0x90   :  { %v838_v31 = vld [vmem:[#allocation8 + $0x8e0] sm:$0xff]  ;;  %1734 = vmatpush.msrb.mxu3 %v1038_v30 }
  0x91   :  { %v902_v32 = vld [vmem:[#allocation8 + $0xae0] sm:$0xff]  ;;  %1676 = vmatpush.msrb.mxu0 %v838_v31  ;;  %v188_v31 = vperm.slane %v3351_v1, 6 }
  0x92   :  { %v970_v33 = vld [vmem:[#allocation8 + $0xd00] sm:$0xff]  ;;  %1696 = vmatpush.msrb.mxu1 %v902_v32 }
  0x93   :  { %v1034_v34 = vld [vmem:[#allocation8 + $0xf00] sm:$0xff]  ;;  %1715 = vmatpush.msrb.mxu2 %v970_v33  ;;  %v189_v33 = vperm.slane %v3351_v1, 7 }
  0x94   :  { %v834_v35 = vld [vmem:[#allocation8 + $0x8c0] sm:$0xff]  ;;  %1735 = vmatpush.msrb.mxu3 %v1034_v34 }
  0x95   :  { %v898_v36 = vld [vmem:[#allocation8 + $0xac0] sm:$0xff]  ;;  %1677 = vmatpush.msrb.mxu0 %v834_v35 }
  0x96   :  { %v966_v37 = vld [vmem:[#allocation8 + $0xce0] sm:$0xff]  ;;  %1697 = vmatpush.msrb.mxu1 %v898_v36 }
  0x97   :  { %v1030_v38 = vld [vmem:[#allocation8 + $0xee0] sm:$0xff]  ;;  %1716 = vmatpush.msrb.mxu2 %v966_v37 }
  0x98   :  { %v830_v39 = vld [vmem:[#allocation8 + $0x8a0] sm:$0xff]  ;;  %1736 = vmatpush.msrb.mxu3 %v1030_v38  ;;  %v187_v38 = vperm.slane %v3351_v1, 5 }
  0x99   :  { %v894_v40 = vld [vmem:[#allocation8 + $0xaa0] sm:$0xff]  ;;  %1678 = vmatpush.msrb.mxu0 %v830_v39 }
  0x9a   :  { %v962_v41 = vld [vmem:[#allocation8 + $0xcc0] sm:$0xff]  ;;  %1698 = vmatpush.msrb.mxu1 %v894_v40 }
  0x9b   :  { %v1026_v42 = vld [vmem:[#allocation8 + $0xec0] sm:$0xff]  ;;  %1717 = vmatpush.msrb.mxu2 %v962_v41 }
  0x9c   :  { %v826_v43 = vld [vmem:[#allocation8 + $0x880] sm:$0xff]  ;;  %1737 = vmatpush.msrb.mxu3 %v1026_v42 }
  0x9d   :  { %v890_v44 = vld [vmem:[#allocation8 + $0xa80] sm:$0xff]  ;;  %1679 = vmatpush.msrb.mxu0 %v826_v43 }
  0x9e   :  { %v822_v45 = vld [vmem:[#allocation8 + $0x860] sm:$0xff]  ;;  %1699 = vmatpush.msrb.mxu1 %v890_v44 }
  0x9f   :  { %v886_v46 = vld [vmem:[#allocation8 + $0xa60] sm:$0xff]  ;;  %1680 = vmatpush.msrb.mxu0 %v822_v45 }
  0xa0   :  { %1700 = vmatpush.msrb.mxu1 %v886_v46  ;;  %v818_v47 = vld [vmem:[#allocation8 + $0x840] sm:$0xff] }
  0xa1   :  { %v882_v48 = vld [vmem:[#allocation8 + $0xa40] sm:$0xff]  ;;  %1681 = vmatpush.msrb.mxu0 %v818_v47 }
  0xa2   :  { %v958_v49 = vld [vmem:[#allocation8 + $0xca0] sm:$0xff]  ;;  %1701 = vmatpush.msrb.mxu1 %v882_v48  ;;  %v235_v4 = vpop.f32.mrf.mxu0  ;;  %v255_v5 = vpop.f32.mrf.mxu1 }
  0xa3   :  { %v1022_v50 = vld [vmem:[#allocation8 + $0xea0] sm:$0xff]  ;;  %1718 = vmatpush.msrb.mxu2 %v958_v49  ;;  %v236_v6 = vadd.f32 %v235_v4, %v182_v2  ;;  %v256_v7 = vadd.f32 %v255_v5, %v183_v3 }
  0xa4   :  { %1738 = vmatpush.msrb.mxu3 %v1022_v50  ;;  %v814_v51 = vld [vmem:[#allocation8 + $0x820] sm:$0xff] }
  0xa5   :  { %v878_v52 = vld [vmem:[#allocation8 + $0xa20] sm:$0xff]  ;;  %1682 = vmatpush.msrb.mxu0 %v814_v51  ;;  %v3355_v8 = vmax.f32 %v236_v6, 0.0  ;;  %v3357_v9 = vmax.f32 %v256_v7, 0.0  ;;  %v3385_v6 = vld [vmem:[#allocation7 + $0x8] sm:$0xff] }
  0xa6   :  { %v954_v53 = vld [vmem:[#allocation8 + $0xc80] sm:$0xff]  ;;  %1702 = vmatpush.msrb.mxu1 %v878_v52 }
  0xa7   :  { %v1018_v54 = vld [vmem:[#allocation8 + $0xe80] sm:$0xff]  ;;  %1719 = vmatpush.msrb.mxu2 %v954_v53  ;;  %1604 = vmatmul.f32.vlgmr.msra.gmra.mxu0 %v3355_v8 }
  0xa8   :  { %v810_v55 = vld [vmem:[#allocation8 + $0x800] sm:$0xff]  ;;  %1739 = vmatpush.msrb.mxu3 %v1018_v54  ;;  %1624 = vmatmul.f32.vlgmr.msra.gmra.mxu1 %v3357_v9 }
  0xa9   :  { %v874_v56 = vld [vmem:[#allocation8 + $0xa00] sm:$0xff]  ;;  %1683 = vmatpush.msrb.mxu0 %v810_v55  ;;  %v275_v16 = vpop.f32.mrf.mxu2  ;;  %v295_v17 = vpop.f32.mrf.mxu3 }
  0xaa   :  { %v950_v57 = vld [vmem:[#allocation8 + $0xc60] sm:$0xff]  ;;  %1703 = vmatpush.msrb.mxu1 %v874_v56  ;;  %v276_v20 = vadd.f32 %v275_v16, %v184_v12  ;;  %v296_v21 = vadd.f32 %v295_v17, %v185_v13 }
  0xab   :  { %v1014_v58 = vld [vmem:[#allocation8 + $0xe60] sm:$0xff]  ;;  %1720 = vmatpush.msrb.mxu2 %v950_v57 }
  0xac   :  { %1740 = vmatpush.msrb.mxu3 %v1014_v58  ;;  %v946_v59 = vld [vmem:[#allocation8 + $0xc40] sm:$0xff]  ;;  %v3363_v22 = vmax.f32 %v276_v20, 0.0  ;;  %v3365_v23 = vmax.f32 %v296_v21, 0.0  ;;  %v191_v21 = vperm.slane %v3385_v6, 1 }
  0xad   :  { %v1010_v60 = vld [vmem:[#allocation8 + $0xe40] sm:$0xff]  ;;  %1721 = vmatpush.msrb.mxu2 %v946_v59  ;;  %v315_v32 = vpop.f32.mrf.mxu0  ;;  %v335_v39 = vpop.f32.mrf.mxu1 }
  0xae   :  { %1741 = vmatpush.msrb.mxu3 %v1010_v60  ;;  %v942_v61 = vld [vmem:[#allocation8 + $0xc20] sm:$0xff]  ;;  %1644 = vmatmul.f32.vlgmr.msra.gmra.mxu2 %v3363_v22  ;;  %v316_v43 = vadd.f32 %v315_v32, %v186_v28  ;;  %v336_v52 = vadd.f32 %v335_v39, %v187_v38 }
  0xaf   :  { %v1006_v62 = vld [vmem:[#allocation8 + $0xe20] sm:$0xff]  ;;  %1722 = vmatpush.msrb.mxu2 %v942_v61  ;;  %1664 = vmatmul.f32.vlgmr.msra.gmra.mxu3 %v3365_v23 }
  0xb0   :  { %1742 = vmatpush.msrb.mxu3 %v1006_v62  ;;  %v938_v63 = vld [vmem:[#allocation8 + $0xc00] sm:$0xff]  ;;  %v3375_v54 = vmax.f32 %v316_v43, 0.0  ;;  %v3380_v60 = vmax.f32 %v336_v52, 0.0 }
  0xb1   :  { %v1002_v0 = vld [vmem:[#allocation8 + $0xe00] sm:$0xff]  ;;  %1723 = vmatpush.msrb.mxu2 %v938_v63  ;;  %v355_v40 = vpop.f32.mrf.mxu2  ;;  %v375_v44 = vpop.f32.mrf.mxu3 }
  0xb2   :  { %1743 = vmatpush.msrb.mxu3 %v1002_v0  ;;  %v1126_v10 = vld [vmem:[#allocation8 + $0x11e0] sm:$0xff]  ;;  %v356_v45 = vadd.f32 %v355_v40, %v188_v31  ;;  %v376_v46 = vadd.f32 %v375_v44, %v189_v33  ;;  %1684 = vmatmul.f32.vlgmr.msrb.gmra.mxu0 %v3375_v54 }
  0xb3   :  { %v1190_v11 = vld [vmem:[#allocation8 + $0x13e0] sm:$0xff]  ;;  %1748 = vmatpush.msra.mxu0 %v1126_v10  ;;  %1704 = vmatmul.f32.vlgmr.msrb.gmra.mxu1 %v3380_v60 }
  0xb4   :  { %v1122_v14 = vld [vmem:[#allocation8 + $0x11c0] sm:$0xff]  ;;  %1768 = vmatpush.msra.mxu1 %v1190_v11  ;;  %v3373_v51 = vmax.f32 %v356_v45, 0.0  ;;  %v3377_v57 = vmax.f32 %v376_v46, 0.0  ;;  %v193_v46 = vperm.slane %v3385_v6, 3 }
  0xb5   :  { %v1186_v15 = vld [vmem:[#allocation8 + $0x13c0] sm:$0xff]  ;;  %1749 = vmatpush.msra.mxu0 %v1122_v14 }
  0xb6   :  { %v1118_v18 = vld [vmem:[#allocation8 + $0x11a0] sm:$0xff]  ;;  %1769 = vmatpush.msra.mxu1 %v1186_v15  ;;  %1724 = vmatmul.f32.vlgmr.msrb.gmra.mxu2 %v3373_v51  ;;  %v190_v15 = vperm.slane %v3385_v6, 0 }
  0xb7   :  { %v1182_v19 = vld [vmem:[#allocation8 + $0x13a0] sm:$0xff]  ;;  %1750 = vmatpush.msra.mxu0 %v1118_v18  ;;  %1744 = vmatmul.f32.vlgmr.msrb.gmra.mxu3 %v3377_v57  ;;  %v395_v18 = vpop.f32.mrf.mxu0 }
  0xb8   :  { %1770 = vmatpush.msra.mxu1 %v1182_v19  ;;  %v1114_v24 = vld [vmem:[#allocation8 + $0x1180] sm:$0xff] }
  0xb9   :  { %v1178_v25 = vld [vmem:[#allocation8 + $0x1380] sm:$0xff]  ;;  %1751 = vmatpush.msra.mxu0 %v1114_v24 }
  0xba   :  { %v1254_v26 = vld [vmem:[#allocation8 + $0x15e0] sm:$0xff]  ;;  %1771 = vmatpush.msra.mxu1 %v1178_v25 }
  0xbb   :  { %v1318_v27 = vld [vmem:[#allocation8 + $0x17e0] sm:$0xff]  ;;  %1788 = vmatpush.msra.mxu2 %v1254_v26  ;;  %v415_v26 = vpop.f32.mrf.mxu1 }
  0xbc   :  { %v1110_v29 = vld [vmem:[#allocation8 + $0x1160] sm:$0xff]  ;;  %1808 = vmatpush.msra.mxu3 %v1318_v27  ;;  %v396_v27 = vadd.f32 %v395_v18, %v190_v15  ;;  %v416_v32 = vadd.f32 %v415_v26, %v191_v21 }
  0xbd   :  { %v1174_v30 = vld [vmem:[#allocation8 + $0x1360] sm:$0xff]  ;;  %1752 = vmatpush.msra.mxu0 %v1110_v29 }
  0xbe   :  { %v1250_v34 = vld [vmem:[#allocation8 + $0x15c0] sm:$0xff]  ;;  %1772 = vmatpush.msra.mxu1 %v1174_v30  ;;  %v3390_v38 = vmax.f32 %v396_v27, 0.0  ;;  %v3392_v43 = vmax.f32 %v416_v32, 0.0 }
  0xbf   :  { %v1314_v35 = vld [vmem:[#allocation8 + $0x17c0] sm:$0xff]  ;;  %1789 = vmatpush.msra.mxu2 %v1250_v34 }
  0xc0   :  { %v1106_v36 = vld [vmem:[#allocation8 + $0x1140] sm:$0xff]  ;;  %1809 = vmatpush.msra.mxu3 %v1314_v35 }
  0xc1   :  { %v1170_v37 = vld [vmem:[#allocation8 + $0x1340] sm:$0xff]  ;;  %1753 = vmatpush.msra.mxu0 %v1106_v36 }
  0xc2   :  { %v1246_v41 = vld [vmem:[#allocation8 + $0x15a0] sm:$0xff]  ;;  %1773 = vmatpush.msra.mxu1 %v1170_v37  ;;  %v192_v37 = vperm.slane %v3385_v6, 2 }
  0xc3   :  { %v1310_v42 = vld [vmem:[#allocation8 + $0x17a0] sm:$0xff]  ;;  %1790 = vmatpush.msra.mxu2 %v1246_v41  ;;  %v435_v41 = vpop.f32.mrf.mxu2 }
  0xc4   :  { %v1102_v47 = vld [vmem:[#allocation8 + $0x1120] sm:$0xff]  ;;  %1810 = vmatpush.msra.mxu3 %v1310_v42 }
  0xc5   :  { %v1166_v48 = vld [vmem:[#allocation8 + $0x1320] sm:$0xff]  ;;  %1754 = vmatpush.msra.mxu0 %v1102_v47  ;;  %v436_v47 = vadd.f32 %v435_v41, %v192_v37 }
  0xc6   :  { %v1242_v49 = vld [vmem:[#allocation8 + $0x1580] sm:$0xff]  ;;  %1774 = vmatpush.msra.mxu1 %v1166_v48 }
  0xc7   :  { %v1306_v50 = vld [vmem:[#allocation8 + $0x1780] sm:$0xff]  ;;  %1791 = vmatpush.msra.mxu2 %v1242_v49  ;;  %v455_v49 = vpop.f32.mrf.mxu3 }
  0xc8   :  { %v1098_v53 = vld [vmem:[#allocation8 + $0x1100] sm:$0xff]  ;;  %1811 = vmatpush.msra.mxu3 %v1306_v50 }
  0xc9   :  { %v1162_v55 = vld [vmem:[#allocation8 + $0x1300] sm:$0xff]  ;;  %1755 = vmatpush.msra.mxu0 %v1098_v53 }
  0xca   :  { %v1238_v56 = vld [vmem:[#allocation8 + $0x1560] sm:$0xff]  ;;  %1775 = vmatpush.msra.mxu1 %v1162_v55 }
  0xcb   :  { %v1302_v58 = vld [vmem:[#allocation8 + $0x1760] sm:$0xff]  ;;  %1792 = vmatpush.msra.mxu2 %v1238_v56  ;;  %v456_v56 = vadd.f32 %v455_v49, %v193_v46 }
  0xcc   :  { %v1094_v59 = vld [vmem:[#allocation8 + $0x10e0] sm:$0xff]  ;;  %1812 = vmatpush.msra.mxu3 %v1302_v58 }
  0xcd   :  { %v1158_v61 = vld [vmem:[#allocation8 + $0x12e0] sm:$0xff]  ;;  %1756 = vmatpush.msra.mxu0 %v1094_v59 }
  0xce   :  { %v1234_v62 = vld [vmem:[#allocation8 + $0x1540] sm:$0xff]  ;;  %1776 = vmatpush.msra.mxu1 %v1158_v61  ;;  %v3397_v61 = vmax.f32 %v436_v47, 0.0  ;;  %v475_v47 = vpop.f32.mrf.mxu0 }
  0xcf   :  { %v1298_v63 = vld [vmem:[#allocation8 + $0x1740] sm:$0xff]  ;;  %1793 = vmatpush.msra.mxu2 %v1234_v62 }
  0xd0   :  { %v1090_v0 = vld [vmem:[#allocation8 + $0x10c0] sm:$0xff]  ;;  %1813 = vmatpush.msra.mxu3 %v1298_v63 }
  0xd1   :  { %v1154_v1 = vld [vmem:[#allocation8 + $0x12c0] sm:$0xff]  ;;  %1757 = vmatpush.msra.mxu0 %v1090_v0 }
  0xd2   :  { %v1230_v2 = vld [vmem:[#allocation8 + $0x1520] sm:$0xff]  ;;  %1777 = vmatpush.msra.mxu1 %v1154_v1 }
  0xd3   :  { %v1294_v3 = vld [vmem:[#allocation8 + $0x1720] sm:$0xff]  ;;  %1794 = vmatpush.msra.mxu2 %v1230_v2 }
  0xd4   :  { %v1086_v4 = vld [vmem:[#allocation8 + $0x10a0] sm:$0xff]  ;;  %1814 = vmatpush.msra.mxu3 %v1294_v3  ;;  %v3399_v3 = vmax.f32 %v456_v56, 0.0 }
  0xd5   :  { %v1150_v5 = vld [vmem:[#allocation8 + $0x12a0] sm:$0xff]  ;;  %1758 = vmatpush.msra.mxu0 %v1086_v4 }
  0xd6   :  { %v1226_v7 = vld [vmem:[#allocation8 + $0x1500] sm:$0xff]  ;;  %1778 = vmatpush.msra.mxu1 %v1150_v5 }
  0xd7   :  { %v1290_v10 = vld [vmem:[#allocation8 + $0x1700] sm:$0xff]  ;;  %1795 = vmatpush.msra.mxu2 %v1226_v7 }
  0xd8   :  { %v1082_v11 = vld [vmem:[#allocation8 + $0x1080] sm:$0xff]  ;;  %1815 = vmatpush.msra.mxu3 %v1290_v10 }
  0xd9   :  { %v1146_v12 = vld [vmem:[#allocation8 + $0x1280] sm:$0xff]  ;;  %1759 = vmatpush.msra.mxu0 %v1082_v11 }
  0xda   :  { %v1222_v13 = vld [vmem:[#allocation8 + $0x14e0] sm:$0xff]  ;;  %1779 = vmatpush.msra.mxu1 %v1146_v12 }
  0xdb   :  { %v1286_v14 = vld [vmem:[#allocation8 + $0x16e0] sm:$0xff]  ;;  %1796 = vmatpush.msra.mxu2 %v1222_v13 }
  0xdc   :  { %v1078_v16 = vld [vmem:[#allocation8 + $0x1060] sm:$0xff]  ;;  %1816 = vmatpush.msra.mxu3 %v1286_v14 }
  0xdd   :  { %v1142_v17 = vld [vmem:[#allocation8 + $0x1260] sm:$0xff]  ;;  %1760 = vmatpush.msra.mxu0 %v1078_v16 }
  0xde   :  { %v1218_v19 = vld [vmem:[#allocation8 + $0x14c0] sm:$0xff]  ;;  %1780 = vmatpush.msra.mxu1 %v1142_v17 }
  0xdf   :  { %v1282_v20 = vld [vmem:[#allocation8 + $0x16c0] sm:$0xff]  ;;  %1797 = vmatpush.msra.mxu2 %v1218_v19 }
  0xe0   :  { %v1074_v24 = vld [vmem:[#allocation8 + $0x1040] sm:$0xff]  ;;  %1817 = vmatpush.msra.mxu3 %v1282_v20 }
  0xe1   :  { %v1138_v25 = vld [vmem:[#allocation8 + $0x1240] sm:$0xff]  ;;  %1761 = vmatpush.msra.mxu0 %v1074_v24 }
  0xe2   :  { %v1214_v28 = vld [vmem:[#allocation8 + $0x14a0] sm:$0xff]  ;;  %1781 = vmatpush.msra.mxu1 %v1138_v25 }
  0xe3   :  { %v1278_v29 = vld [vmem:[#allocation8 + $0x16a0] sm:$0xff]  ;;  %1798 = vmatpush.msra.mxu2 %v1214_v28 }
  0xe4   :  { %v1070_v30 = vld [vmem:[#allocation8 + $0x1020] sm:$0xff]  ;;  %1818 = vmatpush.msra.mxu3 %v1278_v29 }
  0xe5   :  { %v1134_v31 = vld [vmem:[#allocation8 + $0x1220] sm:$0xff]  ;;  %1762 = vmatpush.msra.mxu0 %v1070_v30 }
  0xe6   :  { %v1210_v33 = vld [vmem:[#allocation8 + $0x1480] sm:$0xff]  ;;  %1782 = vmatpush.msra.mxu1 %v1134_v31 }
  0xe7   :  { %v1274_v34 = vld [vmem:[#allocation8 + $0x1680] sm:$0xff]  ;;  %1799 = vmatpush.msra.mxu2 %v1210_v33 }
  0xe8   :  { %v1066_v35 = vld [vmem:[#allocation8 + $0x1000] sm:$0xff]  ;;  %1819 = vmatpush.msra.mxu3 %v1274_v34 }
  0xe9   :  { %v1130_v36 = vld [vmem:[#allocation8 + $0x1200] sm:$0xff]  ;;  %1763 = vmatpush.msra.mxu0 %v1066_v35 }
  0xea   :  { %v1206_v39 = vld [vmem:[#allocation8 + $0x1460] sm:$0xff]  ;;  %1783 = vmatpush.msra.mxu1 %v1130_v36  ;;  %1764 = vmatmul.f32.vlgmr.msra.gmra.mxu0 %v3390_v38 }
  0xeb   :  { %v1270_v40 = vld [vmem:[#allocation8 + $0x1660] sm:$0xff]  ;;  %1800 = vmatpush.msra.mxu2 %v1206_v39  ;;  %1784 = vmatmul.f32.vlgmr.msra.gmra.mxu1 %v3392_v43 }
  0xec   :  { %v1446_v42 = vld [vmem:[#allocation8 + $0x1be0] sm:$0xff]  ;;  %1820 = vmatpush.msra.mxu3 %v1270_v40 }
  0xed   :  { %v1382_v44 = vld [vmem:[#allocation8 + $0x19e0] sm:$0xff]  ;;  %1848 = vmatpush.msrb.mxu1 %v1446_v42 }
  0xee   :  { %v1202_v45 = vld [vmem:[#allocation8 + $0x1440] sm:$0xff]  ;;  %1828 = vmatpush.msrb.mxu0 %v1382_v44  ;;  %v194_v44 = vperm.slane %v3385_v6, 4 }
  0xef   :  { %v1266_v48 = vld [vmem:[#allocation8 + $0x1640] sm:$0xff]  ;;  %1801 = vmatpush.msra.mxu2 %v1202_v45 }
  0xf0   :  { %v1378_v50 = vld [vmem:[#allocation8 + $0x19c0] sm:$0xff]  ;;  %1821 = vmatpush.msra.mxu3 %v1266_v48  ;;  %v476_v56 = vadd.f32 %v475_v47, %v194_v44  ;;  %v595_v44 = vld [vmem:[#allocation8 + $0x148] sm:$0xff] }
  0xf1   :  { %v1442_v52 = vld [vmem:[#allocation8 + $0x1bc0] sm:$0xff]  ;;  %1829 = vmatpush.msrb.mxu0 %v1378_v50  ;;  %v195_v50 = vperm.slane %v3385_v6, 5  ;;  %v799_v47 = vld [vmem:[#allocation8 + $0x7a8] sm:$0xff] }
  0xf2   :  { %v1198_v53 = vld [vmem:[#allocation8 + $0x1420] sm:$0xff]  ;;  %1849 = vmatpush.msrb.mxu1 %v1442_v52 }
  0xf3   :  { %v1262_v55 = vld [vmem:[#allocation8 + $0x1620] sm:$0xff]  ;;  %1802 = vmatpush.msra.mxu2 %v1198_v53 }
  0xf4   :  { %v1374_v58 = vld [vmem:[#allocation8 + $0x19a0] sm:$0xff]  ;;  %1822 = vmatpush.msra.mxu3 %v1262_v55  ;;  %v495_v55 = vpop.f32.mrf.mxu1 }
  0xf5   :  { %v1438_v59 = vld [vmem:[#allocation8 + $0x1ba0] sm:$0xff]  ;;  %1830 = vmatpush.msrb.mxu0 %v1374_v58 }
  0xf6   :  { %v1194_v62 = vld [vmem:[#allocation8 + $0x1400] sm:$0xff]  ;;  %1850 = vmatpush.msrb.mxu1 %v1438_v59 }
  0xf7   :  { %v1258_v63 = vld [vmem:[#allocation8 + $0x1600] sm:$0xff]  ;;  %1803 = vmatpush.msra.mxu2 %v1194_v62 }
  0xf8   :  { %v1370_v0 = vld [vmem:[#allocation8 + $0x1980] sm:$0xff]  ;;  %1823 = vmatpush.msra.mxu3 %v1258_v63  ;;  %1804 = vmatmul.f32.vlgmr.msra.gmra.mxu2 %v3397_v61 }
  0xf9   :  { %v1434_v1 = vld [vmem:[#allocation8 + $0x1b80] sm:$0xff]  ;;  %1831 = vmatpush.msrb.mxu0 %v1370_v0  ;;  %1824 = vmatmul.f32.vlgmr.msra.gmra.mxu3 %v3399_v3  ;;  %v496_v0 = vadd.f32 %v495_v55, %v195_v50  ;;  %v731_v50 = vld [vmem:[#allocation8 + $0x588] sm:$0xff] }
  0xfa   :  { %v1510_v2 = vld [vmem:[#allocation8 + $0x1de0] sm:$0xff]  ;;  %1851 = vmatpush.msrb.mxu1 %v1434_v1  ;;  %v651_v55 = vld [vmem:[#allocation8 + $0x308] sm:$0xff] }
  0xfb   :  { %v1574_v4 = vld [vmem:[#allocation8 + $0x1fe0] sm:$0xff]  ;;  %1868 = vmatpush.msrb.mxu2 %v1510_v2 }
  0xfc   :  { %v1366_v5 = vld [vmem:[#allocation8 + $0x1960] sm:$0xff]  ;;  %1888 = vmatpush.msrb.mxu3 %v1574_v4 }
  0xfd   :  { %v1430_v7 = vld [vmem:[#allocation8 + $0x1b60] sm:$0xff]  ;;  %1832 = vmatpush.msrb.mxu0 %v1366_v5 }
  0xfe   :  { %v1506_v10 = vld [vmem:[#allocation8 + $0x1dc0] sm:$0xff]  ;;  %1852 = vmatpush.msrb.mxu1 %v1430_v7  ;;  %v196_v7 = vperm.slane %v3385_v6, 6 }
  0xff   :  { %v1570_v11 = vld [vmem:[#allocation8 + $0x1fc0] sm:$0xff]  ;;  %1869 = vmatpush.msrb.mxu2 %v1506_v10  ;;  %v3406_v10 = vmax.f32 %v476_v56, 0.0  ;;  %v727_v56 = vld [vmem:[#allocation8 + $0x568] sm:$0xff] }
 0x100   :  { %v1362_v12 = vld [vmem:[#allocation8 + $0x1940] sm:$0xff]  ;;  %1889 = vmatpush.msrb.mxu3 %v1570_v11 }
 0x101   :  { %v1426_v13 = vld [vmem:[#allocation8 + $0x1b40] sm:$0xff]  ;;  %1833 = vmatpush.msrb.mxu0 %v1362_v12 }
 0x102   :  { %v1502_v14 = vld [vmem:[#allocation8 + $0x1da0] sm:$0xff]  ;;  %1853 = vmatpush.msrb.mxu1 %v1426_v13  ;;  %v515_v13 = vpop.f32.mrf.mxu2 }
 0x103   :  { %v1566_v15 = vld [vmem:[#allocation8 + $0x1fa0] sm:$0xff]  ;;  %1870 = vmatpush.msrb.mxu2 %v1502_v14  ;;  %v679_v14 = vld [vmem:[#allocation8 + $0x3e8] sm:$0xff] }
 0x104   :  { %v1358_v16 = vld [vmem:[#allocation8 + $0x1920] sm:$0xff]  ;;  %1890 = vmatpush.msrb.mxu3 %v1566_v15  ;;  %v3408_v15 = vmax.f32 %v496_v0, 0.0  ;;  %v787_v0 = vld [vmem:[#allocation8 + $0x748] sm:$0xff] }
 0x105   :  { %v1422_v17 = vld [vmem:[#allocation8 + $0x1b20] sm:$0xff]  ;;  %1834 = vmatpush.msrb.mxu0 %v1358_v16  ;;  %v615_v16 = vld [vmem:[#allocation8 + $0x1e8] sm:$0xff] }
 0x106   :  { %v1498_v18 = vld [vmem:[#allocation8 + $0x1d80] sm:$0xff]  ;;  %1854 = vmatpush.msrb.mxu1 %v1422_v17 }
 0x107   :  { %v1562_v19 = vld [vmem:[#allocation8 + $0x1f80] sm:$0xff]  ;;  %1871 = vmatpush.msrb.mxu2 %v1498_v18  ;;  %v197_v18 = vperm.slane %v3385_v6, 7  ;;  %v671_v6 = vld [vmem:[#allocation8 + $0x3a8] sm:$0xff] }
 0x108   :  { %v1354_v20 = vld [vmem:[#allocation8 + $0x1900] sm:$0xff]  ;;  %1891 = vmatpush.msrb.mxu3 %v1562_v19  ;;  %v516_v19 = vadd.f32 %v515_v13, %v196_v7  ;;  %v575_v7 = vld [vmem:[#allocation8 + $0xa8] sm:$0xff] }
 0x109   :  { %v1418_v21 = vld [vmem:[#allocation8 + $0x1b00] sm:$0xff]  ;;  %1835 = vmatpush.msrb.mxu0 %v1354_v20  ;;  %v779_v13 = vld [vmem:[#allocation8 + $0x708] sm:$0xff] }
 0x10a   :  { %v1494_v24 = vld [vmem:[#allocation8 + $0x1d60] sm:$0xff]  ;;  %1855 = vmatpush.msrb.mxu1 %v1418_v21  ;;  %v535_v21 = vpop.f32.mrf.mxu3 }
 0x10b   :  { %v1558_v25 = vld [vmem:[#allocation8 + $0x1f60] sm:$0xff]  ;;  %1872 = vmatpush.msrb.mxu2 %v1494_v24  ;;  %v611_v24 = vld [vmem:[#allocation8 + $0x1c8] sm:$0xff] }
 0x10c   :  { %v1350_v26 = vld [vmem:[#allocation8 + $0x18e0] sm:$0xff]  ;;  %1892 = vmatpush.msrb.mxu3 %v1558_v25  ;;  %v675_v25 = vld [vmem:[#allocation8 + $0x3c8] sm:$0xff] }
 0x10d   :  { %v1414_v27 = vld [vmem:[#allocation8 + $0x1ae0] sm:$0xff]  ;;  %1836 = vmatpush.msrb.mxu0 %v1350_v26 }
 0x10e   :  { %v1490_v28 = vld [vmem:[#allocation8 + $0x1d40] sm:$0xff]  ;;  %1856 = vmatpush.msrb.mxu1 %v1414_v27 }
 0x10f   :  { %v1554_v29 = vld [vmem:[#allocation8 + $0x1f40] sm:$0xff]  ;;  %1873 = vmatpush.msrb.mxu2 %v1490_v28  ;;  %v536_v28 = vadd.f32 %v535_v21, %v197_v18  ;;  %v775_v18 = vld [vmem:[#allocation8 + $0x6e8] sm:$0xff] }
 0x110   :  { %v1346_v30 = vld [vmem:[#allocation8 + $0x18c0] sm:$0xff]  ;;  %1893 = vmatpush.msrb.mxu3 %v1554_v29  ;;  %v607_v29 = vld [vmem:[#allocation8 + $0x1a8] sm:$0xff] }
 0x111   :  { %v1410_v31 = vld [vmem:[#allocation8 + $0x1ac0] sm:$0xff]  ;;  %1837 = vmatpush.msrb.mxu0 %v1346_v30  ;;  %v3413_v30 = vmax.f32 %v516_v19, 0.0  ;;  %v567_v19 = vld [vmem:[#allocation8 + $0x68] sm:$0xff] }
 0x112   :  { %v1486_v32 = vld [vmem:[#allocation8 + $0x1d20] sm:$0xff]  ;;  %1857 = vmatpush.msrb.mxu1 %v1410_v31  ;;  %v707_v21 = vld [vmem:[#allocation8 + $0x4c8] sm:$0xff] }
 0x113   :  { %v1550_v33 = vld [vmem:[#allocation8 + $0x1f20] sm:$0xff]  ;;  %1874 = vmatpush.msrb.mxu2 %v1486_v32 }
 0x114   :  { %v1342_v34 = vld [vmem:[#allocation8 + $0x18a0] sm:$0xff]  ;;  %1894 = vmatpush.msrb.mxu3 %v1550_v33  ;;  %v603_v33 = vld [vmem:[#allocation8 + $0x188] sm:$0xff] }
 0x115   :  { %v1406_v35 = vld [vmem:[#allocation8 + $0x1aa0] sm:$0xff]  ;;  %1838 = vmatpush.msrb.mxu0 %v1342_v34  ;;  %v667_v34 = vld [vmem:[#allocation8 + $0x388] sm:$0xff] }
 0x116   :  { %v1482_v36 = vld [vmem:[#allocation8 + $0x1d00] sm:$0xff]  ;;  %1858 = vmatpush.msrb.mxu1 %v1406_v35  ;;  %v743_v35 = vld [vmem:[#allocation8 + $0x5e8] sm:$0xff] }
 0x117   :  { %v1546_v37 = vld [vmem:[#allocation8 + $0x1f00] sm:$0xff]  ;;  %1875 = vmatpush.msrb.mxu2 %v1482_v36  ;;  %v3415_v36 = vmax.f32 %v536_v28, 0.0  ;;  %v767_v28 = vld [vmem:[#allocation8 + $0x6a8] sm:$0xff] }
 0x118   :  { %v1338_v39 = vld [vmem:[#allocation8 + $0x1880] sm:$0xff]  ;;  %1895 = vmatpush.msrb.mxu3 %v1546_v37  ;;  %v807_v37 = vld [vmem:[#allocation8 + $0x7e8] sm:$0xff] }
 0x119   :  { %v1402_v40 = vld [vmem:[#allocation8 + $0x1a80] sm:$0xff]  ;;  %1839 = vmatpush.msrb.mxu0 %v1338_v39  ;;  %v599_v39 = vld [vmem:[#allocation8 + $0x168] sm:$0xff] }
 0x11a   :  { %v1478_v41 = vld [vmem:[#allocation8 + $0x1ce0] sm:$0xff]  ;;  %1859 = vmatpush.msrb.mxu1 %v1402_v40  ;;  %v663_v40 = vld [vmem:[#allocation8 + $0x368] sm:$0xff] }
 0x11b   :  { %v1542_v42 = vld [vmem:[#allocation8 + $0x1ee0] sm:$0xff]  ;;  %1876 = vmatpush.msrb.mxu2 %v1478_v41  ;;  %v739_v41 = vld [vmem:[#allocation8 + $0x5c8] sm:$0xff] }
 0x11c   :  { %v1334_v45 = vld [vmem:[#allocation8 + $0x1860] sm:$0xff]  ;;  %1896 = vmatpush.msrb.mxu3 %v1542_v42  ;;  %v803_v42 = vld [vmem:[#allocation8 + $0x7c8] sm:$0xff] }
 0x11d   :  { %v1398_v46 = vld [vmem:[#allocation8 + $0x1a60] sm:$0xff]  ;;  %1840 = vmatpush.msrb.mxu0 %v1334_v45  ;;  %v659_v45 = vld [vmem:[#allocation8 + $0x348] sm:$0xff] }
 0x11e   :  { %v1474_v48 = vld [vmem:[#allocation8 + $0x1cc0] sm:$0xff]  ;;  %1860 = vmatpush.msrb.mxu1 %v1398_v46  ;;  %v735_v46 = vld [vmem:[#allocation8 + $0x5a8] sm:$0xff] }
 0x11f   :  { %v1538_v49 = vld [vmem:[#allocation8 + $0x1ec0] sm:$0xff]  ;;  %1877 = vmatpush.msrb.mxu2 %v1474_v48  ;;  %v591_v48 = vld [vmem:[#allocation8 + $0x128] sm:$0xff] }
 0x120   :  { %v1330_v52 = vld [vmem:[#allocation8 + $0x1840] sm:$0xff]  ;;  %1897 = vmatpush.msrb.mxu3 %v1538_v49  ;;  %v655_v49 = vld [vmem:[#allocation8 + $0x328] sm:$0xff] }
 0x121   :  { %v1394_v53 = vld [vmem:[#allocation8 + $0x1a40] sm:$0xff]  ;;  %1841 = vmatpush.msrb.mxu0 %v1330_v52  ;;  %v795_v52 = vld [vmem:[#allocation8 + $0x788] sm:$0xff] }
 0x122   :  { %v1470_v58 = vld [vmem:[#allocation8 + $0x1ca0] sm:$0xff]  ;;  %1861 = vmatpush.msrb.mxu1 %v1394_v53  ;;  %v587_v53 = vld [vmem:[#allocation8 + $0x108] sm:$0xff] }
 0x123   :  { %v1534_v59 = vld [vmem:[#allocation8 + $0x1ea0] sm:$0xff]  ;;  %1878 = vmatpush.msrb.mxu2 %v1470_v58  ;;  %v791_v58 = vld [vmem:[#allocation8 + $0x768] sm:$0xff] }
 0x124   :  { %v1326_v62 = vld [vmem:[#allocation8 + $0x1820] sm:$0xff]  ;;  %1898 = vmatpush.msrb.mxu3 %v1534_v59  ;;  %v583_v59 = vld [vmem:[#allocation8 + $0xe8] sm:$0xff] }
 0x125   :  { %v1390_v63 = vld [vmem:[#allocation8 + $0x1a20] sm:$0xff]  ;;  %1842 = vmatpush.msrb.mxu0 %v1326_v62  ;;  %v647_v62 = vld [vmem:[#allocation8 + $0x2e8] sm:$0xff] }
 0x126   :  { %v1466_v1 = vld [vmem:[#allocation8 + $0x1c80] sm:$0xff]  ;;  %1862 = vmatpush.msrb.mxu1 %v1390_v63  ;;  %v723_v63 = vld [vmem:[#allocation8 + $0x548] sm:$0xff] }
 0x127   :  { %v1530_v2 = vld [vmem:[#allocation8 + $0x1e80] sm:$0xff]  ;;  %1879 = vmatpush.msrb.mxu2 %v1466_v1  ;;  %v579_v1 = vld [vmem:[#allocation8 + $0xc8] sm:$0xff] }
 0x128   :  { %v1322_v4 = vld [vmem:[#allocation8 + $0x1800] sm:$0xff]  ;;  %1899 = vmatpush.msrb.mxu3 %v1530_v2  ;;  %v643_v2 = vld [vmem:[#allocation8 + $0x2c8] sm:$0xff] }
 0x129   :  { %v1386_v5 = vld [vmem:[#allocation8 + $0x1a00] sm:$0xff]  ;;  %1843 = vmatpush.msrb.mxu0 %v1322_v4  ;;  %v719_v4 = vld [vmem:[#allocation8 + $0x528] sm:$0xff] }
 0x12a   :  { %v1462_v11 = vld [vmem:[#allocation8 + $0x1c60] sm:$0xff]  ;;  %1863 = vmatpush.msrb.mxu1 %v1386_v5  ;;  %1844 = vmatmul.f32.vlgmr.msrb.gmra.mxu0 %v3406_v10  ;;  %v783_v5 = vld [vmem:[#allocation8 + $0x728] sm:$0xff] }
 0x12b   :  { %v1526_v12 = vld [vmem:[#allocation8 + $0x1e60] sm:$0xff]  ;;  %1880 = vmatpush.msrb.mxu2 %v1462_v11  ;;  %1908 = vmatpush.msra.mxu0 %v615_v16  ;;  %v639_v11 = vld [vmem:[#allocation8 + $0x2a8] sm:$0xff] }
 0x12c   :  { %v1458_v17 = vld [vmem:[#allocation8 + $0x1c40] sm:$0xff]  ;;  %1900 = vmatpush.msrb.mxu3 %v1526_v12  ;;  %1928 = vmatpush.msra.mxu1 %v679_v14  ;;  %v715_v12 = vld [vmem:[#allocation8 + $0x508] sm:$0xff] }
 0x12d   :  { %v1522_v20 = vld [vmem:[#allocation8 + $0x1e40] sm:$0xff]  ;;  %1881 = vmatpush.msrb.mxu2 %v1458_v17  ;;  %1864 = vmatmul.f32.vlgmr.msrb.gmra.mxu1 %v3408_v15  ;;  %v571_v14 = vld [vmem:[#allocation8 + $0x88] sm:$0xff] }
 0x12e   :  { %v1454_v26 = vld [vmem:[#allocation8 + $0x1c20] sm:$0xff]  ;;  %1901 = vmatpush.msrb.mxu3 %v1522_v20  ;;  %1909 = vmatpush.msra.mxu0 %v611_v24  ;;  %v635_v16 = vld [vmem:[#allocation8 + $0x288] sm:$0xff] }
 0x12f   :  { %v1518_v27 = vld [vmem:[#allocation8 + $0x1e20] sm:$0xff]  ;;  %1929 = vmatpush.msra.mxu1 %v675_v25  ;;  %1882 = vmatpush.msrb.mxu2 %v1454_v26  ;;  %v711_v17 = vld [vmem:[#allocation8 + $0x4e8] sm:$0xff] }
 0x130   :  { %v1450_v31 = vld [vmem:[#allocation8 + $0x1c00] sm:$0xff]  ;;  %1902 = vmatpush.msrb.mxu3 %v1518_v27  ;;  %1910 = vmatpush.msra.mxu0 %v607_v29  ;;  %v631_v20 = vld [vmem:[#allocation8 + $0x268] sm:$0xff] }
 0x131   :  { %v1514_v32 = vld [vmem:[#allocation8 + $0x1e00] sm:$0xff]  ;;  %1930 = vmatpush.msra.mxu1 %v671_v6  ;;  %1883 = vmatpush.msrb.mxu2 %v1450_v31  ;;  %v771_v24 = vld [vmem:[#allocation8 + $0x6c8] sm:$0xff] }
 0x132   :  { %1903 = vmatpush.msrb.mxu3 %v1514_v32  ;;  %1884 = vmatmul.f32.vlgmr.msrb.gmra.mxu2 %v3413_v30  ;;  %v563_v25 = vld [vmem:[#allocation8 + $0x48] sm:$0xff] }
 0x133   :  { %1911 = vmatpush.msra.mxu0 %v603_v33  ;;  %1931 = vmatpush.msra.mxu1 %v667_v34  ;;  %v627_v26 = vld [vmem:[#allocation8 + $0x248] sm:$0xff] }
 0x134   :  { %1948 = vmatpush.msra.mxu2 %v743_v35  ;;  %1968 = vmatpush.msra.mxu3 %v807_v37  ;;  %v703_v27 = vld [vmem:[#allocation8 + $0x4a8] sm:$0xff] }
 0x135   :  { %1912 = vmatpush.msra.mxu0 %v599_v39  ;;  %1904 = vmatmul.f32.vlgmr.msrb.gmra.mxu3 %v3415_v36  ;;  %v559_v29 = vld [vmem:[#allocation8 + $0x28] sm:$0xff] }
 0x136   :  { %1932 = vmatpush.msra.mxu1 %v663_v40  ;;  %1949 = vmatpush.msra.mxu2 %v739_v41  ;;  %v623_v6 = vld [vmem:[#allocation8 + $0x228] sm:$0xff] }
 0x137   :  { %1969 = vmatpush.msra.mxu3 %v803_v42  ;;  %1913 = vmatpush.msra.mxu0 %v595_v44  ;;  %v699_v31 = vld [vmem:[#allocation8 + $0x488] sm:$0xff] }
 0x138   :  { %1933 = vmatpush.msra.mxu1 %v659_v45  ;;  %1950 = vmatpush.msra.mxu2 %v735_v46  ;;  %v763_v32 = vld [vmem:[#allocation8 + $0x688] sm:$0xff] }
 0x139   :  { %1970 = vmatpush.msra.mxu3 %v799_v47  ;;  %1914 = vmatpush.msra.mxu0 %v591_v48  ;;  %v555_v33 = vld [vmem:[#allocation8 + $0x8] sm:$0xff] }
 0x13a   :  { %1934 = vmatpush.msra.mxu1 %v655_v49  ;;  %1951 = vmatpush.msra.mxu2 %v731_v50  ;;  %v619_v34 = vld [vmem:[#allocation8 + $0x208] sm:$0xff] }
 0x13b   :  { %1971 = vmatpush.msra.mxu3 %v795_v52  ;;  %1915 = vmatpush.msra.mxu0 %v587_v53  ;;  %v695_v35 = vld [vmem:[#allocation8 + $0x468] sm:$0xff] }
 0x13c   :  { %1935 = vmatpush.msra.mxu1 %v651_v55  ;;  %1952 = vmatpush.msra.mxu2 %v727_v56  ;;  %v759_v37 = vld [vmem:[#allocation8 + $0x668] sm:$0xff] }
 0x13d   :  { %1972 = vmatpush.msra.mxu3 %v791_v58  ;;  %1916 = vmatpush.msra.mxu0 %v583_v59  ;;  %v871_v39 = vld [vmem:[#allocation8 + $0x9e8] sm:$0xff] }
 0x13e   :  { %1936 = vmatpush.msra.mxu1 %v647_v62  ;;  %1953 = vmatpush.msra.mxu2 %v723_v63  ;;  %v935_v40 = vld [vmem:[#allocation8 + $0xbe8] sm:$0xff] }
 0x13f   :  { %1973 = vmatpush.msra.mxu3 %v787_v0  ;;  %1917 = vmatpush.msra.mxu0 %v579_v1  ;;  %v691_v41 = vld [vmem:[#allocation8 + $0x448] sm:$0xff] }
 0x140   :  { %1937 = vmatpush.msra.mxu1 %v643_v2  ;;  %1954 = vmatpush.msra.mxu2 %v719_v4  ;;  %v755_v42 = vld [vmem:[#allocation8 + $0x648] sm:$0xff] }
 0x141   :  { %1974 = vmatpush.msra.mxu3 %v783_v5  ;;  %1918 = vmatpush.msra.mxu0 %v575_v7  ;;  %v867_v44 = vld [vmem:[#allocation8 + $0x9c8] sm:$0xff] }
 0x142   :  { %1938 = vmatpush.msra.mxu1 %v639_v11  ;;  %1955 = vmatpush.msra.mxu2 %v715_v12  ;;  %v931_v45 = vld [vmem:[#allocation8 + $0xbc8] sm:$0xff] }
 0x143   :  { %1975 = vmatpush.msra.mxu3 %v779_v13  ;;  %1919 = vmatpush.msra.mxu0 %v571_v14  ;;  %v687_v46 = vld [vmem:[#allocation8 + $0x428] sm:$0xff] }
 0x144   :  { %1939 = vmatpush.msra.mxu1 %v635_v16  ;;  %1956 = vmatpush.msra.mxu2 %v711_v17  ;;  %v751_v47 = vld [vmem:[#allocation8 + $0x628] sm:$0xff] }
 0x145   :  { %1976 = vmatpush.msra.mxu3 %v775_v18  ;;  %1920 = vmatpush.msra.mxu0 %v567_v19  ;;  %v863_v48 = vld [vmem:[#allocation8 + $0x9a8] sm:$0xff] }
 0x146   :  { %1940 = vmatpush.msra.mxu1 %v631_v20  ;;  %1957 = vmatpush.msra.mxu2 %v707_v21  ;;  %v927_v49 = vld [vmem:[#allocation8 + $0xba8] sm:$0xff] }
 0x147   :  { %1977 = vmatpush.msra.mxu3 %v771_v24  ;;  %1921 = vmatpush.msra.mxu0 %v563_v25  ;;  %v683_v50 = vld [vmem:[#allocation8 + $0x408] sm:$0xff] }
 0x148   :  { %1941 = vmatpush.msra.mxu1 %v627_v26  ;;  %1958 = vmatpush.msra.mxu2 %v703_v27  ;;  %v747_v52 = vld [vmem:[#allocation8 + $0x608] sm:$0xff] }
 0x149   :  { %1978 = vmatpush.msra.mxu3 %v767_v28  ;;  %1922 = vmatpush.msra.mxu0 %v559_v29  ;;  %v859_v53 = vld [vmem:[#allocation8 + $0x988] sm:$0xff] }
 0x14a   :  { %1942 = vmatpush.msra.mxu1 %v623_v6  ;;  %1959 = vmatpush.msra.mxu2 %v699_v31  ;;  %v923_v55 = vld [vmem:[#allocation8 + $0xb88] sm:$0xff] }
 0x14b   :  { %1979 = vmatpush.msra.mxu3 %v763_v32  ;;  %1923 = vmatpush.msra.mxu0 %v555_v33  ;;  %v999_v56 = vld [vmem:[#allocation8 + $0xde8] sm:$0xff] }
 0x14c   :  { %1943 = vmatpush.msra.mxu1 %v619_v34  ;;  %1960 = vmatpush.msra.mxu2 %v695_v35  ;;  %v1063_v58 = vld [vmem:[#allocation8 + $0xfe8] sm:$0xff] }
 0x14d   :  { %1980 = vmatpush.msra.mxu3 %v759_v37  ;;  %1924 = vmatmul.f32.vlgmr.msra.gmra.mxu0 %v3355_v8  ;;  %v855_v59 = vld [vmem:[#allocation8 + $0x968] sm:$0xff] }
 0x14e   :  { %1944 = vmatmul.f32.vlgmr.msra.gmra.mxu1 %v3357_v9  ;;  %1988 = vmatpush.msrb.mxu0 %v871_v39  ;;  %v919_v62 = vld [vmem:[#allocation8 + $0xb68] sm:$0xff] }
 0x14f   :  { %2008 = vmatpush.msrb.mxu1 %v935_v40  ;;  %1961 = vmatpush.msra.mxu2 %v691_v41  ;;  %v995_v63 = vld [vmem:[#allocation8 + $0xdc8] sm:$0xff] }
 0x150   :  { %1981 = vmatpush.msra.mxu3 %v755_v42  ;;  %1989 = vmatpush.msrb.mxu0 %v867_v44  ;;  %v1059_v0 = vld [vmem:[#allocation8 + $0xfc8] sm:$0xff] }
 0x151   :  { %2009 = vmatpush.msrb.mxu1 %v931_v45  ;;  %1962 = vmatpush.msra.mxu2 %v687_v46  ;;  %v851_v1 = vld [vmem:[#allocation8 + $0x948] sm:$0xff] }
 0x152   :  { %1982 = vmatpush.msra.mxu3 %v751_v47  ;;  %1990 = vmatpush.msrb.mxu0 %v863_v48  ;;  %v915_v2 = vld [vmem:[#allocation8 + $0xb48] sm:$0xff] }
 0x153   :  { %2010 = vmatpush.msrb.mxu1 %v927_v49  ;;  %1963 = vmatpush.msra.mxu2 %v683_v50  ;;  %v991_v4 = vld [vmem:[#allocation8 + $0xda8] sm:$0xff] }
 0x154   :  { %1983 = vmatpush.msra.mxu3 %v747_v52  ;;  %1964 = vmatmul.f32.vlgmr.msra.gmra.mxu2 %v3363_v22  ;;  %v1055_v5 = vld [vmem:[#allocation8 + $0xfa8] sm:$0xff] }
 0x155   :  { %1984 = vmatmul.f32.vlgmr.msra.gmra.mxu3 %v3365_v23  ;;  %1991 = vmatpush.msrb.mxu0 %v859_v53  ;;  %v847_v7 = vld [vmem:[#allocation8 + $0x928] sm:$0xff] }
 0x156   :  { %2011 = vmatpush.msrb.mxu1 %v923_v55  ;;  %2028 = vmatpush.msrb.mxu2 %v999_v56  ;;  %v911_v11 = vld [vmem:[#allocation8 + $0xb28] sm:$0xff] }
 0x157   :  { %2048 = vmatpush.msrb.mxu3 %v1063_v58  ;;  %1992 = vmatpush.msrb.mxu0 %v855_v59  ;;  %v987_v12 = vld [vmem:[#allocation8 + $0xd88] sm:$0xff] }
 0x158   :  { %2012 = vmatpush.msrb.mxu1 %v919_v62  ;;  %2029 = vmatpush.msrb.mxu2 %v995_v63  ;;  %v1051_v13 = vld [vmem:[#allocation8 + $0xf88] sm:$0xff] }
 0x159   :  { %2049 = vmatpush.msrb.mxu3 %v1059_v0  ;;  %1993 = vmatpush.msrb.mxu0 %v851_v1  ;;  %v843_v14 = vld [vmem:[#allocation8 + $0x908] sm:$0xff] }
 0x15a   :  { %2013 = vmatpush.msrb.mxu1 %v915_v2  ;;  %2030 = vmatpush.msrb.mxu2 %v991_v4  ;;  %v907_v16 = vld [vmem:[#allocation8 + $0xb08] sm:$0xff] }
 0x15b   :  { %2050 = vmatpush.msrb.mxu3 %v1055_v5  ;;  %1994 = vmatpush.msrb.mxu0 %v847_v7  ;;  %v983_v17 = vld [vmem:[#allocation8 + $0xd68] sm:$0xff] }
 0x15c   :  { %2014 = vmatpush.msrb.mxu1 %v911_v11  ;;  %v1047_v18 = vld [vmem:[#allocation8 + $0xf68] sm:$0xff]  ;;  %2031 = vmatpush.msrb.mxu2 %v987_v12 }
 0x15d   :  { %2051 = vmatpush.msrb.mxu3 %v1051_v13  ;;  %v839_v19 = vld [vmem:[#allocation8 + $0x8e8] sm:$0xff]  ;;  %1995 = vmatpush.msrb.mxu0 %v843_v14 }
 0x15e   :  { %v903_v20 = vld [vmem:[#allocation8 + $0xae8] sm:$0xff]  ;;  %2015 = vmatpush.msrb.mxu1 %v907_v16  ;;  %2032 = vmatpush.msrb.mxu2 %v983_v17 }
 0x15f   :  { %v979_v21 = vld [vmem:[#allocation8 + $0xd48] sm:$0xff]  ;;  %2052 = vmatpush.msrb.mxu3 %v1047_v18  ;;  %1996 = vmatpush.msrb.mxu0 %v839_v19 }
 0x160   :  { %v1043_v24 = vld [vmem:[#allocation8 + $0xf48] sm:$0xff]  ;;  %2016 = vmatpush.msrb.mxu1 %v903_v20  ;;  %2033 = vmatpush.msrb.mxu2 %v979_v21 }
 0x161   :  { %v835_v25 = vld [vmem:[#allocation8 + $0x8c8] sm:$0xff]  ;;  %2053 = vmatpush.msrb.mxu3 %v1043_v24 }
 0x162   :  { %v899_v26 = vld [vmem:[#allocation8 + $0xac8] sm:$0xff]  ;;  %1997 = vmatpush.msrb.mxu0 %v835_v25 }
 0x163   :  { %v975_v27 = vld [vmem:[#allocation8 + $0xd28] sm:$0xff]  ;;  %2017 = vmatpush.msrb.mxu1 %v899_v26 }
 0x164   :  { %v1039_v28 = vld [vmem:[#allocation8 + $0xf28] sm:$0xff]  ;;  %2034 = vmatpush.msrb.mxu2 %v975_v27 }
 0x165   :  { %v831_v29 = vld [vmem:[#allocation8 + $0x8a8] sm:$0xff]  ;;  %2054 = vmatpush.msrb.mxu3 %v1039_v28 }
 0x166   :  { %v895_v6 = vld [vmem:[#allocation8 + $0xaa8] sm:$0xff]  ;;  %1998 = vmatpush.msrb.mxu0 %v831_v29 }
 0x167   :  { %v971_v31 = vld [vmem:[#allocation8 + $0xd08] sm:$0xff]  ;;  %2018 = vmatpush.msrb.mxu1 %v895_v6 }
 0x168   :  { %v1035_v32 = vld [vmem:[#allocation8 + $0xf08] sm:$0xff]  ;;  %2035 = vmatpush.msrb.mxu2 %v971_v31 }
 0x169   :  { %v827_v33 = vld [vmem:[#allocation8 + $0x888] sm:$0xff]  ;;  %2055 = vmatpush.msrb.mxu3 %v1035_v32 }
 0x16a   :  { %v891_v34 = vld [vmem:[#allocation8 + $0xa88] sm:$0xff]  ;;  %1999 = vmatpush.msrb.mxu0 %v827_v33 }
 0x16b   :  { %v967_v35 = vld [vmem:[#allocation8 + $0xce8] sm:$0xff]  ;;  %2019 = vmatpush.msrb.mxu1 %v891_v34 }
 0x16c   :  { %v1031_v37 = vld [vmem:[#allocation8 + $0xee8] sm:$0xff]  ;;  %2036 = vmatpush.msrb.mxu2 %v967_v35 }
 0x16d   :  { %v823_v39 = vld [vmem:[#allocation8 + $0x868] sm:$0xff]  ;;  %2056 = vmatpush.msrb.mxu3 %v1031_v37 }
 0x16e   :  { %v887_v40 = vld [vmem:[#allocation8 + $0xa68] sm:$0xff]  ;;  %2000 = vmatpush.msrb.mxu0 %v823_v39 }
 0x16f   :  { %v963_v41 = vld [vmem:[#allocation8 + $0xcc8] sm:$0xff]  ;;  %2020 = vmatpush.msrb.mxu1 %v887_v40 }
 0x170   :  { %v1027_v42 = vld [vmem:[#allocation8 + $0xec8] sm:$0xff]  ;;  %2037 = vmatpush.msrb.mxu2 %v963_v41 }
 0x171   :  { %v819_v44 = vld [vmem:[#allocation8 + $0x848] sm:$0xff]  ;;  %2057 = vmatpush.msrb.mxu3 %v1027_v42 }
 0x172   :  { %v883_v45 = vld [vmem:[#allocation8 + $0xa48] sm:$0xff]  ;;  %2001 = vmatpush.msrb.mxu0 %v819_v44 }
 0x173   :  { %v959_v46 = vld [vmem:[#allocation8 + $0xca8] sm:$0xff]  ;;  %2021 = vmatpush.msrb.mxu1 %v883_v45 }
 0x174   :  { %v1023_v47 = vld [vmem:[#allocation8 + $0xea8] sm:$0xff]  ;;  %2038 = vmatpush.msrb.mxu2 %v959_v46 }
 0x175   :  { %v815_v48 = vld [vmem:[#allocation8 + $0x828] sm:$0xff]  ;;  %2058 = vmatpush.msrb.mxu3 %v1023_v47 }
 0x176   :  { %v879_v49 = vld [vmem:[#allocation8 + $0xa28] sm:$0xff]  ;;  %2002 = vmatpush.msrb.mxu0 %v815_v48 }
 0x177   :  { %v955_v50 = vld [vmem:[#allocation8 + $0xc88] sm:$0xff]  ;;  %2022 = vmatpush.msrb.mxu1 %v879_v49 }
 0x178   :  { %v1019_v52 = vld [vmem:[#allocation8 + $0xe88] sm:$0xff]  ;;  %2039 = vmatpush.msrb.mxu2 %v955_v50 }
 0x179   :  { %v811_v53 = vld [vmem:[#allocation8 + $0x808] sm:$0xff]  ;;  %2059 = vmatpush.msrb.mxu3 %v1019_v52 }
 0x17a   :  { %v875_v55 = vld [vmem:[#allocation8 + $0xa08] sm:$0xff]  ;;  %2003 = vmatpush.msrb.mxu0 %v811_v53 }
 0x17b   :  { %v951_v56 = vld [vmem:[#allocation8 + $0xc68] sm:$0xff]  ;;  %2023 = vmatpush.msrb.mxu1 %v875_v55  ;;  %2004 = vmatmul.f32.vlgmr.msrb.gmra.mxu0 %v3375_v54 }
 0x17c   :  { %v1015_v58 = vld [vmem:[#allocation8 + $0xe68] sm:$0xff]  ;;  %2040 = vmatpush.msrb.mxu2 %v951_v56  ;;  %2024 = vmatmul.f32.vlgmr.msrb.gmra.mxu1 %v3380_v60 }
 0x17d   :  { %v1127_v59 = vld [vmem:[#allocation8 + $0x11e8] sm:$0xff]  ;;  %2060 = vmatpush.msrb.mxu3 %v1015_v58 }
 0x17e   :  { %v1191_v62 = vld [vmem:[#allocation8 + $0x13e8] sm:$0xff]  ;;  %2068 = vmatpush.msra.mxu0 %v1127_v59 }
 0x17f   :  { %v947_v63 = vld [vmem:[#allocation8 + $0xc48] sm:$0xff]  ;;  %2088 = vmatpush.msra.mxu1 %v1191_v62 }
 0x180   :  { %v1011_v0 = vld [vmem:[#allocation8 + $0xe48] sm:$0xff]  ;;  %2041 = vmatpush.msrb.mxu2 %v947_v63 }
 0x181   :  { %v1123_v1 = vld [vmem:[#allocation8 + $0x11c8] sm:$0xff]  ;;  %2061 = vmatpush.msrb.mxu3 %v1011_v0 }
 0x182   :  { %v1187_v2 = vld [vmem:[#allocation8 + $0x13c8] sm:$0xff]  ;;  %2069 = vmatpush.msra.mxu0 %v1123_v1 }
 0x183   :  { %v943_v4 = vld [vmem:[#allocation8 + $0xc28] sm:$0xff]  ;;  %2089 = vmatpush.msra.mxu1 %v1187_v2 }
 0x184   :  { %v1007_v5 = vld [vmem:[#allocation8 + $0xe28] sm:$0xff]  ;;  %2042 = vmatpush.msrb.mxu2 %v943_v4 }
 0x185   :  { %v1119_v7 = vld [vmem:[#allocation8 + $0x11a8] sm:$0xff]  ;;  %2062 = vmatpush.msrb.mxu3 %v1007_v5 }
 0x186   :  { %v1183_v11 = vld [vmem:[#allocation8 + $0x13a8] sm:$0xff]  ;;  %2070 = vmatpush.msra.mxu0 %v1119_v7 }
 0x187   :  { %v939_v12 = vld [vmem:[#allocation8 + $0xc08] sm:$0xff]  ;;  %2090 = vmatpush.msra.mxu1 %v1183_v11 }
 0x188   :  { %v1003_v13 = vld [vmem:[#allocation8 + $0xe08] sm:$0xff]  ;;  %2043 = vmatpush.msrb.mxu2 %v939_v12 }
 0x189   :  { %v1115_v14 = vld [vmem:[#allocation8 + $0x1188] sm:$0xff]  ;;  %2063 = vmatpush.msrb.mxu3 %v1003_v13  ;;  %2044 = vmatmul.f32.vlgmr.msrb.gmra.mxu2 %v3373_v51 }
 0x18a   :  { %v1179_v16 = vld [vmem:[#allocation8 + $0x1388] sm:$0xff]  ;;  %2064 = vmatmul.f32.vlgmr.msrb.gmra.mxu3 %v3377_v57  ;;  %2071 = vmatpush.msra.mxu0 %v1115_v14 }
 0x18b   :  { %v1255_v17 = vld [vmem:[#allocation8 + $0x15e8] sm:$0xff]  ;;  %2091 = vmatpush.msra.mxu1 %v1179_v16 }
 0x18c   :  { %v1319_v18 = vld [vmem:[#allocation8 + $0x17e8] sm:$0xff]  ;;  %2108 = vmatpush.msra.mxu2 %v1255_v17 }
 0x18d   :  { %v1111_v19 = vld [vmem:[#allocation8 + $0x1168] sm:$0xff]  ;;  %2128 = vmatpush.msra.mxu3 %v1319_v18 }
 0x18e   :  { %v1175_v20 = vld [vmem:[#allocation8 + $0x1368] sm:$0xff]  ;;  %2072 = vmatpush.msra.mxu0 %v1111_v19 }
 0x18f   :  { %v1251_v21 = vld [vmem:[#allocation8 + $0x15c8] sm:$0xff]  ;;  %2092 = vmatpush.msra.mxu1 %v1175_v20 }
 0x190   :  { %v1315_v24 = vld [vmem:[#allocation8 + $0x17c8] sm:$0xff]  ;;  %2109 = vmatpush.msra.mxu2 %v1251_v21 }
 0x191   :  { %v1107_v25 = vld [vmem:[#allocation8 + $0x1148] sm:$0xff]  ;;  %2129 = vmatpush.msra.mxu3 %v1315_v24 }
 0x192   :  { %v1171_v26 = vld [vmem:[#allocation8 + $0x1348] sm:$0xff]  ;;  %2073 = vmatpush.msra.mxu0 %v1107_v25 }
 0x193   :  { %v1247_v27 = vld [vmem:[#allocation8 + $0x15a8] sm:$0xff]  ;;  %2093 = vmatpush.msra.mxu1 %v1171_v26 }
 0x194   :  { %v1311_v28 = vld [vmem:[#allocation8 + $0x17a8] sm:$0xff]  ;;  %2110 = vmatpush.msra.mxu2 %v1247_v27 }
 0x195   :  { %v1103_v29 = vld [vmem:[#allocation8 + $0x1128] sm:$0xff]  ;;  %2130 = vmatpush.msra.mxu3 %v1311_v28 }
 0x196   :  { %v1167_v6 = vld [vmem:[#allocation8 + $0x1328] sm:$0xff]  ;;  %2074 = vmatpush.msra.mxu0 %v1103_v29 }
 0x197   :  { %v1243_v31 = vld [vmem:[#allocation8 + $0x1588] sm:$0xff]  ;;  %2094 = vmatpush.msra.mxu1 %v1167_v6 }
 0x198   :  { %v1307_v32 = vld [vmem:[#allocation8 + $0x1788] sm:$0xff]  ;;  %2111 = vmatpush.msra.mxu2 %v1243_v31 }
 0x199   :  { %v1099_v33 = vld [vmem:[#allocation8 + $0x1108] sm:$0xff]  ;;  %2131 = vmatpush.msra.mxu3 %v1307_v32 }
 0x19a   :  { %v1163_v34 = vld [vmem:[#allocation8 + $0x1308] sm:$0xff]  ;;  %2075 = vmatpush.msra.mxu0 %v1099_v33 }
 0x19b   :  { %v1239_v35 = vld [vmem:[#allocation8 + $0x1568] sm:$0xff]  ;;  %2095 = vmatpush.msra.mxu1 %v1163_v34 }
 0x19c   :  { %v1303_v37 = vld [vmem:[#allocation8 + $0x1768] sm:$0xff]  ;;  %2112 = vmatpush.msra.mxu2 %v1239_v35 }
 0x19d   :  { %v1095_v39 = vld [vmem:[#allocation8 + $0x10e8] sm:$0xff]  ;;  %2132 = vmatpush.msra.mxu3 %v1303_v37 }
 0x19e   :  { %v1159_v40 = vld [vmem:[#allocation8 + $0x12e8] sm:$0xff]  ;;  %2076 = vmatpush.msra.mxu0 %v1095_v39 }
 0x19f   :  { %v1235_v41 = vld [vmem:[#allocation8 + $0x1548] sm:$0xff]  ;;  %2096 = vmatpush.msra.mxu1 %v1159_v40 }
 0x1a0   :  { %v1299_v42 = vld [vmem:[#allocation8 + $0x1748] sm:$0xff]  ;;  %2113 = vmatpush.msra.mxu2 %v1235_v41 }
 0x1a1   :  { %v1091_v44 = vld [vmem:[#allocation8 + $0x10c8] sm:$0xff]  ;;  %2133 = vmatpush.msra.mxu3 %v1299_v42 }
 0x1a2   :  { %v1155_v45 = vld [vmem:[#allocation8 + $0x12c8] sm:$0xff]  ;;  %2077 = vmatpush.msra.mxu0 %v1091_v44 }
 0x1a3   :  { %v1231_v46 = vld [vmem:[#allocation8 + $0x1528] sm:$0xff]  ;;  %2097 = vmatpush.msra.mxu1 %v1155_v45 }
 0x1a4   :  { %v1295_v47 = vld [vmem:[#allocation8 + $0x1728] sm:$0xff]  ;;  %2114 = vmatpush.msra.mxu2 %v1231_v46 }
 0x1a5   :  { %v1087_v48 = vld [vmem:[#allocation8 + $0x10a8] sm:$0xff]  ;;  %2134 = vmatpush.msra.mxu3 %v1295_v47 }
 0x1a6   :  { %v1151_v49 = vld [vmem:[#allocation8 + $0x12a8] sm:$0xff]  ;;  %2078 = vmatpush.msra.mxu0 %v1087_v48 }
 0x1a7   :  { %v1227_v50 = vld [vmem:[#allocation8 + $0x1508] sm:$0xff]  ;;  %2098 = vmatpush.msra.mxu1 %v1151_v49 }
 0x1a8   :  { %v1291_v52 = vld [vmem:[#allocation8 + $0x1708] sm:$0xff]  ;;  %2115 = vmatpush.msra.mxu2 %v1227_v50 }
 0x1a9   :  { %v1083_v53 = vld [vmem:[#allocation8 + $0x1088] sm:$0xff]  ;;  %2135 = vmatpush.msra.mxu3 %v1291_v52 }
 0x1aa   :  { %v1147_v55 = vld [vmem:[#allocation8 + $0x1288] sm:$0xff]  ;;  %2079 = vmatpush.msra.mxu0 %v1083_v53 }
 0x1ab   :  { %v1223_v56 = vld [vmem:[#allocation8 + $0x14e8] sm:$0xff]  ;;  %2099 = vmatpush.msra.mxu1 %v1147_v55 }
 0x1ac   :  { %v1287_v58 = vld [vmem:[#allocation8 + $0x16e8] sm:$0xff]  ;;  %2116 = vmatpush.msra.mxu2 %v1223_v56 }
 0x1ad   :  { %v1079_v59 = vld [vmem:[#allocation8 + $0x1068] sm:$0xff]  ;;  %2136 = vmatpush.msra.mxu3 %v1287_v58 }
 0x1ae   :  { %v1143_v62 = vld [vmem:[#allocation8 + $0x1268] sm:$0xff]  ;;  %2080 = vmatpush.msra.mxu0 %v1079_v59 }
 0x1af   :  { %v1219_v63 = vld [vmem:[#allocation8 + $0x14c8] sm:$0xff]  ;;  %2100 = vmatpush.msra.mxu1 %v1143_v62 }
 0x1b0   :  { %v1283_v0 = vld [vmem:[#allocation8 + $0x16c8] sm:$0xff]  ;;  %2117 = vmatpush.msra.mxu2 %v1219_v63 }
 0x1b1   :  { %v1075_v1 = vld [vmem:[#allocation8 + $0x1048] sm:$0xff]  ;;  %2137 = vmatpush.msra.mxu3 %v1283_v0 }
 0x1b2   :  { %v1139_v2 = vld [vmem:[#allocation8 + $0x1248] sm:$0xff]  ;;  %2081 = vmatpush.msra.mxu0 %v1075_v1 }
 0x1b3   :  { %v1215_v4 = vld [vmem:[#allocation8 + $0x14a8] sm:$0xff]  ;;  %2101 = vmatpush.msra.mxu1 %v1139_v2 }
 0x1b4   :  { %v1279_v5 = vld [vmem:[#allocation8 + $0x16a8] sm:$0xff]  ;;  %2118 = vmatpush.msra.mxu2 %v1215_v4 }
 0x1b5   :  { %v1071_v7 = vld [vmem:[#allocation8 + $0x1028] sm:$0xff]  ;;  %2138 = vmatpush.msra.mxu3 %v1279_v5 }
 0x1b6   :  { %v1135_v11 = vld [vmem:[#allocation8 + $0x1228] sm:$0xff]  ;;  %2082 = vmatpush.msra.mxu0 %v1071_v7 }
 0x1b7   :  { %v1211_v12 = vld [vmem:[#allocation8 + $0x1488] sm:$0xff]  ;;  %2102 = vmatpush.msra.mxu1 %v1135_v11 }
 0x1b8   :  { %v1275_v13 = vld [vmem:[#allocation8 + $0x1688] sm:$0xff]  ;;  %2119 = vmatpush.msra.mxu2 %v1211_v12 }
 0x1b9   :  { %v1067_v14 = vld [vmem:[#allocation8 + $0x1008] sm:$0xff]  ;;  %2139 = vmatpush.msra.mxu3 %v1275_v13 }
 0x1ba   :  { %v1131_v16 = vld [vmem:[#allocation8 + $0x1208] sm:$0xff]  ;;  %2083 = vmatpush.msra.mxu0 %v1067_v14 }
 0x1bb   :  { %v1207_v17 = vld [vmem:[#allocation8 + $0x1468] sm:$0xff]  ;;  %2103 = vmatpush.msra.mxu1 %v1131_v16  ;;  %2084 = vmatmul.f32.vlgmr.msra.gmra.mxu0 %v3390_v38 }
 0x1bc   :  { %v1271_v18 = vld [vmem:[#allocation8 + $0x1668] sm:$0xff]  ;;  %2120 = vmatpush.msra.mxu2 %v1207_v17  ;;  %2104 = vmatmul.f32.vlgmr.msra.gmra.mxu1 %v3392_v43 }
 0x1bd   :  { %v1383_v19 = vld [vmem:[#allocation8 + $0x19e8] sm:$0xff]  ;;  %2140 = vmatpush.msra.mxu3 %v1271_v18 }
 0x1be   :  { %v1447_v20 = vld [vmem:[#allocation8 + $0x1be8] sm:$0xff]  ;;  %2148 = vmatpush.msrb.mxu0 %v1383_v19 }
 0x1bf   :  { %v1203_v21 = vld [vmem:[#allocation8 + $0x1448] sm:$0xff]  ;;  %2168 = vmatpush.msrb.mxu1 %v1447_v20 }
 0x1c0   :  { %v1267_v24 = vld [vmem:[#allocation8 + $0x1648] sm:$0xff]  ;;  %2121 = vmatpush.msra.mxu2 %v1203_v21 }
 0x1c1   :  { %v1379_v25 = vld [vmem:[#allocation8 + $0x19c8] sm:$0xff]  ;;  %2141 = vmatpush.msra.mxu3 %v1267_v24 }
 0x1c2   :  { %v1443_v26 = vld [vmem:[#allocation8 + $0x1bc8] sm:$0xff]  ;;  %2149 = vmatpush.msrb.mxu0 %v1379_v25 }
 0x1c3   :  { %v1199_v27 = vld [vmem:[#allocation8 + $0x1428] sm:$0xff]  ;;  %2169 = vmatpush.msrb.mxu1 %v1443_v26 }
 0x1c4   :  { %v1263_v28 = vld [vmem:[#allocation8 + $0x1628] sm:$0xff]  ;;  %2122 = vmatpush.msra.mxu2 %v1199_v27 }
 0x1c5   :  { %v1375_v29 = vld [vmem:[#allocation8 + $0x19a8] sm:$0xff]  ;;  %2142 = vmatpush.msra.mxu3 %v1263_v28 }
 0x1c6   :  { %v1439_v6 = vld [vmem:[#allocation8 + $0x1ba8] sm:$0xff]  ;;  %2150 = vmatpush.msrb.mxu0 %v1375_v29 }
 0x1c7   :  { %v1195_v31 = vld [vmem:[#allocation8 + $0x1408] sm:$0xff]  ;;  %2170 = vmatpush.msrb.mxu1 %v1439_v6 }
 0x1c8   :  { %v1259_v32 = vld [vmem:[#allocation8 + $0x1608] sm:$0xff]  ;;  %2123 = vmatpush.msra.mxu2 %v1195_v31 }
 0x1c9   :  { %v1371_v33 = vld [vmem:[#allocation8 + $0x1988] sm:$0xff]  ;;  %2143 = vmatpush.msra.mxu3 %v1259_v32  ;;  %2124 = vmatmul.f32.vlgmr.msra.gmra.mxu2 %v3397_v61 }
 0x1ca   :  { %v1435_v34 = vld [vmem:[#allocation8 + $0x1b88] sm:$0xff]  ;;  %2144 = vmatmul.f32.vlgmr.msra.gmra.mxu3 %v3399_v3  ;;  %2151 = vmatpush.msrb.mxu0 %v1371_v33 }
 0x1cb   :  { %v1511_v35 = vld [vmem:[#allocation8 + $0x1de8] sm:$0xff]  ;;  %2171 = vmatpush.msrb.mxu1 %v1435_v34 }
 0x1cc   :  { %v1575_v37 = vld [vmem:[#allocation8 + $0x1fe8] sm:$0xff]  ;;  %2188 = vmatpush.msrb.mxu2 %v1511_v35 }
 0x1cd   :  { %v1367_v39 = vld [vmem:[#allocation8 + $0x1968] sm:$0xff]  ;;  %2208 = vmatpush.msrb.mxu3 %v1575_v37 }
 0x1ce   :  { %v1431_v40 = vld [vmem:[#allocation8 + $0x1b68] sm:$0xff]  ;;  %2152 = vmatpush.msrb.mxu0 %v1367_v39  ;;  %v616_v39 = vld [vmem:[#allocation8 + $0x1f0] sm:$0xff] }
 0x1cf   :  { %v1507_v41 = vld [vmem:[#allocation8 + $0x1dc8] sm:$0xff]  ;;  %2172 = vmatpush.msrb.mxu1 %v1431_v40  ;;  %v680_v40 = vld [vmem:[#allocation8 + $0x3f0] sm:$0xff] }
 0x1d0   :  { %v1571_v42 = vld [vmem:[#allocation8 + $0x1fc8] sm:$0xff]  ;;  %2189 = vmatpush.msrb.mxu2 %v1507_v41 }
 0x1d1   :  { %v1363_v44 = vld [vmem:[#allocation8 + $0x1948] sm:$0xff]  ;;  %2209 = vmatpush.msrb.mxu3 %v1571_v42 }
 0x1d2   :  { %v1427_v45 = vld [vmem:[#allocation8 + $0x1b48] sm:$0xff]  ;;  %2153 = vmatpush.msrb.mxu0 %v1363_v44  ;;  %v612_v44 = vld [vmem:[#allocation8 + $0x1d0] sm:$0xff] }
 0x1d3   :  { %v1503_v46 = vld [vmem:[#allocation8 + $0x1da8] sm:$0xff]  ;;  %2173 = vmatpush.msrb.mxu1 %v1427_v45  ;;  %v676_v45 = vld [vmem:[#allocation8 + $0x3d0] sm:$0xff] }
 0x1d4   :  { %v1567_v47 = vld [vmem:[#allocation8 + $0x1fa8] sm:$0xff]  ;;  %2190 = vmatpush.msrb.mxu2 %v1503_v46 }
 0x1d5   :  { %v1359_v48 = vld [vmem:[#allocation8 + $0x1928] sm:$0xff]  ;;  %2210 = vmatpush.msrb.mxu3 %v1567_v47 }
 0x1d6   :  { %v1423_v49 = vld [vmem:[#allocation8 + $0x1b28] sm:$0xff]  ;;  %2154 = vmatpush.msrb.mxu0 %v1359_v48  ;;  %v608_v48 = vld [vmem:[#allocation8 + $0x1b0] sm:$0xff] }
 0x1d7   :  { %v1499_v50 = vld [vmem:[#allocation8 + $0x1d88] sm:$0xff]  ;;  %2174 = vmatpush.msrb.mxu1 %v1423_v49  ;;  %v672_v49 = vld [vmem:[#allocation8 + $0x3b0] sm:$0xff] }
 0x1d8   :  { %v1563_v52 = vld [vmem:[#allocation8 + $0x1f88] sm:$0xff]  ;;  %2191 = vmatpush.msrb.mxu2 %v1499_v50 }
 0x1d9   :  { %v1355_v53 = vld [vmem:[#allocation8 + $0x1908] sm:$0xff]  ;;  %2211 = vmatpush.msrb.mxu3 %v1563_v52 }
 0x1da   :  { %v1419_v55 = vld [vmem:[#allocation8 + $0x1b08] sm:$0xff]  ;;  %2155 = vmatpush.msrb.mxu0 %v1355_v53  ;;  %v604_v53 = vld [vmem:[#allocation8 + $0x190] sm:$0xff] }
 0x1db   :  { %v1495_v56 = vld [vmem:[#allocation8 + $0x1d68] sm:$0xff]  ;;  %2175 = vmatpush.msrb.mxu1 %v1419_v55  ;;  %v668_v55 = vld [vmem:[#allocation8 + $0x390] sm:$0xff] }
 0x1dc   :  { %v1559_v58 = vld [vmem:[#allocation8 + $0x1f68] sm:$0xff]  ;;  %2192 = vmatpush.msrb.mxu2 %v1495_v56  ;;  %v744_v56 = vld [vmem:[#allocation8 + $0x5f0] sm:$0xff] }
 0x1dd   :  { %v1351_v59 = vld [vmem:[#allocation8 + $0x18e8] sm:$0xff]  ;;  %2212 = vmatpush.msrb.mxu3 %v1559_v58  ;;  %v808_v58 = vld [vmem:[#allocation8 + $0x7f0] sm:$0xff] }
 0x1de   :  { %v1415_v62 = vld [vmem:[#allocation8 + $0x1ae8] sm:$0xff]  ;;  %2156 = vmatpush.msrb.mxu0 %v1351_v59  ;;  %v600_v59 = vld [vmem:[#allocation8 + $0x170] sm:$0xff] }
 0x1df   :  { %v1491_v63 = vld [vmem:[#allocation8 + $0x1d48] sm:$0xff]  ;;  %2176 = vmatpush.msrb.mxu1 %v1415_v62  ;;  %v664_v62 = vld [vmem:[#allocation8 + $0x370] sm:$0xff] }
 0x1e0   :  { %v1555_v0 = vld [vmem:[#allocation8 + $0x1f48] sm:$0xff]  ;;  %2193 = vmatpush.msrb.mxu2 %v1491_v63  ;;  %v740_v63 = vld [vmem:[#allocation8 + $0x5d0] sm:$0xff] }
 0x1e1   :  { %v1347_v1 = vld [vmem:[#allocation8 + $0x18c8] sm:$0xff]  ;;  %2213 = vmatpush.msrb.mxu3 %v1555_v0  ;;  %v804_v0 = vld [vmem:[#allocation8 + $0x7d0] sm:$0xff] }
 0x1e2   :  { %v1411_v2 = vld [vmem:[#allocation8 + $0x1ac8] sm:$0xff]  ;;  %2157 = vmatpush.msrb.mxu0 %v1347_v1  ;;  %v596_v1 = vld [vmem:[#allocation8 + $0x150] sm:$0xff] }
 0x1e3   :  { %v1487_v4 = vld [vmem:[#allocation8 + $0x1d28] sm:$0xff]  ;;  %2177 = vmatpush.msrb.mxu1 %v1411_v2  ;;  %v660_v2 = vld [vmem:[#allocation8 + $0x350] sm:$0xff] }
 0x1e4   :  { %v1551_v5 = vld [vmem:[#allocation8 + $0x1f28] sm:$0xff]  ;;  %2194 = vmatpush.msrb.mxu2 %v1487_v4  ;;  %v736_v4 = vld [vmem:[#allocation8 + $0x5b0] sm:$0xff] }
 0x1e5   :  { %v1343_v7 = vld [vmem:[#allocation8 + $0x18a8] sm:$0xff]  ;;  %2214 = vmatpush.msrb.mxu3 %v1551_v5  ;;  %v800_v5 = vld [vmem:[#allocation8 + $0x7b0] sm:$0xff] }
 0x1e6   :  { %v1407_v11 = vld [vmem:[#allocation8 + $0x1aa8] sm:$0xff]  ;;  %2158 = vmatpush.msrb.mxu0 %v1343_v7  ;;  %v592_v7 = vld [vmem:[#allocation8 + $0x130] sm:$0xff] }
 0x1e7   :  { %v1483_v12 = vld [vmem:[#allocation8 + $0x1d08] sm:$0xff]  ;;  %2178 = vmatpush.msrb.mxu1 %v1407_v11  ;;  %v656_v11 = vld [vmem:[#allocation8 + $0x330] sm:$0xff] }
 0x1e8   :  { %v1547_v13 = vld [vmem:[#allocation8 + $0x1f08] sm:$0xff]  ;;  %2195 = vmatpush.msrb.mxu2 %v1483_v12  ;;  %v732_v12 = vld [vmem:[#allocation8 + $0x590] sm:$0xff] }
 0x1e9   :  { %v1339_v14 = vld [vmem:[#allocation8 + $0x1888] sm:$0xff]  ;;  %2215 = vmatpush.msrb.mxu3 %v1547_v13  ;;  %v796_v13 = vld [vmem:[#allocation8 + $0x790] sm:$0xff] }
 0x1ea   :  { %v1403_v16 = vld [vmem:[#allocation8 + $0x1a88] sm:$0xff]  ;;  %2159 = vmatpush.msrb.mxu0 %v1339_v14  ;;  %v588_v14 = vld [vmem:[#allocation8 + $0x110] sm:$0xff] }
 0x1eb   :  { %v1479_v17 = vld [vmem:[#allocation8 + $0x1ce8] sm:$0xff]  ;;  %2179 = vmatpush.msrb.mxu1 %v1403_v16  ;;  %v652_v16 = vld [vmem:[#allocation8 + $0x310] sm:$0xff] }
 0x1ec   :  { %v1543_v18 = vld [vmem:[#allocation8 + $0x1ee8] sm:$0xff]  ;;  %2196 = vmatpush.msrb.mxu2 %v1479_v17  ;;  %v728_v17 = vld [vmem:[#allocation8 + $0x570] sm:$0xff] }
 0x1ed   :  { %v1335_v19 = vld [vmem:[#allocation8 + $0x1868] sm:$0xff]  ;;  %2216 = vmatpush.msrb.mxu3 %v1543_v18  ;;  %v792_v18 = vld [vmem:[#allocation8 + $0x770] sm:$0xff] }
 0x1ee   :  { %v1399_v20 = vld [vmem:[#allocation8 + $0x1a68] sm:$0xff]  ;;  %2160 = vmatpush.msrb.mxu0 %v1335_v19  ;;  %v584_v19 = vld [vmem:[#allocation8 + $0xf0] sm:$0xff] }
 0x1ef   :  { %v1475_v21 = vld [vmem:[#allocation8 + $0x1cc8] sm:$0xff]  ;;  %2180 = vmatpush.msrb.mxu1 %v1399_v20  ;;  %v648_v20 = vld [vmem:[#allocation8 + $0x2f0] sm:$0xff] }
 0x1f0   :  { %v1539_v24 = vld [vmem:[#allocation8 + $0x1ec8] sm:$0xff]  ;;  %2197 = vmatpush.msrb.mxu2 %v1475_v21  ;;  %v724_v21 = vld [vmem:[#allocation8 + $0x550] sm:$0xff] }
 0x1f1   :  { %v1331_v25 = vld [vmem:[#allocation8 + $0x1848] sm:$0xff]  ;;  %2217 = vmatpush.msrb.mxu3 %v1539_v24  ;;  %v788_v24 = vld [vmem:[#allocation8 + $0x750] sm:$0xff] }
 0x1f2   :  { %v1395_v26 = vld [vmem:[#allocation8 + $0x1a48] sm:$0xff]  ;;  %2161 = vmatpush.msrb.mxu0 %v1331_v25  ;;  %v580_v25 = vld [vmem:[#allocation8 + $0xd0] sm:$0xff] }
 0x1f3   :  { %v1471_v27 = vld [vmem:[#allocation8 + $0x1ca8] sm:$0xff]  ;;  %2181 = vmatpush.msrb.mxu1 %v1395_v26  ;;  %v644_v26 = vld [vmem:[#allocation8 + $0x2d0] sm:$0xff] }
 0x1f4   :  { %v1535_v28 = vld [vmem:[#allocation8 + $0x1ea8] sm:$0xff]  ;;  %2198 = vmatpush.msrb.mxu2 %v1471_v27  ;;  %v720_v27 = vld [vmem:[#allocation8 + $0x530] sm:$0xff] }
 0x1f5   :  { %v1327_v29 = vld [vmem:[#allocation8 + $0x1828] sm:$0xff]  ;;  %2218 = vmatpush.msrb.mxu3 %v1535_v28  ;;  %v784_v28 = vld [vmem:[#allocation8 + $0x730] sm:$0xff] }
 0x1f6   :  { %v1391_v6 = vld [vmem:[#allocation8 + $0x1a28] sm:$0xff]  ;;  %2162 = vmatpush.msrb.mxu0 %v1327_v29  ;;  %v576_v29 = vld [vmem:[#allocation8 + $0xb0] sm:$0xff] }
 0x1f7   :  { %v1467_v31 = vld [vmem:[#allocation8 + $0x1c88] sm:$0xff]  ;;  %2182 = vmatpush.msrb.mxu1 %v1391_v6  ;;  %v640_v6 = vld [vmem:[#allocation8 + $0x2b0] sm:$0xff] }
 0x1f8   :  { %v1531_v32 = vld [vmem:[#allocation8 + $0x1e88] sm:$0xff]  ;;  %2199 = vmatpush.msrb.mxu2 %v1467_v31  ;;  %v716_v31 = vld [vmem:[#allocation8 + $0x510] sm:$0xff] }
 0x1f9   :  { %v1323_v33 = vld [vmem:[#allocation8 + $0x1808] sm:$0xff]  ;;  %2219 = vmatpush.msrb.mxu3 %v1531_v32  ;;  %v780_v32 = vld [vmem:[#allocation8 + $0x710] sm:$0xff] }
 0x1fa   :  { %v1387_v34 = vld [vmem:[#allocation8 + $0x1a08] sm:$0xff]  ;;  %2163 = vmatpush.msrb.mxu0 %v1323_v33  ;;  %v572_v33 = vld [vmem:[#allocation8 + $0x90] sm:$0xff] }
 0x1fb   :  { %v1463_v35 = vld [vmem:[#allocation8 + $0x1c68] sm:$0xff]  ;;  %2183 = vmatpush.msrb.mxu1 %v1387_v34  ;;  %2164 = vmatmul.f32.vlgmr.msrb.gmra.mxu0 %v3406_v10  ;;  %v636_v34 = vld [vmem:[#allocation8 + $0x290] sm:$0xff] }
 0x1fc   :  { %v1527_v37 = vld [vmem:[#allocation8 + $0x1e68] sm:$0xff]  ;;  %2200 = vmatpush.msrb.mxu2 %v1463_v35  ;;  %2184 = vmatmul.f32.vlgmr.msrb.gmra.mxu1 %v3408_v15  ;;  %v712_v35 = vld [vmem:[#allocation8 + $0x4f0] sm:$0xff] }
 0x1fd   :  { %2220 = vmatpush.msrb.mxu3 %v1527_v37  ;;  %v1459_v41 = vld [vmem:[#allocation8 + $0x1c48] sm:$0xff]  ;;  %2228 = vmatpush.msra.mxu0 %v616_v39  ;;  %v776_v37 = vld [vmem:[#allocation8 + $0x6f0] sm:$0xff] }
 0x1fe   :  { %v1523_v42 = vld [vmem:[#allocation8 + $0x1e48] sm:$0xff]  ;;  %2248 = vmatpush.msra.mxu1 %v680_v40  ;;  %2201 = vmatpush.msrb.mxu2 %v1459_v41  ;;  %v568_v39 = vld [vmem:[#allocation8 + $0x70] sm:$0xff] }
 0x1ff   :  { %v1455_v46 = vld [vmem:[#allocation8 + $0x1c28] sm:$0xff]  ;;  %2221 = vmatpush.msrb.mxu3 %v1523_v42  ;;  %2229 = vmatpush.msra.mxu0 %v612_v44  ;;  %v632_v40 = vld [vmem:[#allocation8 + $0x270] sm:$0xff] }
 0x200   :  { %v1519_v47 = vld [vmem:[#allocation8 + $0x1e28] sm:$0xff]  ;;  %2249 = vmatpush.msra.mxu1 %v676_v45  ;;  %2202 = vmatpush.msrb.mxu2 %v1455_v46  ;;  %v708_v41 = vld [vmem:[#allocation8 + $0x4d0] sm:$0xff] }
 0x201   :  { %v1451_v50 = vld [vmem:[#allocation8 + $0x1c08] sm:$0xff]  ;;  %2222 = vmatpush.msrb.mxu3 %v1519_v47  ;;  %2230 = vmatpush.msra.mxu0 %v608_v48  ;;  %v772_v42 = vld [vmem:[#allocation8 + $0x6d0] sm:$0xff] }
 0x202   :  { %v1515_v52 = vld [vmem:[#allocation8 + $0x1e08] sm:$0xff]  ;;  %2250 = vmatpush.msra.mxu1 %v672_v49  ;;  %2203 = vmatpush.msrb.mxu2 %v1451_v50  ;;  %v564_v44 = vld [vmem:[#allocation8 + $0x50] sm:$0xff] }
 0x203   :  { %2223 = vmatpush.msrb.mxu3 %v1515_v52  ;;  %2204 = vmatmul.f32.vlgmr.msrb.gmra.mxu2 %v3413_v30  ;;  %v628_v45 = vld [vmem:[#allocation8 + $0x250] sm:$0xff] }
 0x204   :  { %2224 = vmatmul.f32.vlgmr.msrb.gmra.mxu3 %v3415_v36  ;;  %2231 = vmatpush.msra.mxu0 %v604_v53  ;;  %v704_v46 = vld [vmem:[#allocation8 + $0x4b0] sm:$0xff] }
 0x205   :  { %2251 = vmatpush.msra.mxu1 %v668_v55  ;;  %2268 = vmatpush.msra.mxu2 %v744_v56  ;;  %v768_v47 = vld [vmem:[#allocation8 + $0x6b0] sm:$0xff] }
 0x206   :  { %2288 = vmatpush.msra.mxu3 %v808_v58  ;;  %2232 = vmatpush.msra.mxu0 %v600_v59  ;;  %v560_v48 = vld [vmem:[#allocation8 + $0x30] sm:$0xff] }
 0x207   :  { %2252 = vmatpush.msra.mxu1 %v664_v62  ;;  %2269 = vmatpush.msra.mxu2 %v740_v63  ;;  %v624_v49 = vld [vmem:[#allocation8 + $0x230] sm:$0xff] }
 0x208   :  { %2289 = vmatpush.msra.mxu3 %v804_v0  ;;  %2233 = vmatpush.msra.mxu0 %v596_v1  ;;  %v700_v50 = vld [vmem:[#allocation8 + $0x490] sm:$0xff] }
 0x209   :  { %2253 = vmatpush.msra.mxu1 %v660_v2  ;;  %2270 = vmatpush.msra.mxu2 %v736_v4  ;;  %v764_v52 = vld [vmem:[#allocation8 + $0x690] sm:$0xff] }
 0x20a   :  { %2290 = vmatpush.msra.mxu3 %v800_v5  ;;  %2234 = vmatpush.msra.mxu0 %v592_v7  ;;  %v556_v53 = vld [vmem:[#allocation8 + $0x10] sm:$0xff] }
 0x20b   :  { %2254 = vmatpush.msra.mxu1 %v656_v11  ;;  %2271 = vmatpush.msra.mxu2 %v732_v12  ;;  %v620_v55 = vld [vmem:[#allocation8 + $0x210] sm:$0xff] }
 0x20c   :  { %2291 = vmatpush.msra.mxu3 %v796_v13  ;;  %2235 = vmatpush.msra.mxu0 %v588_v14  ;;  %v696_v56 = vld [vmem:[#allocation8 + $0x470] sm:$0xff] }
 0x20d   :  { %2255 = vmatpush.msra.mxu1 %v652_v16  ;;  %2272 = vmatpush.msra.mxu2 %v728_v17  ;;  %v760_v58 = vld [vmem:[#allocation8 + $0x670] sm:$0xff] }
 0x20e   :  { %2292 = vmatpush.msra.mxu3 %v792_v18  ;;  %2236 = vmatpush.msra.mxu0 %v584_v19  ;;  %v872_v59 = vld [vmem:[#allocation8 + $0x9f0] sm:$0xff] }
 0x20f   :  { %2256 = vmatpush.msra.mxu1 %v648_v20  ;;  %2273 = vmatpush.msra.mxu2 %v724_v21  ;;  %v936_v62 = vld [vmem:[#allocation8 + $0xbf0] sm:$0xff] }
 0x210   :  { %2293 = vmatpush.msra.mxu3 %v788_v24  ;;  %2237 = vmatpush.msra.mxu0 %v580_v25  ;;  %v692_v63 = vld [vmem:[#allocation8 + $0x450] sm:$0xff] }
 0x211   :  { %2257 = vmatpush.msra.mxu1 %v644_v26  ;;  %2274 = vmatpush.msra.mxu2 %v720_v27  ;;  %v756_v0 = vld [vmem:[#allocation8 + $0x650] sm:$0xff] }
 0x212   :  { %2294 = vmatpush.msra.mxu3 %v784_v28  ;;  %2238 = vmatpush.msra.mxu0 %v576_v29  ;;  %v868_v1 = vld [vmem:[#allocation8 + $0x9d0] sm:$0xff] }
 0x213   :  { %2258 = vmatpush.msra.mxu1 %v640_v6  ;;  %2275 = vmatpush.msra.mxu2 %v716_v31  ;;  %v932_v2 = vld [vmem:[#allocation8 + $0xbd0] sm:$0xff] }
 0x214   :  { %2295 = vmatpush.msra.mxu3 %v780_v32  ;;  %2239 = vmatpush.msra.mxu0 %v572_v33  ;;  %v688_v4 = vld [vmem:[#allocation8 + $0x430] sm:$0xff] }
 0x215   :  { %2259 = vmatpush.msra.mxu1 %v636_v34  ;;  %2276 = vmatpush.msra.mxu2 %v712_v35  ;;  %v752_v5 = vld [vmem:[#allocation8 + $0x630] sm:$0xff] }
 0x216   :  { %2296 = vmatpush.msra.mxu3 %v776_v37  ;;  %2240 = vmatpush.msra.mxu0 %v568_v39  ;;  %v864_v7 = vld [vmem:[#allocation8 + $0x9b0] sm:$0xff] }
 0x217   :  { %2260 = vmatpush.msra.mxu1 %v632_v40  ;;  %2277 = vmatpush.msra.mxu2 %v708_v41  ;;  %v928_v11 = vld [vmem:[#allocation8 + $0xbb0] sm:$0xff] }
 0x218   :  { %2297 = vmatpush.msra.mxu3 %v772_v42  ;;  %2241 = vmatpush.msra.mxu0 %v564_v44  ;;  %v684_v12 = vld [vmem:[#allocation8 + $0x410] sm:$0xff] }
 0x219   :  { %2261 = vmatpush.msra.mxu1 %v628_v45  ;;  %2278 = vmatpush.msra.mxu2 %v704_v46  ;;  %v748_v13 = vld [vmem:[#allocation8 + $0x610] sm:$0xff] }
 0x21a   :  { %2298 = vmatpush.msra.mxu3 %v768_v47  ;;  %2242 = vmatpush.msra.mxu0 %v560_v48  ;;  %v860_v14 = vld [vmem:[#allocation8 + $0x990] sm:$0xff] }
 0x21b   :  { %2262 = vmatpush.msra.mxu1 %v624_v49  ;;  %2279 = vmatpush.msra.mxu2 %v700_v50  ;;  %v924_v16 = vld [vmem:[#allocation8 + $0xb90] sm:$0xff] }
 0x21c   :  { %2299 = vmatpush.msra.mxu3 %v764_v52  ;;  %2243 = vmatpush.msra.mxu0 %v556_v53  ;;  %v1000_v17 = vld [vmem:[#allocation8 + $0xdf0] sm:$0xff] }
 0x21d   :  { %2263 = vmatpush.msra.mxu1 %v620_v55  ;;  %2280 = vmatpush.msra.mxu2 %v696_v56  ;;  %v1064_v18 = vld [vmem:[#allocation8 + $0xff0] sm:$0xff] }
 0x21e   :  { %2300 = vmatpush.msra.mxu3 %v760_v58  ;;  %2244 = vmatmul.f32.vlgmr.msra.gmra.mxu0 %v3355_v8  ;;  %v856_v19 = vld [vmem:[#allocation8 + $0x970] sm:$0xff] }
 0x21f   :  { %2264 = vmatmul.f32.vlgmr.msra.gmra.mxu1 %v3357_v9  ;;  %2308 = vmatpush.msrb.mxu0 %v872_v59  ;;  %v920_v20 = vld [vmem:[#allocation8 + $0xb70] sm:$0xff] }
 0x220   :  { %2328 = vmatpush.msrb.mxu1 %v936_v62  ;;  %2281 = vmatpush.msra.mxu2 %v692_v63  ;;  %v996_v21 = vld [vmem:[#allocation8 + $0xdd0] sm:$0xff] }
 0x221   :  { %2301 = vmatpush.msra.mxu3 %v756_v0  ;;  %2309 = vmatpush.msrb.mxu0 %v868_v1  ;;  %v1060_v24 = vld [vmem:[#allocation8 + $0xfd0] sm:$0xff] }
 0x222   :  { %2329 = vmatpush.msrb.mxu1 %v932_v2  ;;  %2282 = vmatpush.msra.mxu2 %v688_v4  ;;  %v852_v25 = vld [vmem:[#allocation8 + $0x950] sm:$0xff] }
 0x223   :  { %2302 = vmatpush.msra.mxu3 %v752_v5  ;;  %2310 = vmatpush.msrb.mxu0 %v864_v7  ;;  %v916_v26 = vld [vmem:[#allocation8 + $0xb50] sm:$0xff] }
 0x224   :  { %2330 = vmatpush.msrb.mxu1 %v928_v11  ;;  %2283 = vmatpush.msra.mxu2 %v684_v12  ;;  %v992_v27 = vld [vmem:[#allocation8 + $0xdb0] sm:$0xff] }
 0x225   :  { %2303 = vmatpush.msra.mxu3 %v748_v13  ;;  %2284 = vmatmul.f32.vlgmr.msra.gmra.mxu2 %v3363_v22  ;;  %v1056_v28 = vld [vmem:[#allocation8 + $0xfb0] sm:$0xff] }
 0x226   :  { %2304 = vmatmul.f32.vlgmr.msra.gmra.mxu3 %v3365_v23  ;;  %2311 = vmatpush.msrb.mxu0 %v860_v14  ;;  %v848_v29 = vld [vmem:[#allocation8 + $0x930] sm:$0xff] }
 0x227   :  { %2331 = vmatpush.msrb.mxu1 %v924_v16  ;;  %2348 = vmatpush.msrb.mxu2 %v1000_v17  ;;  %v912_v6 = vld [vmem:[#allocation8 + $0xb30] sm:$0xff] }
 0x228   :  { %2368 = vmatpush.msrb.mxu3 %v1064_v18  ;;  %2312 = vmatpush.msrb.mxu0 %v856_v19  ;;  %v988_v31 = vld [vmem:[#allocation8 + $0xd90] sm:$0xff] }
 0x229   :  { %2332 = vmatpush.msrb.mxu1 %v920_v20  ;;  %2349 = vmatpush.msrb.mxu2 %v996_v21  ;;  %v1052_v32 = vld [vmem:[#allocation8 + $0xf90] sm:$0xff] }
 0x22a   :  { %2369 = vmatpush.msrb.mxu3 %v1060_v24  ;;  %2313 = vmatpush.msrb.mxu0 %v852_v25  ;;  %v844_v33 = vld [vmem:[#allocation8 + $0x910] sm:$0xff] }
 0x22b   :  { %2333 = vmatpush.msrb.mxu1 %v916_v26  ;;  %2350 = vmatpush.msrb.mxu2 %v992_v27  ;;  %v908_v34 = vld [vmem:[#allocation8 + $0xb10] sm:$0xff] }
 0x22c   :  { %2370 = vmatpush.msrb.mxu3 %v1056_v28  ;;  %2314 = vmatpush.msrb.mxu0 %v848_v29  ;;  %v984_v35 = vld [vmem:[#allocation8 + $0xd70] sm:$0xff] }
 0x22d   :  { %2334 = vmatpush.msrb.mxu1 %v912_v6  ;;  %v1048_v37 = vld [vmem:[#allocation8 + $0xf70] sm:$0xff]  ;;  %2351 = vmatpush.msrb.mxu2 %v988_v31 }
 0x22e   :  { %2371 = vmatpush.msrb.mxu3 %v1052_v32  ;;  %v840_v39 = vld [vmem:[#allocation8 + $0x8f0] sm:$0xff]  ;;  %2315 = vmatpush.msrb.mxu0 %v844_v33 }
 0x22f   :  { %v904_v40 = vld [vmem:[#allocation8 + $0xaf0] sm:$0xff]  ;;  %2335 = vmatpush.msrb.mxu1 %v908_v34  ;;  %2352 = vmatpush.msrb.mxu2 %v984_v35 }
 0x230   :  { %v980_v41 = vld [vmem:[#allocation8 + $0xd50] sm:$0xff]  ;;  %2372 = vmatpush.msrb.mxu3 %v1048_v37  ;;  %2316 = vmatpush.msrb.mxu0 %v840_v39 }
 0x231   :  { %v1044_v42 = vld [vmem:[#allocation8 + $0xf50] sm:$0xff]  ;;  %2336 = vmatpush.msrb.mxu1 %v904_v40  ;;  %2353 = vmatpush.msrb.mxu2 %v980_v41 }
 0x232   :  { %v836_v44 = vld [vmem:[#allocation8 + $0x8d0] sm:$0xff]  ;;  %2373 = vmatpush.msrb.mxu3 %v1044_v42 }
 0x233   :  { %v900_v45 = vld [vmem:[#allocation8 + $0xad0] sm:$0xff]  ;;  %2317 = vmatpush.msrb.mxu0 %v836_v44 }
 0x234   :  { %v976_v46 = vld [vmem:[#allocation8 + $0xd30] sm:$0xff]  ;;  %2337 = vmatpush.msrb.mxu1 %v900_v45 }
 0x235   :  { %v1040_v47 = vld [vmem:[#allocation8 + $0xf30] sm:$0xff]  ;;  %2354 = vmatpush.msrb.mxu2 %v976_v46 }
 0x236   :  { %v832_v48 = vld [vmem:[#allocation8 + $0x8b0] sm:$0xff]  ;;  %2374 = vmatpush.msrb.mxu3 %v1040_v47 }
 0x237   :  { %v896_v49 = vld [vmem:[#allocation8 + $0xab0] sm:$0xff]  ;;  %2318 = vmatpush.msrb.mxu0 %v832_v48 }
 0x238   :  { %v972_v50 = vld [vmem:[#allocation8 + $0xd10] sm:$0xff]  ;;  %2338 = vmatpush.msrb.mxu1 %v896_v49 }
 0x239   :  { %v1036_v52 = vld [vmem:[#allocation8 + $0xf10] sm:$0xff]  ;;  %2355 = vmatpush.msrb.mxu2 %v972_v50 }
 0x23a   :  { %v828_v53 = vld [vmem:[#allocation8 + $0x890] sm:$0xff]  ;;  %2375 = vmatpush.msrb.mxu3 %v1036_v52 }
 0x23b   :  { %v892_v55 = vld [vmem:[#allocation8 + $0xa90] sm:$0xff]  ;;  %2319 = vmatpush.msrb.mxu0 %v828_v53 }
 0x23c   :  { %v968_v56 = vld [vmem:[#allocation8 + $0xcf0] sm:$0xff]  ;;  %2339 = vmatpush.msrb.mxu1 %v892_v55 }
 0x23d   :  { %v1032_v58 = vld [vmem:[#allocation8 + $0xef0] sm:$0xff]  ;;  %2356 = vmatpush.msrb.mxu2 %v968_v56 }
 0x23e   :  { %v824_v59 = vld [vmem:[#allocation8 + $0x870] sm:$0xff]  ;;  %2376 = vmatpush.msrb.mxu3 %v1032_v58 }
 0x23f   :  { %v888_v62 = vld [vmem:[#allocation8 + $0xa70] sm:$0xff]  ;;  %2320 = vmatpush.msrb.mxu0 %v824_v59 }
 0x240   :  { %v964_v63 = vld [vmem:[#allocation8 + $0xcd0] sm:$0xff]  ;;  %2340 = vmatpush.msrb.mxu1 %v888_v62 }
 0x241   :  { %v1028_v0 = vld [vmem:[#allocation8 + $0xed0] sm:$0xff]  ;;  %2357 = vmatpush.msrb.mxu2 %v964_v63 }
 0x242   :  { %v820_v1 = vld [vmem:[#allocation8 + $0x850] sm:$0xff]  ;;  %2377 = vmatpush.msrb.mxu3 %v1028_v0 }
 0x243   :  { %v884_v2 = vld [vmem:[#allocation8 + $0xa50] sm:$0xff]  ;;  %2321 = vmatpush.msrb.mxu0 %v820_v1 }
 0x244   :  { %v960_v4 = vld [vmem:[#allocation8 + $0xcb0] sm:$0xff]  ;;  %2341 = vmatpush.msrb.mxu1 %v884_v2 }
 0x245   :  { %v1024_v5 = vld [vmem:[#allocation8 + $0xeb0] sm:$0xff]  ;;  %2358 = vmatpush.msrb.mxu2 %v960_v4 }
 0x246   :  { %v816_v7 = vld [vmem:[#allocation8 + $0x830] sm:$0xff]  ;;  %2378 = vmatpush.msrb.mxu3 %v1024_v5 }
 0x247   :  { %v880_v11 = vld [vmem:[#allocation8 + $0xa30] sm:$0xff]  ;;  %2322 = vmatpush.msrb.mxu0 %v816_v7 }
 0x248   :  { %v956_v12 = vld [vmem:[#allocation8 + $0xc90] sm:$0xff]  ;;  %2342 = vmatpush.msrb.mxu1 %v880_v11 }
 0x249   :  { %v1020_v13 = vld [vmem:[#allocation8 + $0xe90] sm:$0xff]  ;;  %2359 = vmatpush.msrb.mxu2 %v956_v12 }
 0x24a   :  { %v812_v14 = vld [vmem:[#allocation8 + $0x810] sm:$0xff]  ;;  %2379 = vmatpush.msrb.mxu3 %v1020_v13 }
 0x24b   :  { %v876_v16 = vld [vmem:[#allocation8 + $0xa10] sm:$0xff]  ;;  %2323 = vmatpush.msrb.mxu0 %v812_v14 }
 0x24c   :  { %v952_v17 = vld [vmem:[#allocation8 + $0xc70] sm:$0xff]  ;;  %2343 = vmatpush.msrb.mxu1 %v876_v16  ;;  %2324 = vmatmul.f32.vlgmr.msrb.gmra.mxu0 %v3375_v54 }
 0x24d   :  { %v1016_v18 = vld [vmem:[#allocation8 + $0xe70] sm:$0xff]  ;;  %2360 = vmatpush.msrb.mxu2 %v952_v17  ;;  %2344 = vmatmul.f32.vlgmr.msrb.gmra.mxu1 %v3380_v60 }
 0x24e   :  { %v1128_v19 = vld [vmem:[#allocation8 + $0x11f0] sm:$0xff]  ;;  %2380 = vmatpush.msrb.mxu3 %v1016_v18 }
 0x24f   :  { %v1192_v20 = vld [vmem:[#allocation8 + $0x13f0] sm:$0xff]  ;;  %2388 = vmatpush.msra.mxu0 %v1128_v19 }
 0x250   :  { %v948_v21 = vld [vmem:[#allocation8 + $0xc50] sm:$0xff]  ;;  %2408 = vmatpush.msra.mxu1 %v1192_v20 }
 0x251   :  { %v1012_v24 = vld [vmem:[#allocation8 + $0xe50] sm:$0xff]  ;;  %2361 = vmatpush.msrb.mxu2 %v948_v21 }
 0x252   :  { %v1124_v25 = vld [vmem:[#allocation8 + $0x11d0] sm:$0xff]  ;;  %2381 = vmatpush.msrb.mxu3 %v1012_v24 }
 0x253   :  { %v1188_v26 = vld [vmem:[#allocation8 + $0x13d0] sm:$0xff]  ;;  %2389 = vmatpush.msra.mxu0 %v1124_v25 }
 0x254   :  { %v944_v27 = vld [vmem:[#allocation8 + $0xc30] sm:$0xff]  ;;  %2409 = vmatpush.msra.mxu1 %v1188_v26 }
 0x255   :  { %v1008_v28 = vld [vmem:[#allocation8 + $0xe30] sm:$0xff]  ;;  %2362 = vmatpush.msrb.mxu2 %v944_v27 }
 0x256   :  { %v1120_v29 = vld [vmem:[#allocation8 + $0x11b0] sm:$0xff]  ;;  %2382 = vmatpush.msrb.mxu3 %v1008_v28 }
 0x257   :  { %v1184_v6 = vld [vmem:[#allocation8 + $0x13b0] sm:$0xff]  ;;  %2390 = vmatpush.msra.mxu0 %v1120_v29 }
 0x258   :  { %v940_v31 = vld [vmem:[#allocation8 + $0xc10] sm:$0xff]  ;;  %2410 = vmatpush.msra.mxu1 %v1184_v6 }
 0x259   :  { %v1004_v32 = vld [vmem:[#allocation8 + $0xe10] sm:$0xff]  ;;  %2363 = vmatpush.msrb.mxu2 %v940_v31 }
 0x25a   :  { %v1116_v33 = vld [vmem:[#allocation8 + $0x1190] sm:$0xff]  ;;  %2383 = vmatpush.msrb.mxu3 %v1004_v32  ;;  %2364 = vmatmul.f32.vlgmr.msrb.gmra.mxu2 %v3373_v51 }
 0x25b   :  { %v1180_v34 = vld [vmem:[#allocation8 + $0x1390] sm:$0xff]  ;;  %2384 = vmatmul.f32.vlgmr.msrb.gmra.mxu3 %v3377_v57  ;;  %2391 = vmatpush.msra.mxu0 %v1116_v33 }
 0x25c   :  { %v1256_v35 = vld [vmem:[#allocation8 + $0x15f0] sm:$0xff]  ;;  %2411 = vmatpush.msra.mxu1 %v1180_v34 }
 0x25d   :  { %v1320_v37 = vld [vmem:[#allocation8 + $0x17f0] sm:$0xff]  ;;  %2428 = vmatpush.msra.mxu2 %v1256_v35 }
 0x25e   :  { %v1112_v39 = vld [vmem:[#allocation8 + $0x1170] sm:$0xff]  ;;  %2448 = vmatpush.msra.mxu3 %v1320_v37 }
 0x25f   :  { %v1176_v40 = vld [vmem:[#allocation8 + $0x1370] sm:$0xff]  ;;  %2392 = vmatpush.msra.mxu0 %v1112_v39 }
 0x260   :  { %v1252_v41 = vld [vmem:[#allocation8 + $0x15d0] sm:$0xff]  ;;  %2412 = vmatpush.msra.mxu1 %v1176_v40 }
 0x261   :  { %v1316_v42 = vld [vmem:[#allocation8 + $0x17d0] sm:$0xff]  ;;  %2429 = vmatpush.msra.mxu2 %v1252_v41 }
 0x262   :  { %v1108_v44 = vld [vmem:[#allocation8 + $0x1150] sm:$0xff]  ;;  %2449 = vmatpush.msra.mxu3 %v1316_v42 }
 0x263   :  { %v1172_v45 = vld [vmem:[#allocation8 + $0x1350] sm:$0xff]  ;;  %2393 = vmatpush.msra.mxu0 %v1108_v44 }
 0x264   :  { %v1248_v46 = vld [vmem:[#allocation8 + $0x15b0] sm:$0xff]  ;;  %2413 = vmatpush.msra.mxu1 %v1172_v45 }
 0x265   :  { %v1312_v47 = vld [vmem:[#allocation8 + $0x17b0] sm:$0xff]  ;;  %2430 = vmatpush.msra.mxu2 %v1248_v46 }
 0x266   :  { %v1104_v48 = vld [vmem:[#allocation8 + $0x1130] sm:$0xff]  ;;  %2450 = vmatpush.msra.mxu3 %v1312_v47 }
 0x267   :  { %v1168_v49 = vld [vmem:[#allocation8 + $0x1330] sm:$0xff]  ;;  %2394 = vmatpush.msra.mxu0 %v1104_v48 }
 0x268   :  { %v1244_v50 = vld [vmem:[#allocation8 + $0x1590] sm:$0xff]  ;;  %2414 = vmatpush.msra.mxu1 %v1168_v49 }
 0x269   :  { %v1308_v52 = vld [vmem:[#allocation8 + $0x1790] sm:$0xff]  ;;  %2431 = vmatpush.msra.mxu2 %v1244_v50 }
 0x26a   :  { %v1100_v53 = vld [vmem:[#allocation8 + $0x1110] sm:$0xff]  ;;  %2451 = vmatpush.msra.mxu3 %v1308_v52 }
 0x26b   :  { %v1164_v55 = vld [vmem:[#allocation8 + $0x1310] sm:$0xff]  ;;  %2395 = vmatpush.msra.mxu0 %v1100_v53 }
 0x26c   :  { %v1240_v56 = vld [vmem:[#allocation8 + $0x1570] sm:$0xff]  ;;  %2415 = vmatpush.msra.mxu1 %v1164_v55 }
 0x26d   :  { %v1304_v58 = vld [vmem:[#allocation8 + $0x1770] sm:$0xff]  ;;  %2432 = vmatpush.msra.mxu2 %v1240_v56 }
 0x26e   :  { %v1096_v59 = vld [vmem:[#allocation8 + $0x10f0] sm:$0xff]  ;;  %2452 = vmatpush.msra.mxu3 %v1304_v58 }
 0x26f   :  { %v1160_v62 = vld [vmem:[#allocation8 + $0x12f0] sm:$0xff]  ;;  %2396 = vmatpush.msra.mxu0 %v1096_v59 }
 0x270   :  { %v1236_v63 = vld [vmem:[#allocation8 + $0x1550] sm:$0xff]  ;;  %2416 = vmatpush.msra.mxu1 %v1160_v62 }
 0x271   :  { %v1300_v0 = vld [vmem:[#allocation8 + $0x1750] sm:$0xff]  ;;  %2433 = vmatpush.msra.mxu2 %v1236_v63 }
 0x272   :  { %v1092_v1 = vld [vmem:[#allocation8 + $0x10d0] sm:$0xff]  ;;  %2453 = vmatpush.msra.mxu3 %v1300_v0 }
 0x273   :  { %v1156_v2 = vld [vmem:[#allocation8 + $0x12d0] sm:$0xff]  ;;  %2397 = vmatpush.msra.mxu0 %v1092_v1 }
 0x274   :  { %v1232_v4 = vld [vmem:[#allocation8 + $0x1530] sm:$0xff]  ;;  %2417 = vmatpush.msra.mxu1 %v1156_v2 }
 0x275   :  { %v1296_v5 = vld [vmem:[#allocation8 + $0x1730] sm:$0xff]  ;;  %2434 = vmatpush.msra.mxu2 %v1232_v4 }
 0x276   :  { %v1088_v7 = vld [vmem:[#allocation8 + $0x10b0] sm:$0xff]  ;;  %2454 = vmatpush.msra.mxu3 %v1296_v5 }
 0x277   :  { %v1152_v11 = vld [vmem:[#allocation8 + $0x12b0] sm:$0xff]  ;;  %2398 = vmatpush.msra.mxu0 %v1088_v7 }
 0x278   :  { %v1228_v12 = vld [vmem:[#allocation8 + $0x1510] sm:$0xff]  ;;  %2418 = vmatpush.msra.mxu1 %v1152_v11 }
 0x279   :  { %v1292_v13 = vld [vmem:[#allocation8 + $0x1710] sm:$0xff]  ;;  %2435 = vmatpush.msra.mxu2 %v1228_v12 }
 0x27a   :  { %v1084_v14 = vld [vmem:[#allocation8 + $0x1090] sm:$0xff]  ;;  %2455 = vmatpush.msra.mxu3 %v1292_v13 }
 0x27b   :  { %v1148_v16 = vld [vmem:[#allocation8 + $0x1290] sm:$0xff]  ;;  %2399 = vmatpush.msra.mxu0 %v1084_v14 }
 0x27c   :  { %v1224_v17 = vld [vmem:[#allocation8 + $0x14f0] sm:$0xff]  ;;  %2419 = vmatpush.msra.mxu1 %v1148_v16 }
 0x27d   :  { %v1288_v18 = vld [vmem:[#allocation8 + $0x16f0] sm:$0xff]  ;;  %2436 = vmatpush.msra.mxu2 %v1224_v17 }
 0x27e   :  { %v1080_v19 = vld [vmem:[#allocation8 + $0x1070] sm:$0xff]  ;;  %2456 = vmatpush.msra.mxu3 %v1288_v18 }
 0x27f   :  { %v1144_v20 = vld [vmem:[#allocation8 + $0x1270] sm:$0xff]  ;;  %2400 = vmatpush.msra.mxu0 %v1080_v19 }
 0x280   :  { %v1220_v21 = vld [vmem:[#allocation8 + $0x14d0] sm:$0xff]  ;;  %2420 = vmatpush.msra.mxu1 %v1144_v20 }
 0x281   :  { %v1284_v24 = vld [vmem:[#allocation8 + $0x16d0] sm:$0xff]  ;;  %2437 = vmatpush.msra.mxu2 %v1220_v21 }
 0x282   :  { %v1076_v25 = vld [vmem:[#allocation8 + $0x1050] sm:$0xff]  ;;  %2457 = vmatpush.msra.mxu3 %v1284_v24 }
 0x283   :  { %v1140_v26 = vld [vmem:[#allocation8 + $0x1250] sm:$0xff]  ;;  %2401 = vmatpush.msra.mxu0 %v1076_v25 }
 0x284   :  { %v1216_v27 = vld [vmem:[#allocation8 + $0x14b0] sm:$0xff]  ;;  %2421 = vmatpush.msra.mxu1 %v1140_v26 }
 0x285   :  { %v1280_v28 = vld [vmem:[#allocation8 + $0x16b0] sm:$0xff]  ;;  %2438 = vmatpush.msra.mxu2 %v1216_v27 }
 0x286   :  { %v1072_v29 = vld [vmem:[#allocation8 + $0x1030] sm:$0xff]  ;;  %2458 = vmatpush.msra.mxu3 %v1280_v28 }
 0x287   :  { %v1136_v6 = vld [vmem:[#allocation8 + $0x1230] sm:$0xff]  ;;  %2402 = vmatpush.msra.mxu0 %v1072_v29 }
 0x288   :  { %v1212_v31 = vld [vmem:[#allocation8 + $0x1490] sm:$0xff]  ;;  %2422 = vmatpush.msra.mxu1 %v1136_v6 }
 0x289   :  { %v1276_v32 = vld [vmem:[#allocation8 + $0x1690] sm:$0xff]  ;;  %2439 = vmatpush.msra.mxu2 %v1212_v31 }
 0x28a   :  { %v1068_v33 = vld [vmem:[#allocation8 + $0x1010] sm:$0xff]  ;;  %2459 = vmatpush.msra.mxu3 %v1276_v32 }
 0x28b   :  { %v1132_v34 = vld [vmem:[#allocation8 + $0x1210] sm:$0xff]  ;;  %2403 = vmatpush.msra.mxu0 %v1068_v33 }
 0x28c   :  { %v1208_v35 = vld [vmem:[#allocation8 + $0x1470] sm:$0xff]  ;;  %2423 = vmatpush.msra.mxu1 %v1132_v34  ;;  %2404 = vmatmul.f32.vlgmr.msra.gmra.mxu0 %v3390_v38 }
 0x28d   :  { %v1272_v37 = vld [vmem:[#allocation8 + $0x1670] sm:$0xff]  ;;  %2440 = vmatpush.msra.mxu2 %v1208_v35  ;;  %2424 = vmatmul.f32.vlgmr.msra.gmra.mxu1 %v3392_v43 }
 0x28e   :  { %v1384_v39 = vld [vmem:[#allocation8 + $0x19f0] sm:$0xff]  ;;  %2460 = vmatpush.msra.mxu3 %v1272_v37 }
 0x28f   :  { %v1448_v40 = vld [vmem:[#allocation8 + $0x1bf0] sm:$0xff]  ;;  %2468 = vmatpush.msrb.mxu0 %v1384_v39 }
 0x290   :  { %v1204_v41 = vld [vmem:[#allocation8 + $0x1450] sm:$0xff]  ;;  %2488 = vmatpush.msrb.mxu1 %v1448_v40 }
 0x291   :  { %v1268_v42 = vld [vmem:[#allocation8 + $0x1650] sm:$0xff]  ;;  %2441 = vmatpush.msra.mxu2 %v1204_v41 }
 0x292   :  { %v1380_v44 = vld [vmem:[#allocation8 + $0x19d0] sm:$0xff]  ;;  %2461 = vmatpush.msra.mxu3 %v1268_v42 }
 0x293   :  { %v1444_v45 = vld [vmem:[#allocation8 + $0x1bd0] sm:$0xff]  ;;  %2469 = vmatpush.msrb.mxu0 %v1380_v44 }
 0x294   :  { %v1200_v46 = vld [vmem:[#allocation8 + $0x1430] sm:$0xff]  ;;  %2489 = vmatpush.msrb.mxu1 %v1444_v45 }
 0x295   :  { %v1264_v47 = vld [vmem:[#allocation8 + $0x1630] sm:$0xff]  ;;  %2442 = vmatpush.msra.mxu2 %v1200_v46 }
 0x296   :  { %v1376_v48 = vld [vmem:[#allocation8 + $0x19b0] sm:$0xff]  ;;  %2462 = vmatpush.msra.mxu3 %v1264_v47 }
 0x297   :  { %v1440_v49 = vld [vmem:[#allocation8 + $0x1bb0] sm:$0xff]  ;;  %2470 = vmatpush.msrb.mxu0 %v1376_v48 }
 0x298   :  { %v1196_v50 = vld [vmem:[#allocation8 + $0x1410] sm:$0xff]  ;;  %2490 = vmatpush.msrb.mxu1 %v1440_v49 }
 0x299   :  { %v1260_v52 = vld [vmem:[#allocation8 + $0x1610] sm:$0xff]  ;;  %2443 = vmatpush.msra.mxu2 %v1196_v50 }
 0x29a   :  { %v1372_v53 = vld [vmem:[#allocation8 + $0x1990] sm:$0xff]  ;;  %2463 = vmatpush.msra.mxu3 %v1260_v52  ;;  %2444 = vmatmul.f32.vlgmr.msra.gmra.mxu2 %v3397_v61 }
 0x29b   :  { %v1436_v55 = vld [vmem:[#allocation8 + $0x1b90] sm:$0xff]  ;;  %2464 = vmatmul.f32.vlgmr.msra.gmra.mxu3 %v3399_v3  ;;  %2471 = vmatpush.msrb.mxu0 %v1372_v53 }
 0x29c   :  { %v1512_v56 = vld [vmem:[#allocation8 + $0x1df0] sm:$0xff]  ;;  %2491 = vmatpush.msrb.mxu1 %v1436_v55 }
 0x29d   :  { %v1576_v58 = vld [vmem:[#allocation8 + $0x1ff0] sm:$0xff]  ;;  %2508 = vmatpush.msrb.mxu2 %v1512_v56 }
 0x29e   :  { %v1368_v59 = vld [vmem:[#allocation8 + $0x1970] sm:$0xff]  ;;  %2528 = vmatpush.msrb.mxu3 %v1576_v58 }
 0x29f   :  { %v1432_v62 = vld [vmem:[#allocation8 + $0x1b70] sm:$0xff]  ;;  %2472 = vmatpush.msrb.mxu0 %v1368_v59  ;;  %v617_v59 = vld [vmem:[#allocation8 + $0x1f8] sm:$0xff] }
 0x2a0   :  { %v1508_v63 = vld [vmem:[#allocation8 + $0x1dd0] sm:$0xff]  ;;  %2492 = vmatpush.msrb.mxu1 %v1432_v62  ;;  %v681_v62 = vld [vmem:[#allocation8 + $0x3f8] sm:$0xff] }
 0x2a1   :  { %v1572_v0 = vld [vmem:[#allocation8 + $0x1fd0] sm:$0xff]  ;;  %2509 = vmatpush.msrb.mxu2 %v1508_v63 }
 0x2a2   :  { %v1364_v1 = vld [vmem:[#allocation8 + $0x1950] sm:$0xff]  ;;  %2529 = vmatpush.msrb.mxu3 %v1572_v0 }
 0x2a3   :  { %v1428_v2 = vld [vmem:[#allocation8 + $0x1b50] sm:$0xff]  ;;  %2473 = vmatpush.msrb.mxu0 %v1364_v1  ;;  %v613_v1 = vld [vmem:[#allocation8 + $0x1d8] sm:$0xff] }
 0x2a4   :  { %v1504_v4 = vld [vmem:[#allocation8 + $0x1db0] sm:$0xff]  ;;  %2493 = vmatpush.msrb.mxu1 %v1428_v2  ;;  %v677_v2 = vld [vmem:[#allocation8 + $0x3d8] sm:$0xff] }
 0x2a5   :  { %v1568_v5 = vld [vmem:[#allocation8 + $0x1fb0] sm:$0xff]  ;;  %2510 = vmatpush.msrb.mxu2 %v1504_v4 }
 0x2a6   :  { %v1360_v7 = vld [vmem:[#allocation8 + $0x1930] sm:$0xff]  ;;  %2530 = vmatpush.msrb.mxu3 %v1568_v5 }
 0x2a7   :  { %v1424_v11 = vld [vmem:[#allocation8 + $0x1b30] sm:$0xff]  ;;  %2474 = vmatpush.msrb.mxu0 %v1360_v7  ;;  %v609_v7 = vld [vmem:[#allocation8 + $0x1b8] sm:$0xff] }
 0x2a8   :  { %v1500_v12 = vld [vmem:[#allocation8 + $0x1d90] sm:$0xff]  ;;  %2494 = vmatpush.msrb.mxu1 %v1424_v11  ;;  %v673_v11 = vld [vmem:[#allocation8 + $0x3b8] sm:$0xff] }
 0x2a9   :  { %v1564_v13 = vld [vmem:[#allocation8 + $0x1f90] sm:$0xff]  ;;  %2511 = vmatpush.msrb.mxu2 %v1500_v12 }
 0x2aa   :  { %v1356_v14 = vld [vmem:[#allocation8 + $0x1910] sm:$0xff]  ;;  %2531 = vmatpush.msrb.mxu3 %v1564_v13 }
 0x2ab   :  { %v1420_v16 = vld [vmem:[#allocation8 + $0x1b10] sm:$0xff]  ;;  %2475 = vmatpush.msrb.mxu0 %v1356_v14  ;;  %v605_v14 = vld [vmem:[#allocation8 + $0x198] sm:$0xff] }
 0x2ac   :  { %v1496_v17 = vld [vmem:[#allocation8 + $0x1d70] sm:$0xff]  ;;  %2495 = vmatpush.msrb.mxu1 %v1420_v16  ;;  %v669_v16 = vld [vmem:[#allocation8 + $0x398] sm:$0xff] }
 0x2ad   :  { %v1560_v18 = vld [vmem:[#allocation8 + $0x1f70] sm:$0xff]  ;;  %2512 = vmatpush.msrb.mxu2 %v1496_v17  ;;  %v745_v17 = vld [vmem:[#allocation8 + $0x5f8] sm:$0xff] }
 0x2ae   :  { %v1352_v19 = vld [vmem:[#allocation8 + $0x18f0] sm:$0xff]  ;;  %2532 = vmatpush.msrb.mxu3 %v1560_v18  ;;  %v809_v18 = vld [vmem:[#allocation8 + $0x7f8] sm:$0xff] }
 0x2af   :  { %v1416_v20 = vld [vmem:[#allocation8 + $0x1af0] sm:$0xff]  ;;  %2476 = vmatpush.msrb.mxu0 %v1352_v19  ;;  %v601_v19 = vld [vmem:[#allocation8 + $0x178] sm:$0xff] }
 0x2b0   :  { %v1492_v21 = vld [vmem:[#allocation8 + $0x1d50] sm:$0xff]  ;;  %2496 = vmatpush.msrb.mxu1 %v1416_v20  ;;  %v665_v20 = vld [vmem:[#allocation8 + $0x378] sm:$0xff] }
 0x2b1   :  { %v1556_v24 = vld [vmem:[#allocation8 + $0x1f50] sm:$0xff]  ;;  %2513 = vmatpush.msrb.mxu2 %v1492_v21  ;;  %v741_v21 = vld [vmem:[#allocation8 + $0x5d8] sm:$0xff] }
 0x2b2   :  { %v1348_v25 = vld [vmem:[#allocation8 + $0x18d0] sm:$0xff]  ;;  %2533 = vmatpush.msrb.mxu3 %v1556_v24  ;;  %v805_v24 = vld [vmem:[#allocation8 + $0x7d8] sm:$0xff] }
 0x2b3   :  { %v1412_v26 = vld [vmem:[#allocation8 + $0x1ad0] sm:$0xff]  ;;  %2477 = vmatpush.msrb.mxu0 %v1348_v25  ;;  %v597_v25 = vld [vmem:[#allocation8 + $0x158] sm:$0xff] }
 0x2b4   :  { %v1488_v27 = vld [vmem:[#allocation8 + $0x1d30] sm:$0xff]  ;;  %2497 = vmatpush.msrb.mxu1 %v1412_v26  ;;  %v661_v26 = vld [vmem:[#allocation8 + $0x358] sm:$0xff] }
 0x2b5   :  { %v1552_v28 = vld [vmem:[#allocation8 + $0x1f30] sm:$0xff]  ;;  %2514 = vmatpush.msrb.mxu2 %v1488_v27  ;;  %v737_v27 = vld [vmem:[#allocation8 + $0x5b8] sm:$0xff] }
 0x2b6   :  { %v1344_v29 = vld [vmem:[#allocation8 + $0x18b0] sm:$0xff]  ;;  %2534 = vmatpush.msrb.mxu3 %v1552_v28  ;;  %v801_v28 = vld [vmem:[#allocation8 + $0x7b8] sm:$0xff] }
 0x2b7   :  { %v1408_v6 = vld [vmem:[#allocation8 + $0x1ab0] sm:$0xff]  ;;  %2478 = vmatpush.msrb.mxu0 %v1344_v29  ;;  %v593_v29 = vld [vmem:[#allocation8 + $0x138] sm:$0xff] }
 0x2b8   :  { %v1484_v31 = vld [vmem:[#allocation8 + $0x1d10] sm:$0xff]  ;;  %2498 = vmatpush.msrb.mxu1 %v1408_v6  ;;  %v657_v6 = vld [vmem:[#allocation8 + $0x338] sm:$0xff] }
 0x2b9   :  { %v1548_v32 = vld [vmem:[#allocation8 + $0x1f10] sm:$0xff]  ;;  %2515 = vmatpush.msrb.mxu2 %v1484_v31  ;;  %v733_v31 = vld [vmem:[#allocation8 + $0x598] sm:$0xff] }
 0x2ba   :  { %v1340_v33 = vld [vmem:[#allocation8 + $0x1890] sm:$0xff]  ;;  %2535 = vmatpush.msrb.mxu3 %v1548_v32  ;;  %v797_v32 = vld [vmem:[#allocation8 + $0x798] sm:$0xff] }
 0x2bb   :  { %v1404_v34 = vld [vmem:[#allocation8 + $0x1a90] sm:$0xff]  ;;  %2479 = vmatpush.msrb.mxu0 %v1340_v33  ;;  %v589_v33 = vld [vmem:[#allocation8 + $0x118] sm:$0xff] }
 0x2bc   :  { %v1480_v35 = vld [vmem:[#allocation8 + $0x1cf0] sm:$0xff]  ;;  %2499 = vmatpush.msrb.mxu1 %v1404_v34  ;;  %v653_v34 = vld [vmem:[#allocation8 + $0x318] sm:$0xff] }
 0x2bd   :  { %v1544_v37 = vld [vmem:[#allocation8 + $0x1ef0] sm:$0xff]  ;;  %2516 = vmatpush.msrb.mxu2 %v1480_v35  ;;  %v729_v35 = vld [vmem:[#allocation8 + $0x578] sm:$0xff] }
 0x2be   :  { %v1336_v39 = vld [vmem:[#allocation8 + $0x1870] sm:$0xff]  ;;  %2536 = vmatpush.msrb.mxu3 %v1544_v37  ;;  %v793_v37 = vld [vmem:[#allocation8 + $0x778] sm:$0xff] }
 0x2bf   :  { %v1400_v40 = vld [vmem:[#allocation8 + $0x1a70] sm:$0xff]  ;;  %2480 = vmatpush.msrb.mxu0 %v1336_v39  ;;  %v585_v39 = vld [vmem:[#allocation8 + $0xf8] sm:$0xff] }
 0x2c0   :  { %v1476_v41 = vld [vmem:[#allocation8 + $0x1cd0] sm:$0xff]  ;;  %2500 = vmatpush.msrb.mxu1 %v1400_v40  ;;  %v649_v40 = vld [vmem:[#allocation8 + $0x2f8] sm:$0xff] }
 0x2c1   :  { %v1540_v42 = vld [vmem:[#allocation8 + $0x1ed0] sm:$0xff]  ;;  %2517 = vmatpush.msrb.mxu2 %v1476_v41  ;;  %v725_v41 = vld [vmem:[#allocation8 + $0x558] sm:$0xff] }
 0x2c2   :  { %v1332_v44 = vld [vmem:[#allocation8 + $0x1850] sm:$0xff]  ;;  %2537 = vmatpush.msrb.mxu3 %v1540_v42  ;;  %v789_v42 = vld [vmem:[#allocation8 + $0x758] sm:$0xff] }
 0x2c3   :  { %v1396_v45 = vld [vmem:[#allocation8 + $0x1a50] sm:$0xff]  ;;  %2481 = vmatpush.msrb.mxu0 %v1332_v44  ;;  %v581_v44 = vld [vmem:[#allocation8 + $0xd8] sm:$0xff] }
 0x2c4   :  { %v1472_v46 = vld [vmem:[#allocation8 + $0x1cb0] sm:$0xff]  ;;  %2501 = vmatpush.msrb.mxu1 %v1396_v45  ;;  %v645_v45 = vld [vmem:[#allocation8 + $0x2d8] sm:$0xff] }
 0x2c5   :  { %v1536_v47 = vld [vmem:[#allocation8 + $0x1eb0] sm:$0xff]  ;;  %2518 = vmatpush.msrb.mxu2 %v1472_v46  ;;  %v721_v46 = vld [vmem:[#allocation8 + $0x538] sm:$0xff] }
 0x2c6   :  { %v1328_v48 = vld [vmem:[#allocation8 + $0x1830] sm:$0xff]  ;;  %2538 = vmatpush.msrb.mxu3 %v1536_v47  ;;  %v785_v47 = vld [vmem:[#allocation8 + $0x738] sm:$0xff] }
 0x2c7   :  { %v1392_v49 = vld [vmem:[#allocation8 + $0x1a30] sm:$0xff]  ;;  %2482 = vmatpush.msrb.mxu0 %v1328_v48  ;;  %v577_v48 = vld [vmem:[#allocation8 + $0xb8] sm:$0xff] }
 0x2c8   :  { %v1468_v50 = vld [vmem:[#allocation8 + $0x1c90] sm:$0xff]  ;;  %2502 = vmatpush.msrb.mxu1 %v1392_v49  ;;  %v641_v49 = vld [vmem:[#allocation8 + $0x2b8] sm:$0xff] }
 0x2c9   :  { %v1532_v52 = vld [vmem:[#allocation8 + $0x1e90] sm:$0xff]  ;;  %2519 = vmatpush.msrb.mxu2 %v1468_v50  ;;  %v717_v50 = vld [vmem:[#allocation8 + $0x518] sm:$0xff] }
 0x2ca   :  { %v1324_v53 = vld [vmem:[#allocation8 + $0x1810] sm:$0xff]  ;;  %2539 = vmatpush.msrb.mxu3 %v1532_v52  ;;  %v781_v52 = vld [vmem:[#allocation8 + $0x718] sm:$0xff] }
 0x2cb   :  { %v1388_v55 = vld [vmem:[#allocation8 + $0x1a10] sm:$0xff]  ;;  %2483 = vmatpush.msrb.mxu0 %v1324_v53  ;;  %v573_v53 = vld [vmem:[#allocation8 + $0x98] sm:$0xff] }
 0x2cc   :  { %v1464_v56 = vld [vmem:[#allocation8 + $0x1c70] sm:$0xff]  ;;  %2503 = vmatpush.msrb.mxu1 %v1388_v55  ;;  %2484 = vmatmul.f32.vlgmr.msrb.gmra.mxu0 %v3406_v10  ;;  %v637_v55 = vld [vmem:[#allocation8 + $0x298] sm:$0xff] }
 0x2cd   :  { %v1528_v58 = vld [vmem:[#allocation8 + $0x1e70] sm:$0xff]  ;;  %2520 = vmatpush.msrb.mxu2 %v1464_v56  ;;  %2504 = vmatmul.f32.vlgmr.msrb.gmra.mxu1 %v3408_v15  ;;  %v713_v56 = vld [vmem:[#allocation8 + $0x4f8] sm:$0xff] }
 0x2ce   :  { %2540 = vmatpush.msrb.mxu3 %v1528_v58  ;;  %v1460_v63 = vld [vmem:[#allocation8 + $0x1c50] sm:$0xff]  ;;  %2548 = vmatpush.msra.mxu0 %v617_v59  ;;  %v777_v58 = vld [vmem:[#allocation8 + $0x6f8] sm:$0xff] }
 0x2cf   :  { %v1524_v0 = vld [vmem:[#allocation8 + $0x1e50] sm:$0xff]  ;;  %2568 = vmatpush.msra.mxu1 %v681_v62  ;;  %2521 = vmatpush.msrb.mxu2 %v1460_v63  ;;  %v569_v59 = vld [vmem:[#allocation8 + $0x78] sm:$0xff] }
 0x2d0   :  { %v1456_v4 = vld [vmem:[#allocation8 + $0x1c30] sm:$0xff]  ;;  %2541 = vmatpush.msrb.mxu3 %v1524_v0  ;;  %2549 = vmatpush.msra.mxu0 %v613_v1  ;;  %v633_v62 = vld [vmem:[#allocation8 + $0x278] sm:$0xff] }
 0x2d1   :  { %v1520_v5 = vld [vmem:[#allocation8 + $0x1e30] sm:$0xff]  ;;  %2569 = vmatpush.msra.mxu1 %v677_v2  ;;  %2522 = vmatpush.msrb.mxu2 %v1456_v4  ;;  %v709_v63 = vld [vmem:[#allocation8 + $0x4d8] sm:$0xff] }
 0x2d2   :  { %v1452_v12 = vld [vmem:[#allocation8 + $0x1c10] sm:$0xff]  ;;  %2542 = vmatpush.msrb.mxu3 %v1520_v5  ;;  %2550 = vmatpush.msra.mxu0 %v609_v7  ;;  %v773_v0 = vld [vmem:[#allocation8 + $0x6d8] sm:$0xff] }
 0x2d3   :  { %v1516_v13 = vld [vmem:[#allocation8 + $0x1e10] sm:$0xff]  ;;  %2570 = vmatpush.msra.mxu1 %v673_v11  ;;  %2523 = vmatpush.msrb.mxu2 %v1452_v12  ;;  %v565_v1 = vld [vmem:[#allocation8 + $0x58] sm:$0xff] }
 0x2d4   :  { %2543 = vmatpush.msrb.mxu3 %v1516_v13  ;;  %2524 = vmatmul.f32.vlgmr.msrb.gmra.mxu2 %v3413_v30  ;;  %v629_v2 = vld [vmem:[#allocation8 + $0x258] sm:$0xff] }
 0x2d5   :  { %2544 = vmatmul.f32.vlgmr.msrb.gmra.mxu3 %v3415_v36  ;;  %2551 = vmatpush.msra.mxu0 %v605_v14  ;;  %v705_v4 = vld [vmem:[#allocation8 + $0x4b8] sm:$0xff] }
 0x2d6   :  { %2571 = vmatpush.msra.mxu1 %v669_v16  ;;  %2588 = vmatpush.msra.mxu2 %v745_v17  ;;  %v769_v5 = vld [vmem:[#allocation8 + $0x6b8] sm:$0xff] }
 0x2d7   :  { %2608 = vmatpush.msra.mxu3 %v809_v18  ;;  %2552 = vmatpush.msra.mxu0 %v601_v19  ;;  %v561_v7 = vld [vmem:[#allocation8 + $0x38] sm:$0xff] }
 0x2d8   :  { %2572 = vmatpush.msra.mxu1 %v665_v20  ;;  %2589 = vmatpush.msra.mxu2 %v741_v21  ;;  %v625_v11 = vld [vmem:[#allocation8 + $0x238] sm:$0xff] }
 0x2d9   :  { %2609 = vmatpush.msra.mxu3 %v805_v24  ;;  %2553 = vmatpush.msra.mxu0 %v597_v25  ;;  %v701_v12 = vld [vmem:[#allocation8 + $0x498] sm:$0xff] }
 0x2da   :  { %2573 = vmatpush.msra.mxu1 %v661_v26  ;;  %2590 = vmatpush.msra.mxu2 %v737_v27  ;;  %v765_v13 = vld [vmem:[#allocation8 + $0x698] sm:$0xff] }
 0x2db   :  { %2610 = vmatpush.msra.mxu3 %v801_v28  ;;  %2554 = vmatpush.msra.mxu0 %v593_v29  ;;  %v557_v14 = vld [vmem:[#allocation8 + $0x18] sm:$0xff] }
 0x2dc   :  { %2574 = vmatpush.msra.mxu1 %v657_v6  ;;  %2591 = vmatpush.msra.mxu2 %v733_v31  ;;  %v621_v16 = vld [vmem:[#allocation8 + $0x218] sm:$0xff] }
 0x2dd   :  { %2611 = vmatpush.msra.mxu3 %v797_v32  ;;  %2555 = vmatpush.msra.mxu0 %v589_v33  ;;  %v697_v17 = vld [vmem:[#allocation8 + $0x478] sm:$0xff] }
 0x2de   :  { %2575 = vmatpush.msra.mxu1 %v653_v34  ;;  %2592 = vmatpush.msra.mxu2 %v729_v35  ;;  %v761_v18 = vld [vmem:[#allocation8 + $0x678] sm:$0xff] }
 0x2df   :  { %2612 = vmatpush.msra.mxu3 %v793_v37  ;;  %2556 = vmatpush.msra.mxu0 %v585_v39  ;;  %v873_v19 = vld [vmem:[#allocation8 + $0x9f8] sm:$0xff] }
 0x2e0   :  { %2576 = vmatpush.msra.mxu1 %v649_v40  ;;  %2593 = vmatpush.msra.mxu2 %v725_v41  ;;  %v937_v20 = vld [vmem:[#allocation8 + $0xbf8] sm:$0xff] }
 0x2e1   :  { %2613 = vmatpush.msra.mxu3 %v789_v42  ;;  %2557 = vmatpush.msra.mxu0 %v581_v44  ;;  %v693_v21 = vld [vmem:[#allocation8 + $0x458] sm:$0xff] }
 0x2e2   :  { %2577 = vmatpush.msra.mxu1 %v645_v45  ;;  %2594 = vmatpush.msra.mxu2 %v721_v46  ;;  %v757_v24 = vld [vmem:[#allocation8 + $0x658] sm:$0xff] }
 0x2e3   :  { %2614 = vmatpush.msra.mxu3 %v785_v47  ;;  %2558 = vmatpush.msra.mxu0 %v577_v48  ;;  %v869_v25 = vld [vmem:[#allocation8 + $0x9d8] sm:$0xff] }
 0x2e4   :  { %2578 = vmatpush.msra.mxu1 %v641_v49  ;;  %2595 = vmatpush.msra.mxu2 %v717_v50  ;;  %v933_v26 = vld [vmem:[#allocation8 + $0xbd8] sm:$0xff] }
 0x2e5   :  { %2615 = vmatpush.msra.mxu3 %v781_v52  ;;  %2559 = vmatpush.msra.mxu0 %v573_v53  ;;  %v689_v27 = vld [vmem:[#allocation8 + $0x438] sm:$0xff] }
 0x2e6   :  { %2579 = vmatpush.msra.mxu1 %v637_v55  ;;  %2596 = vmatpush.msra.mxu2 %v713_v56  ;;  %v753_v28 = vld [vmem:[#allocation8 + $0x638] sm:$0xff] }
 0x2e7   :  { %2616 = vmatpush.msra.mxu3 %v777_v58  ;;  %2560 = vmatpush.msra.mxu0 %v569_v59  ;;  %v865_v29 = vld [vmem:[#allocation8 + $0x9b8] sm:$0xff] }
 0x2e8   :  { %2580 = vmatpush.msra.mxu1 %v633_v62  ;;  %2597 = vmatpush.msra.mxu2 %v709_v63  ;;  %v929_v6 = vld [vmem:[#allocation8 + $0xbb8] sm:$0xff] }
 0x2e9   :  { %2617 = vmatpush.msra.mxu3 %v773_v0  ;;  %2561 = vmatpush.msra.mxu0 %v565_v1  ;;  %v685_v31 = vld [vmem:[#allocation8 + $0x418] sm:$0xff] }
 0x2ea   :  { %2581 = vmatpush.msra.mxu1 %v629_v2  ;;  %2598 = vmatpush.msra.mxu2 %v705_v4  ;;  %v749_v32 = vld [vmem:[#allocation8 + $0x618] sm:$0xff] }
 0x2eb   :  { %2618 = vmatpush.msra.mxu3 %v769_v5  ;;  %2562 = vmatpush.msra.mxu0 %v561_v7  ;;  %v1001_v33 = vld [vmem:[#allocation8 + $0xdf8] sm:$0xff]  ;;  %v3455_v7 = vpop.f32.mrf.mxu0 }
 0x2ec   :  { %2582 = vmatpush.msra.mxu1 %v625_v11  ;;  %2599 = vmatpush.msra.mxu2 %v701_v12  ;;  %v1065_v34 = vld [vmem:[#allocation8 + $0xff8] sm:$0xff] }
 0x2ed   :  { %2619 = vmatpush.msra.mxu3 %v765_v13  ;;  %2563 = vmatpush.msra.mxu0 %v557_v14  ;;  %v857_v35 = vld [vmem:[#allocation8 + $0x978] sm:$0xff] }
 0x2ee   :  { %2583 = vmatpush.msra.mxu1 %v621_v16  ;;  %2600 = vmatpush.msra.mxu2 %v697_v17  ;;  %v921_v37 = vld [vmem:[#allocation8 + $0xb78] sm:$0xff] }
 0x2ef   :  { %2620 = vmatpush.msra.mxu3 %v761_v18  ;;  %2564 = vmatmul.f32.vlgmr.msra.gmra.mxu0 %v3355_v8  ;;  %v861_v8 = vld [vmem:[#allocation8 + $0x998] sm:$0xff] }
 0x2f0   :  { %2584 = vmatmul.f32.vlgmr.msra.gmra.mxu1 %v3357_v9  ;;  %2628 = vmatpush.msrb.mxu0 %v873_v19  ;;  %v925_v9 = vld [vmem:[#allocation8 + $0xb98] sm:$0xff] }
 0x2f1   :  { %2648 = vmatpush.msrb.mxu1 %v937_v20  ;;  %2601 = vmatpush.msra.mxu2 %v693_v21  ;;  %v997_v39 = vld [vmem:[#allocation8 + $0xdd8] sm:$0xff] }
 0x2f2   :  { %2621 = vmatpush.msra.mxu3 %v757_v24  ;;  %2629 = vmatpush.msrb.mxu0 %v869_v25  ;;  %v1061_v40 = vld [vmem:[#allocation8 + $0xfd8] sm:$0xff] }
 0x2f3   :  { %2649 = vmatpush.msrb.mxu1 %v933_v26  ;;  %2602 = vmatpush.msra.mxu2 %v689_v27  ;;  %v853_v41 = vld [vmem:[#allocation8 + $0x958] sm:$0xff]  ;;  %v3457_v26 = vpop.f32.mrf.mxu1  ;;  %v3459_v27 = vpop.f32.mrf.mxu2 }
 0x2f4   :  { %2622 = vmatpush.msra.mxu3 %v753_v28  ;;  %2630 = vmatpush.msrb.mxu0 %v865_v29  ;;  %v917_v42 = vld [vmem:[#allocation8 + $0xb58] sm:$0xff] }
 0x2f5   :  { %2650 = vmatpush.msrb.mxu1 %v929_v6  ;;  %2603 = vmatpush.msra.mxu2 %v685_v31  ;;  %v993_v44 = vld [vmem:[#allocation8 + $0xdb8] sm:$0xff] }
 0x2f6   :  { %2623 = vmatpush.msra.mxu3 %v749_v32  ;;  %2604 = vmatmul.f32.vlgmr.msra.gmra.mxu2 %v3363_v22  ;;  %v1057_v45 = vld [vmem:[#allocation8 + $0xfb8] sm:$0xff] }
 0x2f7   :  { %2624 = vmatmul.f32.vlgmr.msra.gmra.mxu3 %v3365_v23  ;;  %2631 = vmatpush.msrb.mxu0 %v861_v8  ;;  %v849_v46 = vld [vmem:[#allocation8 + $0x938] sm:$0xff] }
 0x2f8   :  { %2651 = vmatpush.msrb.mxu1 %v925_v9  ;;  %2668 = vmatpush.msrb.mxu2 %v1001_v33  ;;  %v913_v22 = vld [vmem:[#allocation8 + $0xb38] sm:$0xff] }
 0x2f9   :  { %2688 = vmatpush.msrb.mxu3 %v1065_v34  ;;  %2632 = vmatpush.msrb.mxu0 %v857_v35  ;;  %v989_v23 = vld [vmem:[#allocation8 + $0xd98] sm:$0xff]  ;;  %v3461_v34 = vpop.f32.mrf.mxu0 }
 0x2fa   :  { %2652 = vmatpush.msrb.mxu1 %v921_v37  ;;  %2669 = vmatpush.msrb.mxu2 %v997_v39  ;;  %v1053_v47 = vld [vmem:[#allocation8 + $0xf98] sm:$0xff]  ;;  %v3463_v39 = vpop.f32.mrf.mxu3 }
 0x2fb   :  { %2689 = vmatpush.msrb.mxu3 %v1061_v40  ;;  %2633 = vmatpush.msrb.mxu0 %v853_v41  ;;  %v845_v48 = vld [vmem:[#allocation8 + $0x918] sm:$0xff] }
 0x2fc   :  { %2653 = vmatpush.msrb.mxu1 %v917_v42  ;;  %2670 = vmatpush.msrb.mxu2 %v993_v44  ;;  %v909_v49 = vld [vmem:[#allocation8 + $0xb18] sm:$0xff] }
 0x2fd   :  { %2690 = vmatpush.msrb.mxu3 %v1057_v45  ;;  %2634 = vmatpush.msrb.mxu0 %v849_v46  ;;  %v985_v50 = vld [vmem:[#allocation8 + $0xd78] sm:$0xff] }
 0x2fe   :  { %2654 = vmatpush.msrb.mxu1 %v913_v22  ;;  %v1049_v52 = vld [vmem:[#allocation8 + $0xf78] sm:$0xff]  ;;  %2671 = vmatpush.msrb.mxu2 %v989_v23 }
 0x2ff   :  { %2691 = vmatpush.msrb.mxu3 %v1053_v47  ;;  %v841_v53 = vld [vmem:[#allocation8 + $0x8f8] sm:$0xff]  ;;  %2635 = vmatpush.msrb.mxu0 %v845_v48  ;;  %v3467_v47 = vpop.f32.mrf.mxu1  ;;  %v3469_v48 = vpop.f32.mrf.mxu2 }
 0x300   :  { %v905_v55 = vld [vmem:[#allocation8 + $0xaf8] sm:$0xff]  ;;  %2655 = vmatpush.msrb.mxu1 %v909_v49  ;;  %2672 = vmatpush.msrb.mxu2 %v985_v50 }
 0x301   :  { %v981_v56 = vld [vmem:[#allocation8 + $0xd58] sm:$0xff]  ;;  %2692 = vmatpush.msrb.mxu3 %v1049_v52  ;;  %2636 = vmatpush.msrb.mxu0 %v841_v53 }
 0x302   :  { %v1045_v58 = vld [vmem:[#allocation8 + $0xf58] sm:$0xff]  ;;  %2656 = vmatpush.msrb.mxu1 %v905_v55  ;;  %2673 = vmatpush.msrb.mxu2 %v981_v56 }
 0x303   :  { %v837_v59 = vld [vmem:[#allocation8 + $0x8d8] sm:$0xff]  ;;  %2693 = vmatpush.msrb.mxu3 %v1045_v58 }
 0x304   :  { %v901_v62 = vld [vmem:[#allocation8 + $0xad8] sm:$0xff]  ;;  %2637 = vmatpush.msrb.mxu0 %v837_v59 }
 0x305   :  { %v977_v63 = vld [vmem:[#allocation8 + $0xd38] sm:$0xff]  ;;  %2657 = vmatpush.msrb.mxu1 %v901_v62 }
 0x306   :  { %v1041_v0 = vld [vmem:[#allocation8 + $0xf38] sm:$0xff]  ;;  %2674 = vmatpush.msrb.mxu2 %v977_v63  ;;  %v3475_v63 = vpop.f32.mrf.mxu3 }
 0x307   :  { %v833_v1 = vld [vmem:[#allocation8 + $0x8b8] sm:$0xff]  ;;  %2694 = vmatpush.msrb.mxu3 %v1041_v0 }
 0x308   :  { %v897_v2 = vld [vmem:[#allocation8 + $0xab8] sm:$0xff]  ;;  %2638 = vmatpush.msrb.mxu0 %v833_v1 }
 0x309   :  { %v973_v4 = vld [vmem:[#allocation8 + $0xd18] sm:$0xff]  ;;  %2658 = vmatpush.msrb.mxu1 %v897_v2 }
 0x30a   :  { %v1037_v5 = vld [vmem:[#allocation8 + $0xf18] sm:$0xff]  ;;  %2675 = vmatpush.msrb.mxu2 %v973_v4 }
 0x30b   :  { %v829_v11 = vld [vmem:[#allocation8 + $0x898] sm:$0xff]  ;;  %2695 = vmatpush.msrb.mxu3 %v1037_v5  ;;  %v3477_v5 = vpop.f32.mrf.mxu1 }
 0x30c   :  { %v893_v12 = vld [vmem:[#allocation8 + $0xa98] sm:$0xff]  ;;  %2639 = vmatpush.msrb.mxu0 %v829_v11 }
 0x30d   :  { %v969_v13 = vld [vmem:[#allocation8 + $0xcf8] sm:$0xff]  ;;  %2659 = vmatpush.msrb.mxu1 %v893_v12 }
 0x30e   :  { %v1033_v14 = vld [vmem:[#allocation8 + $0xef8] sm:$0xff]  ;;  %2676 = vmatpush.msrb.mxu2 %v969_v13 }
 0x30f   :  { %v825_v16 = vld [vmem:[#allocation8 + $0x878] sm:$0xff]  ;;  %2696 = vmatpush.msrb.mxu3 %v1033_v14 }
 0x310   :  { %v889_v17 = vld [vmem:[#allocation8 + $0xa78] sm:$0xff]  ;;  %2640 = vmatpush.msrb.mxu0 %v825_v16 }
 0x311   :  { %v965_v18 = vld [vmem:[#allocation8 + $0xcd8] sm:$0xff]  ;;  %2660 = vmatpush.msrb.mxu1 %v889_v17 }
 0x312   :  { %v1029_v19 = vld [vmem:[#allocation8 + $0xed8] sm:$0xff]  ;;  %2677 = vmatpush.msrb.mxu2 %v965_v18 }
 0x313   :  { %v821_v20 = vld [vmem:[#allocation8 + $0x858] sm:$0xff]  ;;  %2697 = vmatpush.msrb.mxu3 %v1029_v19 }
 0x314   :  { %v885_v21 = vld [vmem:[#allocation8 + $0xa58] sm:$0xff]  ;;  %2641 = vmatpush.msrb.mxu0 %v821_v20 }
 0x315   :  { %v961_v24 = vld [vmem:[#allocation8 + $0xcb8] sm:$0xff]  ;;  %2661 = vmatpush.msrb.mxu1 %v885_v21 }
 0x316   :  { %v1025_v25 = vld [vmem:[#allocation8 + $0xeb8] sm:$0xff]  ;;  %2678 = vmatpush.msrb.mxu2 %v961_v24 }
 0x317   :  { %v817_v28 = vld [vmem:[#allocation8 + $0x838] sm:$0xff]  ;;  %2698 = vmatpush.msrb.mxu3 %v1025_v25 }
 0x318   :  { %v881_v29 = vld [vmem:[#allocation8 + $0xa38] sm:$0xff]  ;;  %2642 = vmatpush.msrb.mxu0 %v817_v28  ;;  %v3483_v28 = vpop.f32.mrf.mxu3 }
 0x319   :  { %v957_v6 = vld [vmem:[#allocation8 + $0xc98] sm:$0xff]  ;;  %2662 = vmatpush.msrb.mxu1 %v881_v29 }
 0x31a   :  { %v1021_v31 = vld [vmem:[#allocation8 + $0xe98] sm:$0xff]  ;;  %2679 = vmatpush.msrb.mxu2 %v957_v6 }
 0x31b   :  { %v813_v32 = vld [vmem:[#allocation8 + $0x818] sm:$0xff]  ;;  %2699 = vmatpush.msrb.mxu3 %v1021_v31 }
 0x31c   :  { %v877_v8 = vld [vmem:[#allocation8 + $0xa18] sm:$0xff]  ;;  %2643 = vmatpush.msrb.mxu0 %v813_v32 }
 0x31d   :  { %v953_v9 = vld [vmem:[#allocation8 + $0xc78] sm:$0xff]  ;;  %2663 = vmatpush.msrb.mxu1 %v877_v8  ;;  %2644 = vmatmul.f32.vlgmr.msrb.gmra.mxu0 %v3375_v54  ;;  %v3485_v8 = vpop.f32.mrf.mxu1 }
 0x31e   :  { %v1017_v33 = vld [vmem:[#allocation8 + $0xe78] sm:$0xff]  ;;  %2680 = vmatpush.msrb.mxu2 %v953_v9  ;;  %2664 = vmatmul.f32.vlgmr.msrb.gmra.mxu1 %v3380_v60  ;;  %v3471_v60 = vpop.f32.mrf.mxu0 }
 0x31f   :  { %v1129_v35 = vld [vmem:[#allocation8 + $0x11f8] sm:$0xff]  ;;  %2700 = vmatpush.msrb.mxu3 %v1017_v33 }
 0x320   :  { %v1193_v37 = vld [vmem:[#allocation8 + $0x13f8] sm:$0xff]  ;;  %2708 = vmatpush.msra.mxu0 %v1129_v35 }
 0x321   :  { %v949_v40 = vld [vmem:[#allocation8 + $0xc58] sm:$0xff]  ;;  %2728 = vmatpush.msra.mxu1 %v1193_v37 }
 0x322   :  { %v1013_v41 = vld [vmem:[#allocation8 + $0xe58] sm:$0xff]  ;;  %2681 = vmatpush.msrb.mxu2 %v949_v40 }
 0x323   :  { %v1125_v42 = vld [vmem:[#allocation8 + $0x11d8] sm:$0xff]  ;;  %2701 = vmatpush.msrb.mxu3 %v1013_v41 }
 0x324   :  { %v1189_v44 = vld [vmem:[#allocation8 + $0x13d8] sm:$0xff]  ;;  %2709 = vmatpush.msra.mxu0 %v1125_v42 }
 0x325   :  { %v945_v45 = vld [vmem:[#allocation8 + $0xc38] sm:$0xff]  ;;  %2729 = vmatpush.msra.mxu1 %v1189_v44 }
 0x326   :  { %v1009_v46 = vld [vmem:[#allocation8 + $0xe38] sm:$0xff]  ;;  %2682 = vmatpush.msrb.mxu2 %v945_v45  ;;  %v3481_v14 = vpop.f32.mrf.mxu0 }
 0x327   :  { %v1121_v22 = vld [vmem:[#allocation8 + $0x11b8] sm:$0xff]  ;;  %2702 = vmatpush.msrb.mxu3 %v1009_v46 }
 0x328   :  { %v1185_v23 = vld [vmem:[#allocation8 + $0x13b8] sm:$0xff]  ;;  %2710 = vmatpush.msra.mxu0 %v1121_v22 }
 0x329   :  { %v941_v49 = vld [vmem:[#allocation8 + $0xc18] sm:$0xff]  ;;  %2730 = vmatpush.msra.mxu1 %v1185_v23 }
 0x32a   :  { %v1005_v54 = vld [vmem:[#allocation8 + $0xe18] sm:$0xff]  ;;  %2683 = vmatpush.msrb.mxu2 %v941_v49 }
 0x32b   :  { %v1117_v50 = vld [vmem:[#allocation8 + $0x1198] sm:$0xff]  ;;  %2703 = vmatpush.msrb.mxu3 %v1005_v54  ;;  %2684 = vmatmul.f32.vlgmr.msrb.gmra.mxu2 %v3373_v51  ;;  %v3479_v51 = vpop.f32.mrf.mxu2 }
 0x32c   :  { %v1181_v52 = vld [vmem:[#allocation8 + $0x1398] sm:$0xff]  ;;  %2704 = vmatmul.f32.vlgmr.msrb.gmra.mxu3 %v3377_v57  ;;  %2711 = vmatpush.msra.mxu0 %v1117_v50  ;;  %v3491_v50 = vpop.f32.mrf.mxu3 }
 0x32d   :  { %v1257_v53 = vld [vmem:[#allocation8 + $0x15f8] sm:$0xff]  ;;  %2731 = vmatpush.msra.mxu1 %v1181_v52 }
 0x32e   :  { %v1321_v55 = vld [vmem:[#allocation8 + $0x17f8] sm:$0xff]  ;;  %2748 = vmatpush.msra.mxu2 %v1257_v53  ;;  %v3489_v41 = vpop.f32.mrf.mxu0 }
 0x32f   :  { %v1113_v56 = vld [vmem:[#allocation8 + $0x1178] sm:$0xff]  ;;  %2768 = vmatpush.msra.mxu3 %v1321_v55 }
 0x330   :  { %v1177_v58 = vld [vmem:[#allocation8 + $0x1378] sm:$0xff]  ;;  %2712 = vmatpush.msra.mxu0 %v1113_v56 }
 0x331   :  { %v1253_v59 = vld [vmem:[#allocation8 + $0x15d8] sm:$0xff]  ;;  %2732 = vmatpush.msra.mxu1 %v1177_v58  ;;  %v3493_v58 = vpop.f32.mrf.mxu1 }
 0x332   :  { %v1317_v62 = vld [vmem:[#allocation8 + $0x17d8] sm:$0xff]  ;;  %2749 = vmatpush.msra.mxu2 %v1253_v59 }
 0x333   :  { %v1109_v0 = vld [vmem:[#allocation8 + $0x1158] sm:$0xff]  ;;  %2769 = vmatpush.msra.mxu3 %v1317_v62  ;;  %v3487_v9 = vpop.f32.mrf.mxu2 }
 0x334   :  { %v1173_v1 = vld [vmem:[#allocation8 + $0x1358] sm:$0xff]  ;;  %2713 = vmatpush.msra.mxu0 %v1109_v0 }
 0x335   :  { %v1249_v2 = vld [vmem:[#allocation8 + $0x15b8] sm:$0xff]  ;;  %2733 = vmatpush.msra.mxu1 %v1173_v1 }
 0x336   :  { %v1313_v4 = vld [vmem:[#allocation8 + $0x17b8] sm:$0xff]  ;;  %2750 = vmatpush.msra.mxu2 %v1249_v2 }
 0x337   :  { %v1105_v57 = vld [vmem:[#allocation8 + $0x1138] sm:$0xff]  ;;  %2770 = vmatpush.msra.mxu3 %v1313_v4  ;;  %v3497_v4 = vpop.f32.mrf.mxu0 }
 0x338   :  { %v1169_v11 = vld [vmem:[#allocation8 + $0x1338] sm:$0xff]  ;;  %2714 = vmatpush.msra.mxu0 %v1105_v57 }
 0x339   :  { %v1245_v12 = vld [vmem:[#allocation8 + $0x1598] sm:$0xff]  ;;  %2734 = vmatpush.msra.mxu1 %v1169_v11 }
 0x33a   :  { %v1309_v13 = vld [vmem:[#allocation8 + $0x1798] sm:$0xff]  ;;  %2751 = vmatpush.msra.mxu2 %v1245_v12 }
 0x33b   :  { %v1101_v16 = vld [vmem:[#allocation8 + $0x1118] sm:$0xff]  ;;  %2771 = vmatpush.msra.mxu3 %v1309_v13  ;;  %v3495_v59 = vpop.f32.mrf.mxu2 }
 0x33c   :  { %v1165_v17 = vld [vmem:[#allocation8 + $0x1318] sm:$0xff]  ;;  %2715 = vmatpush.msra.mxu0 %v1101_v16 }
 0x33d   :  { %v1241_v18 = vld [vmem:[#allocation8 + $0x1578] sm:$0xff]  ;;  %2735 = vmatpush.msra.mxu1 %v1165_v17 }
 0x33e   :  { %v1305_v19 = vld [vmem:[#allocation8 + $0x1778] sm:$0xff]  ;;  %2752 = vmatpush.msra.mxu2 %v1241_v18  ;;  %v3499_v18 = vpop.f32.mrf.mxu3 }
 0x33f   :  { %v1097_v20 = vld [vmem:[#allocation8 + $0x10f8] sm:$0xff]  ;;  %2772 = vmatpush.msra.mxu3 %v1305_v19 }
 0x340   :  { %v1161_v21 = vld [vmem:[#allocation8 + $0x12f8] sm:$0xff]  ;;  %2716 = vmatpush.msra.mxu0 %v1097_v20 }
 0x341   :  { %v1237_v24 = vld [vmem:[#allocation8 + $0x1558] sm:$0xff]  ;;  %2736 = vmatpush.msra.mxu1 %v1161_v21 }
 0x342   :  { %v1301_v25 = vld [vmem:[#allocation8 + $0x1758] sm:$0xff]  ;;  %2753 = vmatpush.msra.mxu2 %v1237_v24 }
 0x343   :  { %v1093_v29 = vld [vmem:[#allocation8 + $0x10d8] sm:$0xff]  ;;  %2773 = vmatpush.msra.mxu3 %v1301_v25  ;;  %v3503_v25 = vpop.f32.mrf.mxu1 }
 0x344   :  { %v1157_v6 = vld [vmem:[#allocation8 + $0x12d8] sm:$0xff]  ;;  %2717 = vmatpush.msra.mxu0 %v1093_v29  ;;  %v3505_v29 = vpop.f32.mrf.mxu2 }
 0x345   :  { %v1233_v31 = vld [vmem:[#allocation8 + $0x1538] sm:$0xff]  ;;  %2737 = vmatpush.msra.mxu1 %v1157_v6 }
 0x346   :  { %v1297_v32 = vld [vmem:[#allocation8 + $0x1738] sm:$0xff]  ;;  %2754 = vmatpush.msra.mxu2 %v1233_v31 }
 0x347   :  { %v1089_v33 = vld [vmem:[#allocation8 + $0x10b8] sm:$0xff]  ;;  %2774 = vmatpush.msra.mxu3 %v1297_v32  ;;  %v3507_v32 = vld [vmem:[#allocation10] sm:$0xf] }
 0x348   :  { %v1153_v35 = vld [vmem:[#allocation8 + $0x12b8] sm:$0xff]  ;;  %2718 = vmatpush.msra.mxu0 %v1089_v33 }
 0x349   :  { %v1229_v37 = vld [vmem:[#allocation8 + $0x1518] sm:$0xff]  ;;  %2738 = vmatpush.msra.mxu1 %v1153_v35 }
 0x34a   :  { %v1293_v40 = vld [vmem:[#allocation8 + $0x1718] sm:$0xff]  ;;  %2755 = vmatpush.msra.mxu2 %v1229_v37  ;;  %v3509_v37 = vpop.f32.mrf.mxu0 }
 0x34b   :  { %v1085_v42 = vld [vmem:[#allocation8 + $0x1098] sm:$0xff]  ;;  %2775 = vmatpush.msra.mxu3 %v1293_v40  ;;  %v1580_v40 = vperm.slane %v3507_v32, 0 }
 0x34c   :  { %v1149_v44 = vld [vmem:[#allocation8 + $0x1298] sm:$0xff]  ;;  %2719 = vmatpush.msra.mxu0 %v1085_v42 }
 0x34d   :  { %v1225_v45 = vld [vmem:[#allocation8 + $0x14f8] sm:$0xff]  ;;  %2739 = vmatpush.msra.mxu1 %v1149_v44 }
 0x34e   :  { %v1289_v46 = vld [vmem:[#allocation8 + $0x16f8] sm:$0xff]  ;;  %2756 = vmatpush.msra.mxu2 %v1225_v45 }
 0x34f   :  { %v1081_v22 = vld [vmem:[#allocation8 + $0x1078] sm:$0xff]  ;;  %2776 = vmatpush.msra.mxu3 %v1289_v46 }
 0x350   :  { %v1145_v23 = vld [vmem:[#allocation8 + $0x1278] sm:$0xff]  ;;  %2720 = vmatpush.msra.mxu0 %v1081_v22  ;;  %v3512_v22 = vpop.f32.mrf.mxu3 }
 0x351   :  { %v1221_v49 = vld [vmem:[#allocation8 + $0x14d8] sm:$0xff]  ;;  %2740 = vmatpush.msra.mxu1 %v1145_v23 }
 0x352   :  { %v1285_v54 = vld [vmem:[#allocation8 + $0x16d8] sm:$0xff]  ;;  %2757 = vmatpush.msra.mxu2 %v1221_v49 }
 0x353   :  { %v1077_v52 = vld [vmem:[#allocation8 + $0x1058] sm:$0xff]  ;;  %2777 = vmatpush.msra.mxu3 %v1285_v54 }
 0x354   :  { %v1141_v53 = vld [vmem:[#allocation8 + $0x1258] sm:$0xff]  ;;  %2721 = vmatpush.msra.mxu0 %v1077_v52 }
 0x355   :  { %v1217_v55 = vld [vmem:[#allocation8 + $0x14b8] sm:$0xff]  ;;  %2741 = vmatpush.msra.mxu1 %v1141_v53  ;;  %v1606_v53 = vadd.f32 %v3455_v7, %v1580_v40  ;;  %v1581_v7 = vperm.slane %v3507_v32, 1 }
 0x356   :  { %v1281_v56 = vld [vmem:[#allocation8 + $0x16b8] sm:$0xff]  ;;  %2758 = vmatpush.msra.mxu2 %v1217_v55  ;;  %v3517_v55 = vpop.f32.mrf.mxu1 }
 0x357   :  { %v1073_v62 = vld [vmem:[#allocation8 + $0x1038] sm:$0xff]  ;;  %2778 = vmatpush.msra.mxu3 %v1281_v56  ;;  %v3519_v56 = vpop.f32.mrf.mxu2 }
 0x358   :  { %v1137_v0 = vld [vmem:[#allocation8 + $0x1238] sm:$0xff]  ;;  %2722 = vmatpush.msra.mxu0 %v1073_v62 }
 0x359   :  { %v1213_v1 = vld [vmem:[#allocation8 + $0x1498] sm:$0xff]  ;;  %2742 = vmatpush.msra.mxu1 %v1137_v0 }
 0x35a   :  { %v1277_v2 = vld [vmem:[#allocation8 + $0x1698] sm:$0xff]  ;;  %2759 = vmatpush.msra.mxu2 %v1213_v1  ;;  %v3521_v1 = vpop.f32.mrf.mxu0 }
 0x35b   :  { %v1069_v57 = vld [vmem:[#allocation8 + $0x1018] sm:$0xff]  ;;  %2779 = vmatpush.msra.mxu3 %v1277_v2 }
 0x35c   :  { %v1133_v11 = vld [vmem:[#allocation8 + $0x1218] sm:$0xff]  ;;  %2723 = vmatpush.msra.mxu0 %v1069_v57 }
 0x35d   :  { %v1209_v12 = vld [vmem:[#allocation8 + $0x1478] sm:$0xff]  ;;  %2743 = vmatpush.msra.mxu1 %v1133_v11  ;;  %2724 = vmatmul.f32.vlgmr.msra.gmra.mxu0 %v3390_v38 }
 0x35e   :  { %v1273_v13 = vld [vmem:[#allocation8 + $0x1678] sm:$0xff]  ;;  %2760 = vmatpush.msra.mxu2 %v1209_v12  ;;  %2744 = vmatmul.f32.vlgmr.msra.gmra.mxu1 %v3392_v43 }
 0x35f   :  { %v1385_v16 = vld [vmem:[#allocation8 + $0x19f8] sm:$0xff]  ;;  %2780 = vmatpush.msra.mxu3 %v1273_v13  ;;  %v1626_v13 = vadd.f32 %v3457_v26, %v1606_v53 }
 0x360   :  { %v1449_v17 = vld [vmem:[#allocation8 + $0x1bf8] sm:$0xff]  ;;  %2788 = vmatpush.msrb.mxu0 %v1385_v16 }
 0x361   :  { %v1205_v19 = vld [vmem:[#allocation8 + $0x1458] sm:$0xff]  ;;  %2808 = vmatpush.msrb.mxu1 %v1449_v17 }
 0x362   :  { %v1269_v20 = vld [vmem:[#allocation8 + $0x1658] sm:$0xff]  ;;  %2761 = vmatpush.msra.mxu2 %v1205_v19 }
 0x363   :  { %v1381_v21 = vld [vmem:[#allocation8 + $0x19d8] sm:$0xff]  ;;  %2781 = vmatpush.msra.mxu3 %v1269_v20 }
 0x364   :  { %v1445_v24 = vld [vmem:[#allocation8 + $0x1bd8] sm:$0xff]  ;;  %2789 = vmatpush.msrb.mxu0 %v1381_v21  ;;  %v3525_v21 = vpop.f32.mrf.mxu3 }
 0x365   :  { %v1201_v6 = vld [vmem:[#allocation8 + $0x1438] sm:$0xff]  ;;  %2809 = vmatpush.msrb.mxu1 %v1445_v24 }
 0x366   :  { %v1265_v31 = vld [vmem:[#allocation8 + $0x1638] sm:$0xff]  ;;  %2762 = vmatpush.msra.mxu2 %v1201_v6 }
 0x367   :  { %v1377_v33 = vld [vmem:[#allocation8 + $0x19b8] sm:$0xff]  ;;  %2782 = vmatpush.msra.mxu3 %v1265_v31  ;;  %v1926_v31 = vadd.f32 %v3489_v41, %v1581_v7 }
 0x368   :  { %v1441_v35 = vld [vmem:[#allocation8 + $0x1bb8] sm:$0xff]  ;;  %2790 = vmatpush.msrb.mxu0 %v1377_v33 }
 0x369   :  { %v1197_v38 = vld [vmem:[#allocation8 + $0x1418] sm:$0xff]  ;;  %2810 = vmatpush.msrb.mxu1 %v1441_v35  ;;  %v1646_v35 = vadd.f32 %v3459_v27, %v1626_v13  ;;  %v1946_v27 = vadd.f32 %v3493_v58, %v1926_v31 }
 0x36a   :  { %v1261_v43 = vld [vmem:[#allocation8 + $0x1618] sm:$0xff]  ;;  %2763 = vmatpush.msra.mxu2 %v1197_v38  ;;  %v3529_v38 = vpop.f32.mrf.mxu1 }
 0x36b   :  { %v1373_v42 = vld [vmem:[#allocation8 + $0x1998] sm:$0xff]  ;;  %2783 = vmatpush.msra.mxu3 %v1261_v43  ;;  %2764 = vmatmul.f32.vlgmr.msra.gmra.mxu2 %v3397_v61  ;;  %v3531_v43 = vpop.f32.mrf.mxu2  ;;  %v1666_v53 = vadd.f32 %v3463_v39, %v1646_v35 }
 0x36c   :  { %v1437_v44 = vld [vmem:[#allocation8 + $0x1b98] sm:$0xff]  ;;  %2784 = vmatmul.f32.vlgmr.msra.gmra.mxu3 %v3399_v3  ;;  %2791 = vmatpush.msrb.mxu0 %v1373_v42  ;;  %v3537_v7 = vpop.f32.mrf.mxu3 }
 0x36d   :  { %v1513_v45 = vld [vmem:[#allocation8 + $0x1df8] sm:$0xff]  ;;  %2811 = vmatpush.msrb.mxu1 %v1437_v44  ;;  %v1582_v44 = vperm.slane %v3507_v32, 2  ;;  %v1686_v13 = vadd.f32 %v3461_v34, %v1666_v53 }
 0x36e   :  { %v1577_v46 = vld [vmem:[#allocation8 + $0x1ff8] sm:$0xff]  ;;  %2828 = vmatpush.msrb.mxu2 %v1513_v45 }
 0x36f   :  { %v1369_v23 = vld [vmem:[#allocation8 + $0x1978] sm:$0xff]  ;;  %2848 = vmatpush.msrb.mxu3 %v1577_v46  ;;  %v2245_v46 = vpop.f32.mrf.mxu0 }
 0x370   :  { %v1433_v49 = vld [vmem:[#allocation8 + $0x1b78] sm:$0xff]  ;;  %2792 = vmatpush.msrb.mxu0 %v1369_v23 }
 0x371   :  { %v1509_v54 = vld [vmem:[#allocation8 + $0x1dd8] sm:$0xff]  ;;  %2812 = vmatpush.msrb.mxu1 %v1433_v49 }
 0x372   :  { %v1573_v52 = vld [vmem:[#allocation8 + $0x1fd8] sm:$0xff]  ;;  %2829 = vmatpush.msrb.mxu2 %v1509_v54 }
 0x373   :  { %v1365_v62 = vld [vmem:[#allocation8 + $0x1958] sm:$0xff]  ;;  %2849 = vmatpush.msrb.mxu3 %v1573_v52 }
 0x374   :  { %v1429_v0 = vld [vmem:[#allocation8 + $0x1b58] sm:$0xff]  ;;  %2793 = vmatpush.msrb.mxu0 %v1365_v62 }
 0x375   :  { %v1505_v61 = vld [vmem:[#allocation8 + $0x1db8] sm:$0xff]  ;;  %2813 = vmatpush.msrb.mxu1 %v1429_v0 }
 0x376   :  { %v1569_v3 = vld [vmem:[#allocation8 + $0x1fb8] sm:$0xff]  ;;  %2830 = vmatpush.msrb.mxu2 %v1505_v61  ;;  %v1966_v61 = vadd.f32 %v3495_v59, %v1946_v27 }
 0x377   :  { %v1361_v2 = vld [vmem:[#allocation8 + $0x1938] sm:$0xff]  ;;  %2850 = vmatpush.msrb.mxu3 %v1569_v3  ;;  %v2246_v3 = vadd.f32 %v2245_v46, %v1582_v44  ;;  %v1706_v44 = vadd.f32 %v3467_v47, %v1686_v13  ;;  %v2887_v47 = vld [vmem:[%s3769_s5 + $0x78] sm:$0xff] }
 0x378   :  { %v1425_v57 = vld [vmem:[#allocation8 + $0x1b38] sm:$0xff]  ;;  %2794 = vmatpush.msrb.mxu0 %v1361_v2 }
 0x379   :  { %v1501_v11 = vld [vmem:[#allocation8 + $0x1d98] sm:$0xff]  ;;  %2814 = vmatpush.msrb.mxu1 %v1425_v57 }
 0x37a   :  { %v1565_v12 = vld [vmem:[#allocation8 + $0x1f98] sm:$0xff]  ;;  %2831 = vmatpush.msrb.mxu2 %v1501_v11 }
 0x37b   :  { %v1357_v16 = vld [vmem:[#allocation8 + $0x1918] sm:$0xff]  ;;  %2851 = vmatpush.msrb.mxu3 %v1565_v12 }
 0x37c   :  { %v1421_v17 = vld [vmem:[#allocation8 + $0x1b18] sm:$0xff]  ;;  %2795 = vmatpush.msrb.mxu0 %v1357_v16  ;;  %v2265_v16 = vpop.f32.mrf.mxu1 }
 0x37d   :  { %v1497_v19 = vld [vmem:[#allocation8 + $0x1d78] sm:$0xff]  ;;  %2815 = vmatpush.msrb.mxu1 %v1421_v17  ;;  %v2285_v17 = vpop.f32.mrf.mxu2 }
 0x37e   :  { %v1561_v20 = vld [vmem:[#allocation8 + $0x1f78] sm:$0xff]  ;;  %2832 = vmatpush.msrb.mxu2 %v1497_v19 }
 0x37f   :  { %v1353_v24 = vld [vmem:[#allocation8 + $0x18f8] sm:$0xff]  ;;  %2852 = vmatpush.msrb.mxu3 %v1561_v20  ;;  %v1986_v20 = vadd.f32 %v3499_v18, %v1966_v61 }
 0x380   :  { %v1417_v6 = vld [vmem:[#allocation8 + $0x1af8] sm:$0xff]  ;;  %2796 = vmatpush.msrb.mxu0 %v1353_v24  ;;  %v2266_v24 = vadd.f32 %v2265_v16, %v2246_v3 }
 0x381   :  { %v1493_v33 = vld [vmem:[#allocation8 + $0x1d58] sm:$0xff]  ;;  %2816 = vmatpush.msrb.mxu1 %v1417_v6  ;;  %v2006_v35 = vadd.f32 %v3497_v4, %v1986_v20  ;;  %v2899_v20 = vld [vmem:[%s3769_s5 + $0xd8] sm:$0xff] }
 0x382   :  { %v1557_v26 = vld [vmem:[#allocation8 + $0x1f58] sm:$0xff]  ;;  %2833 = vmatpush.msrb.mxu2 %v1493_v33  ;;  %v2286_v34 = vadd.f32 %v2285_v17, %v2266_v24  ;;  %v2884_v17 = vld [vmem:[%s3769_s5 + $0x60] sm:$0xff] }
 0x383   :  { %v1349_v40 = vld [vmem:[#allocation8 + $0x18d8] sm:$0xff]  ;;  %2853 = vmatpush.msrb.mxu3 %v1557_v26  ;;  %v2026_v4 = vadd.f32 %v3503_v25, %v2006_v35 }
 0x384   :  { %v1413_v42 = vld [vmem:[#allocation8 + $0x1ad8] sm:$0xff]  ;;  %2797 = vmatpush.msrb.mxu0 %v1349_v40 }
 0x385   :  { %v1489_v45 = vld [vmem:[#allocation8 + $0x1d38] sm:$0xff]  ;;  %2817 = vmatpush.msrb.mxu1 %v1413_v42 }
 0x386   :  { %v1553_v41 = vld [vmem:[#allocation8 + $0x1f38] sm:$0xff]  ;;  %2834 = vmatpush.msrb.mxu2 %v1489_v45 }
 0x387   :  { %v1345_v23 = vld [vmem:[#allocation8 + $0x18b8] sm:$0xff]  ;;  %2854 = vmatpush.msrb.mxu3 %v1553_v41 }
 0x388   :  { %v1409_v49 = vld [vmem:[#allocation8 + $0x1ab8] sm:$0xff]  ;;  %2798 = vmatpush.msrb.mxu0 %v1345_v23  ;;  %v2305_v23 = vpop.f32.mrf.mxu3 }
 0x389   :  { %v1485_v54 = vld [vmem:[#allocation8 + $0x1d18] sm:$0xff]  ;;  %2818 = vmatpush.msrb.mxu1 %v1409_v49  ;;  %v2325_v49 = vpop.f32.mrf.mxu0  ;;  %v2306_v27 = vadd.f32 %v2305_v23, %v2286_v34  ;;  %v2881_v34 = vld [vmem:[%s3769_s5 + $0x48] sm:$0xff]  ;;  %v2879_v23 = vld [vmem:[%s3769_s5 + $0x38] sm:$0xff] }
 0x38a   :  { %v1549_v52 = vld [vmem:[#allocation8 + $0x1f18] sm:$0xff]  ;;  %2835 = vmatpush.msrb.mxu2 %v1485_v54  ;;  %v2903_v54 = vld [vmem:[%s3769_s5 + $0xf8] sm:$0xff] }
 0x38b   :  { %v1341_v62 = vld [vmem:[#allocation8 + $0x1898] sm:$0xff]  ;;  %2855 = vmatpush.msrb.mxu3 %v1549_v52  ;;  %v1726_v52 = vadd.f32 %v3469_v48, %v1706_v44  ;;  %v2326_v25 = vadd.f32 %v2325_v49, %v2306_v27  ;;  %v2916_v44 = vld [vmem:[%s3769_s5 + $0x160] sm:$0xff]  ;;  %v2895_v49 = vld [vmem:[%s3769_s5 + $0xb8] sm:$0xff] }
 0x38c   :  { %v1405_v0 = vld [vmem:[#allocation8 + $0x1a98] sm:$0xff]  ;;  %2799 = vmatpush.msrb.mxu0 %v1341_v62 }
 0x38d   :  { %v1481_v2 = vld [vmem:[#allocation8 + $0x1cf8] sm:$0xff]  ;;  %2819 = vmatpush.msrb.mxu1 %v1405_v0  ;;  %v2046_v0 = vadd.f32 %v3505_v29, %v2026_v4  ;;  %v1746_v29 = vadd.f32 %v3475_v63, %v1726_v52  ;;  %v2900_v63 = vld [vmem:[%s3769_s5 + $0xe0] sm:$0xff] }
 0x38e   :  { %v1545_v57 = vld [vmem:[#allocation8 + $0x1ef8] sm:$0xff]  ;;  %2836 = vmatpush.msrb.mxu2 %v1481_v2 }
 0x38f   :  { %v1337_v58 = vld [vmem:[#allocation8 + $0x1878] sm:$0xff]  ;;  %2856 = vmatpush.msrb.mxu3 %v1545_v57  ;;  %v2345_v57 = vpop.f32.mrf.mxu1  ;;  %v1766_v16 = vadd.f32 %v3471_v60, %v1746_v29  ;;  %v2883_v60 = vld [vmem:[%s3769_s5 + $0x58] sm:$0xff] }
 0x390   :  { %v1401_v11 = vld [vmem:[#allocation8 + $0x1a78] sm:$0xff]  ;;  %2800 = vmatpush.msrb.mxu0 %v1337_v58  ;;  %v2365_v58 = vpop.f32.mrf.mxu2  ;;  %v2346_v13 = vadd.f32 %v2345_v57, %v2326_v25  ;;  %v2875_v57 = vld [vmem:[%s3769_s5 + $0x18] sm:$0xff] }
 0x391   :  { %v1477_v39 = vld [vmem:[#allocation8 + $0x1cd8] sm:$0xff]  ;;  %2820 = vmatpush.msrb.mxu1 %v1401_v11  ;;  %v1786_v24 = vadd.f32 %v3477_v5, %v1766_v16  ;;  %v2917_v5 = vld [vmem:[%s3769_s5 + $0x168] sm:$0xff] }
 0x392   :  { %v1541_v12 = vld [vmem:[#allocation8 + $0x1ed8] sm:$0xff]  ;;  %2837 = vmatpush.msrb.mxu2 %v1477_v39 }
 0x393   :  { %v1333_v59 = vld [vmem:[#allocation8 + $0x1858] sm:$0xff]  ;;  %2857 = vmatpush.msrb.mxu3 %v1541_v12  ;;  %v2066_v12 = vadd.f32 %v3512_v22, %v2046_v0  ;;  %v2919_v22 = vld [vmem:[%s3769_s5 + $0x178] sm:$0xff]  ;;  %v1806_v35 = vadd.f32 %v3479_v51, %v1786_v24  ;;  %v2880_v51 = vld [vmem:[%s3769_s5 + $0x40] sm:$0xff] }
 0x394   :  { %v1397_v19 = vld [vmem:[#allocation8 + $0x1a58] sm:$0xff]  ;;  %2801 = vmatpush.msrb.mxu0 %v1333_v59  ;;  %v2893_v0 = vld [vmem:[%s3769_s5 + $0xa8] sm:$0xff] }
 0x395   :  { %v1473_v6 = vld [vmem:[#allocation8 + $0x1cb8] sm:$0xff]  ;;  %2821 = vmatpush.msrb.mxu1 %v1397_v19  ;;  %v2086_v59 = vadd.f32 %v3509_v37, %v2066_v12  ;;  %v2366_v19 = vadd.f32 %v2365_v58, %v2346_v13  ;;  %v2891_v58 = vld [vmem:[%s3769_s5 + $0x98] sm:$0xff] }
 0x396   :  { %v1537_v31 = vld [vmem:[#allocation8 + $0x1eb8] sm:$0xff]  ;;  %2838 = vmatpush.msrb.mxu2 %v1473_v6  ;;  %v2385_v6 = vpop.f32.mrf.mxu3 }
 0x397   :  { %v1329_v33 = vld [vmem:[#allocation8 + $0x1838] sm:$0xff]  ;;  %2858 = vmatpush.msrb.mxu3 %v1537_v31 }
 0x398   :  { %v1393_v26 = vld [vmem:[#allocation8 + $0x1a38] sm:$0xff]  ;;  %2802 = vmatpush.msrb.mxu0 %v1329_v33  ;;  %v2106_v33 = vadd.f32 %v3517_v55, %v2086_v59  ;;  %v2889_v59 = vld [vmem:[%s3769_s5 + $0x88] sm:$0xff] }
 0x399   :  { %v1469_v40 = vld [vmem:[#allocation8 + $0x1c98] sm:$0xff]  ;;  %2822 = vmatpush.msrb.mxu1 %v1393_v26  ;;  %v2386_v26 = vadd.f32 %v2385_v6, %v2366_v19 }
 0x39a   :  { %v1533_v42 = vld [vmem:[#allocation8 + $0x1e98] sm:$0xff]  ;;  %2839 = vmatpush.msrb.mxu2 %v1469_v40  ;;  %v2897_v40 = vld [vmem:[%s3769_s5 + $0xc8] sm:$0xff]  ;;  %v2126_v55 = vadd.f32 %v3519_v56, %v2106_v33  ;;  %v2915_v56 = vld [vmem:[%s3769_s5 + $0x158] sm:$0xff] }
 0x39b   :  { %v1325_v18 = vld [vmem:[#allocation8 + $0x1818] sm:$0xff]  ;;  %2859 = vmatpush.msrb.mxu3 %v1533_v42  ;;  %v2905_v33 = vld [vmem:[%s3769_s5 + $0x108] sm:$0xff] }
 0x39c   :  { %v1389_v45 = vld [vmem:[#allocation8 + $0x1a18] sm:$0xff]  ;;  %2803 = vmatpush.msrb.mxu0 %v1325_v18  ;;  %v2896_v18 = vld [vmem:[%s3769_s5 + $0xc0] sm:$0xff]  ;;  %v2146_v4 = vadd.f32 %v3525_v21, %v2126_v55 }
 0x39d   :  { %v1465_v41 = vld [vmem:[#allocation8 + $0x1c78] sm:$0xff]  ;;  %2823 = vmatpush.msrb.mxu1 %v1389_v45  ;;  %2804 = vmatmul.f32.vlgmr.msrb.gmra.mxu0 %v3406_v10  ;;  %v2885_v10 = vld [vmem:[%s3769_s5 + $0x68] sm:$0xff]  ;;  %v1826_v45 = vadd.f32 %v3483_v28, %v1806_v35  ;;  %v2935_v35 = vld [vmem:[%s3769_s5 + $0x1f8] sm:$0xff] }
 0x39e   :  { %v1529_v46 = vld [vmem:[#allocation8 + $0x1e78] sm:$0xff]  ;;  %2840 = vmatpush.msrb.mxu2 %v1465_v41  ;;  %2824 = vmatmul.f32.vlgmr.msrb.gmra.mxu1 %v3408_v15  ;;  %v2901_v15 = vld [vmem:[%s3769_s5 + $0xe8] sm:$0xff]  ;;  %v2425_v41 = vpop.f32.mrf.mxu1  ;;  %v2166_v21 = vadd.f32 %v3521_v1, %v2146_v4  ;;  %v2912_v1 = vld [vmem:[%s3769_s5 + $0x140] sm:$0xff] }
 0x39f   :  { %2860 = vmatpush.msrb.mxu3 %v1529_v46  ;;  %v1461_v53 = vld [vmem:[#allocation8 + $0x1c58] sm:$0xff]  ;;  %2940 = vmatpush.msra.mxu0 %v2887_v47  ;;  %v2445_v46 = vpop.f32.mrf.mxu2  ;;  %v1846_v47 = vadd.f32 %v3481_v14, %v1826_v45  ;;  %v2877_v14 = vld [vmem:[%s3769_s5 + $0x28] sm:$0xff]  ;;  %v2932_v55 = vld [vmem:[%s3769_s5 + $0x1e0] sm:$0xff] }
 0x3a0   :  { %v1525_v62 = vld [vmem:[#allocation8 + $0x1e58] sm:$0xff]  ;;  %2960 = vmatpush.msra.mxu1 %v2903_v54  ;;  %2841 = vmatpush.msrb.mxu2 %v1461_v53  ;;  %v2928_v45 = vld [vmem:[%s3769_s5 + $0x1c0] sm:$0xff] }
 0x3a1   :  { %v2886_v61 = vld [vmem:[%s3769_s5 + $0x70] sm:$0xff]  ;;  %2861 = vmatpush.msrb.mxu3 %v1525_v62  ;;  %v2913_v62 = vld [vmem:[%s3769_s5 + $0x148] sm:$0xff]  ;;  %v1866_v25 = vadd.f32 %v3485_v8, %v1846_v47  ;;  %v2911_v8 = vld [vmem:[%s3769_s5 + $0x138] sm:$0xff] }
 0x3a2   :  { %v2902_v3 = vld [vmem:[%s3769_s5 + $0xf0] sm:$0xff]  ;;  %2941 = vmatpush.msra.mxu0 %v2886_v61  ;;  %v2465_v61 = vpop.f32.mrf.mxu3  ;;  %v2924_v47 = vld [vmem:[%s3769_s5 + $0x1a0] sm:$0xff] }
 0x3a3   :  { %v1457_v48 = vld [vmem:[#allocation8 + $0x1c38] sm:$0xff]  ;;  %2961 = vmatpush.msra.mxu1 %v2902_v3  ;;  %v1886_v29 = vadd.f32 %v3487_v9, %v1866_v25 }
 0x3a4   :  { %v1521_v2 = vld [vmem:[#allocation8 + $0x1e38] sm:$0xff]  ;;  %2842 = vmatpush.msrb.mxu2 %v1457_v48  ;;  %2942 = vmatpush.msra.mxu0 %v2885_v10  ;;  %v2876_v48 = vld [vmem:[%s3769_s5 + $0x20] sm:$0xff]  ;;  %v2186_v10 = vadd.f32 %v3529_v38, %v2166_v21 }
 0x3a5   :  { %v1453_v11 = vld [vmem:[#allocation8 + $0x1c18] sm:$0xff]  ;;  %2862 = vmatpush.msrb.mxu3 %v1521_v2  ;;  %2962 = vmatpush.msra.mxu1 %v2901_v15  ;;  %v2892_v2 = vld [vmem:[%s3769_s5 + $0xa0] sm:$0xff]  ;;  %v1906_v13 = vadd.f32 %v3491_v50, %v1886_v29 }
 0x3a6   :  { %v1517_v39 = vld [vmem:[#allocation8 + $0x1e18] sm:$0xff]  ;;  %2843 = vmatpush.msrb.mxu2 %v1453_v11  ;;  %2943 = vmatpush.msra.mxu0 %v2884_v17  ;;  %v2206_v38 = vadd.f32 %v3531_v43, %v2186_v10  ;;  %v2909_v43 = vld [vmem:[%s3769_s5 + $0x128] sm:$0xff]  ;;  %v2505_v16 = vpop.f32.mrf.mxu1  ;;  %v2908_v50 = vld [vmem:[%s3769_s5 + $0x120] sm:$0xff] }
 0x3a7   :  { %2863 = vmatpush.msrb.mxu3 %v1517_v39  ;;  %2844 = vmatmul.f32.vlgmr.msrb.gmra.mxu2 %v3413_v30  ;;  %v2918_v37 = vld [vmem:[%s3769_s5 + $0x170] sm:$0xff]  ;;  %v2405_v30 = vpop.f32.mrf.mxu0  ;;  %v2525_v17 = vpop.f32.mrf.mxu2  ;;  %v2868_v24 = vmax.f32 %v1906_v13, 0.0 }
 0x3a8   :  { %2864 = vmatmul.f32.vlgmr.msrb.gmra.mxu3 %v3415_v36  ;;  %2963 = vmatpush.msra.mxu1 %v2900_v63  ;;  %v2882_v36 = vld [vmem:[%s3769_s5 + $0x50] sm:$0xff]  ;;  %v2406_v42 = vadd.f32 %v2405_v30, %v2386_v26  ;;  %v2873_v63 = vld [vmem:[%s3769_s5 + $0x8] sm:$0xff]  ;;  %v2226_v19 = vadd.f32 %v3537_v7, %v2206_v38  ;;  %v2907_v7 = vld [vmem:[%s3769_s5 + $0x118] sm:$0xff] }
 0x3a9   :  { %2980 = vmatpush.msra.mxu2 %v2919_v22  ;;  %v2898_v31 = vld [vmem:[%s3769_s5 + $0xd0] sm:$0xff]  ;;  %2944 = vmatpush.msra.mxu0 %v2883_v60  ;;  %v2872_v60 = vld [vmem:[%s3769_s5] sm:$0xff] }
 0x3aa   :  { %2964 = vmatpush.msra.mxu1 %v2899_v20  ;;  %v2426_v27 = vadd.f32 %v2425_v41, %v2406_v42  ;;  %v2914_v28 = vld [vmem:[%s3769_s5 + $0x150] sm:$0xff]  ;;  %v2888_v20 = vld [vmem:[%s3769_s5 + $0x80] sm:$0xff]  ;;  %v2869_v6 = vmax.f32 %v2226_v19, 0.0  ;;  %3000 = vmatpush.msra.mxu3 %v2935_v35  ;;  %v2931_v42 = vld [vmem:[%s3769_s5 + $0x1d8] sm:$0xff] }
 0x3ab   :  { %2981 = vmatpush.msra.mxu2 %v2918_v37  ;;  %2945 = vmatpush.msra.mxu0 %v2882_v36  ;;  %v2878_v54 = vld [vmem:[%s3769_s5 + $0x30] sm:$0xff]  ;;  %v2545_v36 = vpop.f32.mrf.mxu3  ;;  %v2904_v26 = vld [vmem:[%s3769_s5 + $0x100] sm:$0xff] }
 0x3ac   :  { %2965 = vmatpush.msra.mxu1 %v2898_v31  ;;  %v2894_v52 = vld [vmem:[%s3769_s5 + $0xb0] sm:$0xff]  ;;  %v2446_v53 = vadd.f32 %v2445_v46, %v2426_v27  ;;  %v2927_v46 = vld [vmem:[%s3769_s5 + $0x1b8] sm:$0xff]  ;;  %v2925_v27 = vld [vmem:[%s3769_s5 + $0x1a8] sm:$0xff] }
 0x3ad   :  { %2982 = vmatpush.msra.mxu2 %v2917_v5  ;;  %2946 = vmatpush.msra.mxu0 %v2881_v34  ;;  %v2910_v39 = vld [vmem:[%s3769_s5 + $0x130] sm:$0xff] }
 0x3ae   :  { %2966 = vmatpush.msra.mxu1 %v2897_v40  ;;  %v2466_v15 = vadd.f32 %v2465_v61, %v2446_v53  ;;  %v2874_v9 = vld [vmem:[%s3769_s5 + $0x10] sm:$0xff]  ;;  %v2933_v40 = vld [vmem:[%s3769_s5 + $0x1e8] sm:$0xff]  ;;  %v2923_v53 = vld [vmem:[%s3769_s5 + $0x198] sm:$0xff] }
 0x3af   :  { %2983 = vmatpush.msra.mxu2 %v2916_v44  ;;  %2947 = vmatpush.msra.mxu0 %v2880_v51  ;;  %v2485_v3 = vpop.f32.mrf.mxu0  ;;  %v2890_v12 = vld [vmem:[%s3769_s5 + $0x90] sm:$0xff]  ;;  %v1583_v51 = vperm.slane %v3507_v32, 3 }
 0x3b0   :  { %2967 = vmatpush.msra.mxu1 %v2896_v18  ;;  %v2486_v11 = vadd.f32 %v2485_v3, %v2466_v15  ;;  %v2906_v30 = vld [vmem:[%s3769_s5 + $0x110] sm:$0xff] }
 0x3b1   :  { %2984 = vmatpush.msra.mxu2 %v2915_v56  ;;  %2948 = vmatpush.msra.mxu0 %v2879_v23  ;;  %v2934_v34 = vld [vmem:[%s3769_s5 + $0x1f0] sm:$0xff]  ;;  %v2929_v56 = vld [vmem:[%s3769_s5 + $0x1c8] sm:$0xff]  ;;  %v2585_v23 = vpop.f32.mrf.mxu1 }
 0x3b2   :  { %2968 = vmatpush.msra.mxu1 %v2895_v49  ;;  %v2506_v22 = vadd.f32 %v2505_v16, %v2486_v11  ;;  %3001 = vmatpush.msra.mxu3 %v2934_v34  ;;  %v2930_v44 = vld [vmem:[%s3769_s5 + $0x1d0] sm:$0xff]  ;;  %v2605_v49 = vpop.f32.mrf.mxu2 }
 0x3b3   :  { %2985 = vmatpush.msra.mxu2 %v2914_v28  ;;  %2949 = vmatpush.msra.mxu0 %v2878_v54  ;;  %v2926_v32 = vld [vmem:[%s3769_s5 + $0x1b0] sm:$0xff]  ;;  %v2625_v54 = vpop.f32.mrf.mxu3 }
 0x3b4   :  { %2969 = vmatpush.msra.mxu1 %v2894_v52  ;;  %v2526_v37 = vadd.f32 %v2525_v17, %v2506_v22  ;;  %3002 = vmatpush.msra.mxu3 %v2933_v40  ;;  %v3069_v22 = vld [vmem:[#allocation11] ss:$0 sm:$0xff] }
 0x3b5   :  { %2986 = vmatpush.msra.mxu2 %v2913_v62  ;;  %2950 = vmatpush.msra.mxu0 %v2877_v14  ;;  %v2922_v14 = vld [vmem:[%s3769_s5 + $0x190] sm:$0xff] }
 0x3b6   :  { %2970 = vmatpush.msra.mxu1 %v2893_v0  ;;  %v2546_v31 = vadd.f32 %v2545_v36, %v2526_v37  ;;  %3003 = vmatpush.msra.mxu3 %v2932_v55  ;;  %v2921_v0 = vld [vmem:[%s3769_s5 + $0x188] sm:$0xff] }
 0x3b7   :  { %2987 = vmatpush.msra.mxu2 %v2912_v1  ;;  %2951 = vmatpush.msra.mxu0 %v2876_v48  ;;  %v2565_v18 = vpop.f32.mrf.mxu0  ;;  %v2920_v1 = vld [vmem:[%s3769_s5 + $0x180] sm:$0xff]  ;;  %s3258_s5 = smov [#allocation13]  }
 0x3b8   :  { %2971 = vmatpush.msra.mxu1 %v2892_v2  ;;  %v2870_v5 = vmax.f32 %v2546_v31, 0.0  ;;  %3004 = vmatpush.msra.mxu3 %v2931_v42  ;;  %v2566_v41 = vadd.f32 %v2565_v18, %v1583_v51  ;;  %s3027_s17 = sshll.u32 %s3258_s5, 4  ;;  %s3028_s17 = int_to_ptr.vmem [resolvable:$true] %s3027_s17 }
 0x3b9   :  { %2988 = vmatpush.msra.mxu2 %v2911_v8  ;;  %2952 = vmatpush.msra.mxu0 %v2875_v57  ;;  %v2665_v25 = vpop.f32.mrf.mxu1 }
 0x3ba   :  { %2972 = vmatpush.msra.mxu1 %v2891_v58  ;;  %3005 = vmatpush.msra.mxu3 %v2930_v44  ;;  %v2586_v4 = vadd.f32 %v2585_v23, %v2566_v41  ;;  %v2685_v61 = vpop.f32.mrf.mxu2 }
 0x3bb   :  { %2989 = vmatpush.msra.mxu2 %v2910_v39  ;;  %2953 = vmatpush.msra.mxu0 %v2874_v9  ;;  %v2705_v2 = vpop.f32.mrf.mxu3 }
 0x3bc   :  { %2973 = vmatpush.msra.mxu1 %v2890_v12  ;;  %3006 = vmatpush.msra.mxu3 %v2929_v56  ;;  %v2606_v28 = vadd.f32 %v2605_v49, %v2586_v4 }
 0x3bd   :  { %2990 = vmatpush.msra.mxu2 %v2909_v43  ;;  %2954 = vmatpush.msra.mxu0 %v2873_v63 }
 0x3be   :  { %2974 = vmatpush.msra.mxu1 %v2889_v59  ;;  %3007 = vmatpush.msra.mxu3 %v2928_v45  ;;  %v2626_v21 = vadd.f32 %v2625_v54, %v2606_v28 }
 0x3bf   :  { %2991 = vmatpush.msra.mxu2 %v2908_v50  ;;  %2955 = vmatpush.msra.mxu0 %v2872_v60  ;;  %v2645_v52 = vpop.f32.mrf.mxu0 }
 0x3c0   :  { %2975 = vmatpush.msra.mxu1 %v2888_v20  ;;  %2956 = vmatmul.f32.vlgmr.msra.gmra.mxu0 %v2868_v24  ;;  %v2646_v62 = vadd.f32 %v2645_v52, %v2626_v21 }
 0x3c1   :  { %2992 = vmatpush.msra.mxu2 %v2907_v7  ;;  %2976 = vmatmul.f32.vlgmr.msra.gmra.mxu1 %v2869_v6 }
 0x3c2   :  { %3008 = vmatpush.msra.mxu3 %v2927_v46  ;;  %v2666_v3 = vadd.f32 %v2665_v25, %v2646_v62 }
 0x3c3   :  { %2993 = vmatpush.msra.mxu2 %v2906_v30 }
 0x3c4   :  { %3009 = vmatpush.msra.mxu3 %v2926_v32  ;;  %v2686_v48 = vadd.f32 %v2685_v61, %v2666_v3 }
 0x3c5   :  { %2994 = vmatpush.msra.mxu2 %v2905_v33 }
 0x3c6   :  { %3010 = vmatpush.msra.mxu3 %v2925_v27  ;;  %v2706_v15 = vadd.f32 %v2705_v2, %v2686_v48 }
 0x3c7   :  { %2995 = vmatpush.msra.mxu2 %v2904_v26 }
 0x3c8   :  { %2996 = vmatmul.f32.vlgmr.msra.gmra.mxu2 %v2870_v5  ;;  %3011 = vmatpush.msra.mxu3 %v2924_v47 }
 0x3ca   :  { %3012 = vmatpush.msra.mxu3 %v2923_v53 }
 0x3cc   :  { %3013 = vmatpush.msra.mxu3 %v2922_v14 }
 0x3ce   :  { %3014 = vmatpush.msra.mxu3 %v2921_v0 }
 0x3d0   :  { %3015 = vmatpush.msra.mxu3 %v2920_v1 }
 0x3da   :  { %v2725_v10 = vpop.f32.mrf.mxu0 }
 0x3db   :  { %v2726_v8 = vadd.f32 %v2725_v10, %v2706_v15  ;;  %v2745_v29 = vpop.f32.mrf.mxu1 }
 0x3dd   :  { %v2746_v58 = vadd.f32 %v2745_v29, %v2726_v8 }
 0x3ee   :  { %v2765_v57 = vpop.f32.mrf.mxu2 }
 0x3ef   :  { %v2766_v38 = vadd.f32 %v2765_v57, %v2746_v58  ;;  %v2785_v11 = vpop.f32.mrf.mxu3 }
 0x3f1   :  { %v2786_v9 = vadd.f32 %v2785_v11, %v2766_v38 }
 0x41a   :  { %v2805_v39 = vpop.f32.mrf.mxu0 }
 0x41b   :  { %v2806_v12 = vadd.f32 %v2805_v39, %v2786_v9  ;;  %v2825_v43 = vpop.f32.mrf.mxu1 }
 0x41d   :  { %v2826_v13 = vadd.f32 %v2825_v43, %v2806_v12 }
 0x42a   :  { %v2845_v16 = vpop.f32.mrf.mxu2 }
 0x42b   :  { %v2846_v17 = vadd.f32 %v2845_v16, %v2826_v13  ;;  %v2865_v63 = vpop.f32.mrf.mxu3 }
 0x42d   :  { %v2866_v59 = vadd.f32 %v2865_v63, %v2846_v17 }
 0x42f   :  { %v2871_v19 = vmax.f32 %v2866_v59, 0.0 }
 0x431   :  { %3016 = vmatmul.f32.vlgmr.msra.gmra.mxu3 %v2871_v19 }
 0x43d   :  { %v2957_v50 = vpop.f32.mrf.mxu0 }
 0x43e   :  { %v2958_v60 = vadd.f32 %v3069_v22, %v2957_v50  ;;  %v2977_v20 = vpop.f32.mrf.mxu1 }
 0x440   :  { %v2978_v7 = vadd.f32 %v2977_v20, %v2958_v60 }
 0x44b   :  { %v2997_v37 = vpop.f32.mrf.mxu2 }
 0x44c   :  { %v2998_v24 = vadd.f32 %v2997_v37, %v2978_v7 }
 0x4b4   :  { %v3017_v6 = vpop.f32.mrf.mxu3 }
 0x4b5   :  { %v3018_v30 = vadd.f32 %v3017_v6, %v2998_v24 }
 0x4b7   :  { %3021 = vst.msk [vmem:[#allocation13] sm:$0xff] %vm3020_vm1, %v3018_v30 }
 0x4b8   :  { %3032 = dma.vmem_to_hbm [thread:$0]  %s3028_s17, 128, %s3030_s3, [#allocation4]  }
 0x4b9   :  { %3246 = dma.done.wait [#allocation4], 128  }
 0x4ba   :  { %3247 = vsyncadd [#allocation4], 4294967168 }
 0x4bb   :  { %3037 = vsyncpa [#allocation3], 1 }
 0x4bc   :  { %3038 = vsyncpa [#allocation6], 1 }
 0x4bd   :  { %3039 = vsyncpa [#allocation9], 1 }
 0x4be   :  { %3040 = vsyncpa [#allocation12], 1 }
 0x4bf   :  { %3041 = vsyncpa [#allocation4], 1 }

</bundles_post_ra>
